<compile_context>
chip_gen: v5e
topology: v5e:2x2
jax: 0.10.0
libtpu: 0.0.40
codegen_flags: <defaults>
</compile_context>

<pallas_src>
import functools

import jax
import jax.numpy as jnp
from jax import lax
from jax.experimental import pallas as pl
from jax.experimental.pallas import tpu as pltpu

# Small, module-consistent shapes.
B, T, I, H, L = 2, 8, 16, 32, 2  # batch, seq, input_size, hidden_size, num_layers


def rnn_kernel(x_ref, wl0_ref, wsq_ref, b_ref, out_ref, seq1_ref,
               *, hidden, seq_len):
    nB = x_ref.shape[1]
    Hh = hidden

    # ---- unpack packed weights / biases (static slices, done once) ----------
    u0r, u0z, u0n = wsq_ref[0], wsq_ref[1], wsq_ref[2]   # whh0 per gate, (H,H), pre-transposed
    a1r, a1z, a1n = wsq_ref[3], wsq_ref[4], wsq_ref[5]   # wih1 per gate, pre-transposed
    u1r, u1z, u1n = wsq_ref[6], wsq_ref[7], wsq_ref[8]   # whh1 per gate, pre-transposed
    waT = wsq_ref[9]                                     # attention W, pre-transposed

    bf0    = b_ref[0:1, :]            # (1,3H): bih0_eff + [bhh0_r, bhh0_z, 0]
    bhh0_n = b_ref[1:2, 0:Hh]
    b1_r   = b_ref[2:3, 0:Hh]         # bih1_r + bhh1_r
    b1_z   = b_ref[3:4, 0:Hh]         # bih1_z + bhh1_z
    bih1_n = b_ref[4:5, 0:Hh]
    bhh1_n = b_ref[5:6, 0:Hh]
    ba     = b_ref[6:7, 0:Hh]
    u_row  = b_ref[7:8, 0:Hh]

    def mm(a, w):                     # (B,K) @ (K,N), f32 accumulate on the MXU
        return lax.dot_general(a, w, (((1,), (0,)), ((), ())),
                               preferred_element_type=jnp.float32)

    # ---- batched layer-0 input-side gates (off the serial path) -------------
    # (T,B,I) @ (I,3H) in a single MXU pass; per-gate slices taken once here.
    gi0 = lax.dot_general(x_ref[...], wl0_ref[...], (((2,), (0,)), ((), ())),
                          preferred_element_type=jnp.float32) + bf0
    gi0_r = gi0[:, :, 0:Hh]
    gi0_z = gi0[:, :, Hh:2 * Hh]
    gi0_n = gi0[:, :, 2 * Hh:3 * Hh]

    def cell0(t, h):
        # layer-0 GRU cell; input-side gate terms already precomputed (gi0_*).
        r = jax.nn.sigmoid(gi0_r[t] + mm(h, u0r))
        z = jax.nn.sigmoid(gi0_z[t] + mm(h, u0z))
        n = jnp.tanh(gi0_n[t] + r * (mm(h, u0n) + bhh0_n))
        return (1.0 - z) * n + z * h

    def cell1(x_in, h):
        # layer-1 GRU cell; x_in is layer-0's output from the previous iteration,
        # so its matmuls have a full iteration of slack off the serial chain.
        r = jax.nn.sigmoid(mm(x_in, a1r) + mm(h, u1r) + b1_r)
        z = jax.nn.sigmoid(mm(x_in, a1z) + mm(h, u1z) + b1_z)
        n = jnp.tanh(mm(x_in, a1n) + bih1_n + r * (mm(h, u1n) + bhh1_n))
        return (1.0 - z) * n + z * h

    # ---- fully-unrolled, layer-interleaved recurrence ------------------------
    h0 = jnp.zeros((nB, Hh), jnp.float32)
    h1 = jnp.zeros((nB, Hh), jnp.float32)
    h0_prev = h0
    for i in range(seq_len + 1):
        if i >= 1:
            h1 = cell1(h0_prev, h1)       # layer-1 step i-1
            seq1_ref[i - 1] = h1          # store rnn_out[t] (only value kept)
        if i < seq_len:
            h0 = cell0(i, h0)             # layer-0 step i
            h0_prev = h0

    # last_out = h_n.mean(dim=0) over the 2 layers
    last_out = 0.5 * (h0 + h1)            # (B, H)

    # ---- concat attention over time ------------------------------------------
    seq1 = seq1_ref[...]                                              # (T,B,H)
    laten = jnp.tanh(
        lax.dot_general(seq1, waT, (((2,), (0,)), ((), ())),
                        preferred_element_type=jnp.float32) + ba)
    logits = jnp.sum(laten * u_row, axis=-1, keepdims=True)           # (T,B,1)
    m = jnp.max(logits, axis=0, keepdims=True)
    e = jnp.exp(logits - m)
    denom = jnp.sum(e, axis=0, keepdims=True)
    inv = pl.reciprocal(denom, approx=True)
    inv = inv * (2.0 - denom * inv)          # one Newton step -> full f32 accuracy
    att_out = jnp.sum(seq1 * (e * inv), axis=0)                       # (B, H)

    # Two sliced stores (lane-offset concat is avoided for lowering robustness;
    # cost is one extra masked vst at this size).
    out_ref[:, 0:Hh] = last_out
    out_ref[:, Hh:2 * Hh] = att_out


# --------------------------- host-side packing --------------------------------
def _gate(w, g):
    return w[g * H:(g + 1) * H]


def _bgate(b, g):
    return b[:, g * H:(g + 1) * H]


def pack_params(p):
    """Fold input projection into layer-0 and pack params into 3 arrays."""
    wih0_eff = p["wih0"] @ p["wp"]                   # (3H, I)
    bih0_eff = p["bih0"] + p["bp"] @ p["wih0"].T     # (1, 3H)

    wl0 = wih0_eff.T                                 # (I, 3H) for x @ wl0

    wsq = jnp.stack(
        [_gate(p["whh0"], g).T for g in range(3)]
        + [_gate(p["wih1"], g).T for g in range(3)]
        + [_gate(p["whh1"], g).T for g in range(3)]
        + [p["wa"].T],
        axis=0)                                      # (10, H, H)

    bf0 = bih0_eff + jnp.concatenate(
        [_bgate(p["bhh0"], 0), _bgate(p["bhh0"], 1),
         jnp.zeros((1, H), jnp.float32)], axis=1)    # (1, 3H)
    rows = [
        _bgate(p["bhh0"], 2),                                # bhh0_n
        _bgate(p["bih1"], 0) + _bgate(p["bhh1"], 0),         # b1_r
        _bgate(p["bih1"], 1) + _bgate(p["bhh1"], 1),         # b1_z
        _bgate(p["bih1"], 2),                                # bih1_n
        _bgate(p["bhh1"], 2),                                # bhh1_n
        p["ba"],                                             # attention bias
        p["u"],                                              # attention u row
    ]
    bpack = jnp.concatenate(
        [bf0] + [jnp.pad(r, ((0, 0), (0, 2 * H))) for r in rows],
        axis=0).astype(jnp.float32)                  # (8, 3H)
    return wl0.astype(jnp.float32), wsq.astype(jnp.float32), bpack


def rnn_forward(x, p):
    """x: (B, T, I) batch-first, like the PyTorch module. Returns (B, 2*H)."""
    x_tm = jnp.swapaxes(x, 0, 1).astype(jnp.float32)          # (T, B, I)
    wl0, wsq, bpack = pack_params(p)
    vmem = pl.BlockSpec(memory_space=pltpu.MemorySpace.VMEM)
    # TODO(synk): for production batch sizes, add a grid over batch tiles with
    # dimension_semantics=("parallel",) (uses v7x's 2 TensorCores) and pack
    # outputs lane-dense; at B=2 a single program is the right shape.
    return pl.pallas_call(
        functools.partial(rnn_kernel, hidden=H, seq_len=T),
        out_shape=jax.ShapeDtypeStruct((x.shape[0], 2 * H), jnp.float32),
        in_specs=[vmem, vmem, vmem, vmem],
        out_specs=vmem,
        scratch_shapes=[
            pltpu.VMEM((T, x.shape[0], H), jnp.float32),      # layer-1 rnn_out
        ],
    )(x_tm, wl0, wsq, bpack)


# ---------------------- pure-JAX reference (for verification) ----------------
def ref_forward(x, p):
    x = x.astype(jnp.float32)
    xp = x @ p["wp"].T + p["bp"][0]

    def gru_layer(inp, wih, whh, bih, bhh):
        def cell(h, xt):
            gi = xt @ wih.T + bih[0]
            gh = h @ whh.T + bhh[0]
            r = jax.nn.sigmoid(gi[:, :H] + gh[:, :H])
            z = jax.nn.sigmoid(gi[:, H:2 * H] + gh[:, H:2 * H])
            n = jnp.tanh(gi[:, 2 * H:] + r * gh[:, 2 * H:])
            h_new = (1.0 - z) * n + z * h
            return h_new, h_new

        h0 = jnp.zeros((x.shape[0], H), jnp.float32)
        hT, ys = lax.scan(cell, h0, jnp.swapaxes(inp, 0, 1))
        return jnp.swapaxes(ys, 0, 1), hT

    out0, hL0 = gru_layer(xp, p["wih0"], p["whh0"], p["bih0"], p["bhh0"])
    out1, hL1 = gru_layer(out0, p["wih1"], p["whh1"], p["bih1"], p["bhh1"])
    last = 0.5 * (hL0 + hL1)
    laten = jnp.tanh(out1 @ p["wa"].T + p["ba"][0])
    scores = jax.nn.softmax(laten @ p["u"].T, axis=1)         # (B, T, 1)
    att = jnp.sum(out1 * scores, axis=1)
    return jnp.concatenate([last, att], axis=1)


def make_params(key):
    def uni(k, shape, bound):
        return jax.random.uniform(k, shape, jnp.float32, -bound, bound)

    ks = jax.random.split(key, 20)
    bi = 1.0 / jnp.sqrt(I)
    bh = 1.0 / jnp.sqrt(H)
    p = {
        "wp": uni(ks[0], (H, I), bi), "bp": uni(ks[1], (1, H), bi),
        "wih0": uni(ks[2], (3 * H, H), bh), "whh0": uni(ks[3], (3 * H, H), bh),
        "bih0": uni(ks[4], (1, 3 * H), bh), "bhh0": uni(ks[5], (1, 3 * H), bh),
        "wih1": uni(ks[6], (3 * H, H), bh), "whh1": uni(ks[7], (3 * H, H), bh),
        "bih1": uni(ks[8], (1, 3 * H), bh), "bhh1": uni(ks[9], (1, 3 * H), bh),
        "wa": uni(ks[10], (H, H), bh), "ba": uni(ks[11], (1, H), bh),
        "u": uni(ks[12], (1, H), bh),
    }
    return p


if __name__ == "__main__":
    key = jax.random.PRNGKey(0)
    kx, kp = jax.random.split(key)
    x = jax.random.normal(kx, (B, T, I), jnp.float32)
    params = make_params(kp)

    out = jax.block_until_ready(rnn_forward(x, params))
    ref = jax.block_until_ready(ref_forward(x, params))

    assert out.shape == (B, 2 * H), out.shape
    assert float(jnp.max(jnp.abs(out - ref))) < 1e-4, "mismatch vs JAX reference"
    print("KERNEL_OK")
</pallas_src>

<mosaic_0001>
module attributes {stable_mosaic.version = 11 : i64} {
  func.func @rnn_kernel(%arg0: memref<8x2x16xf32, #tpu.memory_space<vmem>>, %arg1: memref<16x96xf32, #tpu.memory_space<vmem>>, %arg2: memref<10x32x32xf32, #tpu.memory_space<vmem>>, %arg3: memref<8x96xf32, #tpu.memory_space<vmem>>, %arg4: memref<2x64xf32, #tpu.memory_space<vmem>>, %arg5: memref<8x2x32xf32, #tpu.memory_space<vmem>>) attributes {dimension_semantics = [], scalar_prefetch = 0 : i64, scratch_operands = 1 : i64, tpu.core_type = #tpu.core_type<tc>} {
    %c0 = arith.constant 0 : index
    %c0_0 = arith.constant 0 : index
    %c0_1 = arith.constant 0 : index
    %0 = vector.load %arg2[%c0, %c0_0, %c0_1] : memref<10x32x32xf32, #tpu.memory_space<vmem>>, vector<1x32x32xf32>
    %1 = vector.shape_cast %0 : vector<1x32x32xf32> to vector<32x32xf32>
    %c1 = arith.constant 1 : index
    %c0_2 = arith.constant 0 : index
    %c0_3 = arith.constant 0 : index
    %2 = vector.load %arg2[%c1, %c0_2, %c0_3] : memref<10x32x32xf32, #tpu.memory_space<vmem>>, vector<1x32x32xf32>
    %3 = vector.shape_cast %2 : vector<1x32x32xf32> to vector<32x32xf32>
    %c2 = arith.constant 2 : index
    %c0_4 = arith.constant 0 : index
    %c0_5 = arith.constant 0 : index
    %4 = vector.load %arg2[%c2, %c0_4, %c0_5] : memref<10x32x32xf32, #tpu.memory_space<vmem>>, vector<1x32x32xf32>
    %5 = vector.shape_cast %4 : vector<1x32x32xf32> to vector<32x32xf32>
    %c3 = arith.constant 3 : index
    %c0_6 = arith.constant 0 : index
    %c0_7 = arith.constant 0 : index
    %6 = vector.load %arg2[%c3, %c0_6, %c0_7] : memref<10x32x32xf32, #tpu.memory_space<vmem>>, vector<1x32x32xf32>
    %7 = vector.shape_cast %6 : vector<1x32x32xf32> to vector<32x32xf32>
    %c4 = arith.constant 4 : index
    %c0_8 = arith.constant 0 : index
    %c0_9 = arith.constant 0 : index
    %8 = vector.load %arg2[%c4, %c0_8, %c0_9] : memref<10x32x32xf32, #tpu.memory_space<vmem>>, vector<1x32x32xf32>
    %9 = vector.shape_cast %8 : vector<1x32x32xf32> to vector<32x32xf32>
    %c5 = arith.constant 5 : index
    %c0_10 = arith.constant 0 : index
    %c0_11 = arith.constant 0 : index
    %10 = vector.load %arg2[%c5, %c0_10, %c0_11] : memref<10x32x32xf32, #tpu.memory_space<vmem>>, vector<1x32x32xf32>
    %11 = vector.shape_cast %10 : vector<1x32x32xf32> to vector<32x32xf32>
    %c6 = arith.constant 6 : index
    %c0_12 = arith.constant 0 : index
    %c0_13 = arith.constant 0 : index
    %12 = vector.load %arg2[%c6, %c0_12, %c0_13] : memref<10x32x32xf32, #tpu.memory_space<vmem>>, vector<1x32x32xf32>
    %13 = vector.shape_cast %12 : vector<1x32x32xf32> to vector<32x32xf32>
    %c7 = arith.constant 7 : index
    %c0_14 = arith.constant 0 : index
    %c0_15 = arith.constant 0 : index
    %14 = vector.load %arg2[%c7, %c0_14, %c0_15] : memref<10x32x32xf32, #tpu.memory_space<vmem>>, vector<1x32x32xf32>
    %15 = vector.shape_cast %14 : vector<1x32x32xf32> to vector<32x32xf32>
    %c8 = arith.constant 8 : index
    %c0_16 = arith.constant 0 : index
    %c0_17 = arith.constant 0 : index
    %16 = vector.load %arg2[%c8, %c0_16, %c0_17] : memref<10x32x32xf32, #tpu.memory_space<vmem>>, vector<1x32x32xf32>
    %17 = vector.shape_cast %16 : vector<1x32x32xf32> to vector<32x32xf32>
    %c9 = arith.constant 9 : index
    %c0_18 = arith.constant 0 : index
    %c0_19 = arith.constant 0 : index
    %18 = vector.load %arg2[%c9, %c0_18, %c0_19] : memref<10x32x32xf32, #tpu.memory_space<vmem>>, vector<1x32x32xf32>
    %19 = vector.shape_cast %18 : vector<1x32x32xf32> to vector<32x32xf32>
    %c0_20 = arith.constant 0 : index
    %c0_21 = arith.constant 0 : index
    %20 = vector.load %arg3[%c0_20, %c0_21] : memref<8x96xf32, #tpu.memory_space<vmem>>, vector<1x96xf32>
    %c1_22 = arith.constant 1 : index
    %c0_23 = arith.constant 0 : index
    %21 = vector.load %arg3[%c1_22, %c0_23] : memref<8x96xf32, #tpu.memory_space<vmem>>, vector<1x32xf32>
    %c2_24 = arith.constant 2 : index
    %c0_25 = arith.constant 0 : index
    %22 = vector.load %arg3[%c2_24, %c0_25] : memref<8x96xf32, #tpu.memory_space<vmem>>, vector<1x32xf32>
    %c3_26 = arith.constant 3 : index
    %c0_27 = arith.constant 0 : index
    %23 = vector.load %arg3[%c3_26, %c0_27] : memref<8x96xf32, #tpu.memory_space<vmem>>, vector<1x32xf32>
    %c4_28 = arith.constant 4 : index
    %c0_29 = arith.constant 0 : index
    %24 = vector.load %arg3[%c4_28, %c0_29] : memref<8x96xf32, #tpu.memory_space<vmem>>, vector<1x32xf32>
    %c5_30 = arith.constant 5 : index
    %c0_31 = arith.constant 0 : index
    %25 = vector.load %arg3[%c5_30, %c0_31] : memref<8x96xf32, #tpu.memory_space<vmem>>, vector<1x32xf32>
    %c6_32 = arith.constant 6 : index
    %c0_33 = arith.constant 0 : index
    %26 = vector.load %arg3[%c6_32, %c0_33] : memref<8x96xf32, #tpu.memory_space<vmem>>, vector<1x32xf32>
    %c7_34 = arith.constant 7 : index
    %c0_35 = arith.constant 0 : index
    %27 = vector.load %arg3[%c7_34, %c0_35] : memref<8x96xf32, #tpu.memory_space<vmem>>, vector<1x32xf32>
    %c0_36 = arith.constant 0 : index
    %c0_37 = arith.constant 0 : index
    %c0_38 = arith.constant 0 : index
    %28 = vector.load %arg0[%c0_36, %c0_37, %c0_38] : memref<8x2x16xf32, #tpu.memory_space<vmem>>, vector<8x2x16xf32>
    %c0_39 = arith.constant 0 : index
    %c0_40 = arith.constant 0 : index
    %29 = vector.load %arg1[%c0_39, %c0_40] : memref<16x96xf32, #tpu.memory_space<vmem>>, vector<16x96xf32>
    %cst = arith.constant dense<0.000000e+00> : vector<8x2x96xf32>
    %30 = tpu.matmul %28, %29, %cst {dimension_numbers = #tpu.dot_dimension_numbers<[2], [0], [0, 1], [1], [0, 0, 0, 1, 1, 1], [], []>} : vector<8x2x16xf32>, vector<16x96xf32>, vector<8x2x96xf32> -> vector<8x2x96xf32>
    %31 = vector.shape_cast %20 : vector<1x96xf32> to vector<1x1x96xf32>
    %32 = vector.broadcast %31 : vector<1x1x96xf32> to vector<8x2x96xf32>
    %33 = arith.addf %30, %32 : vector<8x2x96xf32>
    %34 = vector.extract_strided_slice %33 {offsets = [0, 0, 0], sizes = [8, 2, 32], strides = [1, 1, 1]} : vector<8x2x96xf32> to vector<8x2x32xf32>
    %35 = vector.extract_strided_slice %33 {offsets = [0, 0, 32], sizes = [8, 2, 32], strides = [1, 1, 1]} : vector<8x2x96xf32> to vector<8x2x32xf32>
    %36 = vector.extract_strided_slice %33 {offsets = [0, 0, 64], sizes = [8, 2, 32], strides = [1, 1, 1]} : vector<8x2x96xf32> to vector<8x2x32xf32>
    %cst_41 = arith.constant 0.000000e+00 : f32
    %37 = vector.broadcast %cst_41 : f32 to vector<2x32xf32>
    %cst_42 = arith.constant 0.000000e+00 : f32
    %38 = vector.broadcast %cst_42 : f32 to vector<2x32xf32>
    %39 = vector.extract_strided_slice %34 {offsets = [0, 0, 0], sizes = [1, 2, 32], strides = [1, 1, 1]} : vector<8x2x32xf32> to vector<1x2x32xf32>
    %40 = vector.shape_cast %39 : vector<1x2x32xf32> to vector<2x32xf32>
    %cst_43 = arith.constant dense<0.000000e+00> : vector<2x32xf32>
    %41 = tpu.matmul %37, %1, %cst_43 {dimension_numbers = #tpu.dot_dimension_numbers<[1], [0], [0], [1], [0, 0, 1, 1], [], []>} : vector<2x32xf32>, vector<32x32xf32>, vector<2x32xf32> -> vector<2x32xf32>
    %42 = arith.addf %40, %41 : vector<2x32xf32>
    %43 = arith.negf %42 : vector<2x32xf32>
    %44 = math.exp %43 : vector<2x32xf32>
    %cst_44 = arith.constant 1.000000e+00 : f32
    %45 = vector.broadcast %cst_44 : f32 to vector<2x32xf32>
    %46 = arith.addf %45, %44 : vector<2x32xf32>
    %47 = arith.divf %45, %46 : vector<2x32xf32>
    %48 = vector.extract_strided_slice %35 {offsets = [0, 0, 0], sizes = [1, 2, 32], strides = [1, 1, 1]} : vector<8x2x32xf32> to vector<1x2x32xf32>
    %49 = vector.shape_cast %48 : vector<1x2x32xf32> to vector<2x32xf32>
    %cst_45 = arith.constant dense<0.000000e+00> : vector<2x32xf32>
    %50 = tpu.matmul %37, %3, %cst_45 {dimension_numbers = #tpu.dot_dimension_numbers<[1], [0], [0], [1], [0, 0, 1, 1], [], []>} : vector<2x32xf32>, vector<32x32xf32>, vector<2x32xf32> -> vector<2x32xf32>
    %51 = arith.addf %49, %50 : vector<2x32xf32>
    %52 = arith.negf %51 : vector<2x32xf32>
    %53 = math.exp %52 : vector<2x32xf32>
    %cst_46 = arith.constant 1.000000e+00 : f32
    %54 = vector.broadcast %cst_46 : f32 to vector<2x32xf32>
    %55 = arith.addf %54, %53 : vector<2x32xf32>
    %56 = arith.divf %54, %55 : vector<2x32xf32>
    %57 = vector.extract_strided_slice %36 {offsets = [0, 0, 0], sizes = [1, 2, 32], strides = [1, 1, 1]} : vector<8x2x32xf32> to vector<1x2x32xf32>
    %58 = vector.shape_cast %57 : vector<1x2x32xf32> to vector<2x32xf32>
    %cst_47 = arith.constant dense<0.000000e+00> : vector<2x32xf32>
    %59 = tpu.matmul %37, %5, %cst_47 {dimension_numbers = #tpu.dot_dimension_numbers<[1], [0], [0], [1], [0, 0, 1, 1], [], []>} : vector<2x32xf32>, vector<32x32xf32>, vector<2x32xf32> -> vector<2x32xf32>
    %60 = vector.broadcast %21 : vector<1x32xf32> to vector<2x32xf32>
    %61 = arith.addf %59, %60 : vector<2x32xf32>
    %62 = arith.mulf %47, %61 : vector<2x32xf32>
    %63 = arith.addf %58, %62 : vector<2x32xf32>
    %64 = math.tanh %63 : vector<2x32xf32>
    %cst_48 = arith.constant 1.000000e+00 : f32
    %65 = vector.broadcast %cst_48 : f32 to vector<2x32xf32>
    %66 = arith.subf %65, %56 : vector<2x32xf32>
    %67 = arith.mulf %66, %64 : vector<2x32xf32>
    %68 = arith.mulf %56, %37 : vector<2x32xf32>
    %69 = arith.addf %67, %68 : vector<2x32xf32>
    %cst_49 = arith.constant dense<0.000000e+00> : vector<2x32xf32>
    %70 = tpu.matmul %69, %7, %cst_49 {dimension_numbers = #tpu.dot_dimension_numbers<[1], [0], [0], [1], [0, 0, 1, 1], [], []>} : vector<2x32xf32>, vector<32x32xf32>, vector<2x32xf32> -> vector<2x32xf32>
    %cst_50 = arith.constant dense<0.000000e+00> : vector<2x32xf32>
    %71 = tpu.matmul %38, %13, %cst_50 {dimension_numbers = #tpu.dot_dimension_numbers<[1], [0], [0], [1], [0, 0, 1, 1], [], []>} : vector<2x32xf32>, vector<32x32xf32>, vector<2x32xf32> -> vector<2x32xf32>
    %72 = arith.addf %70, %71 : vector<2x32xf32>
    %73 = vector.broadcast %22 : vector<1x32xf32> to vector<2x32xf32>
    %74 = arith.addf %72, %73 : vector<2x32xf32>
    %75 = arith.negf %74 : vector<2x32xf32>
    %76 = math.exp %75 : vector<2x32xf32>
    %cst_51 = arith.constant 1.000000e+00 : f32
    %77 = vector.broadcast %cst_51 : f32 to vector<2x32xf32>
    %78 = arith.addf %77, %76 : vector<2x32xf32>
    %79 = arith.divf %77, %78 : vector<2x32xf32>
    %cst_52 = arith.constant dense<0.000000e+00> : vector<2x32xf32>
    %80 = tpu.matmul %69, %9, %cst_52 {dimension_numbers = #tpu.dot_dimension_numbers<[1], [0], [0], [1], [0, 0, 1, 1], [], []>} : vector<2x32xf32>, vector<32x32xf32>, vector<2x32xf32> -> vector<2x32xf32>
    %cst_53 = arith.constant dense<0.000000e+00> : vector<2x32xf32>
    %81 = tpu.matmul %38, %15, %cst_53 {dimension_numbers = #tpu.dot_dimension_numbers<[1], [0], [0], [1], [0, 0, 1, 1], [], []>} : vector<2x32xf32>, vector<32x32xf32>, vector<2x32xf32> -> vector<2x32xf32>
    %82 = arith.addf %80, %81 : vector<2x32xf32>
    %83 = vector.broadcast %23 : vector<1x32xf32> to vector<2x32xf32>
    %84 = arith.addf %82, %83 : vector<2x32xf32>
    %85 = arith.negf %84 : vector<2x32xf32>
    %86 = math.exp %85 : vector<2x32xf32>
    %cst_54 = arith.constant 1.000000e+00 : f32
    %87 = vector.broadcast %cst_54 : f32 to vector<2x32xf32>
    %88 = arith.addf %87, %86 : vector<2x32xf32>
    %89 = arith.divf %87, %88 : vector<2x32xf32>
    %cst_55 = arith.constant dense<0.000000e+00> : vector<2x32xf32>
    %90 = tpu.matmul %69, %11, %cst_55 {dimension_numbers = #tpu.dot_dimension_numbers<[1], [0], [0], [1], [0, 0, 1, 1], [], []>} : vector<2x32xf32>, vector<32x32xf32>, vector<2x32xf32> -> vector<2x32xf32>
    %91 = vector.broadcast %24 : vector<1x32xf32> to vector<2x32xf32>
    %92 = arith.addf %90, %91 : vector<2x32xf32>
    %cst_56 = arith.constant dense<0.000000e+00> : vector<2x32xf32>
    %93 = tpu.matmul %38, %17, %cst_56 {dimension_numbers = #tpu.dot_dimension_numbers<[1], [0], [0], [1], [0, 0, 1, 1], [], []>} : vector<2x32xf32>, vector<32x32xf32>, vector<2x32xf32> -> vector<2x32xf32>
    %94 = vector.broadcast %25 : vector<1x32xf32> to vector<2x32xf32>
    %95 = arith.addf %93, %94 : vector<2x32xf32>
    %96 = arith.mulf %79, %95 : vector<2x32xf32>
    %97 = arith.addf %92, %96 : vector<2x32xf32>
    %98 = math.tanh %97 : vector<2x32xf32>
    %cst_57 = arith.constant 1.000000e+00 : f32
    %99 = vector.broadcast %cst_57 : f32 to vector<2x32xf32>
    %100 = arith.subf %99, %89 : vector<2x32xf32>
    %101 = arith.mulf %100, %98 : vector<2x32xf32>
    %102 = arith.mulf %89, %38 : vector<2x32xf32>
    %103 = arith.addf %101, %102 : vector<2x32xf32>
    %c0_58 = arith.constant 0 : index
    %c0_59 = arith.constant 0 : index
    %c0_60 = arith.constant 0 : index
    %104 = vector.load %arg5[%c0_58, %c0_59, %c0_60] : memref<8x2x32xf32, #tpu.memory_space<vmem>>, vector<1x2x32xf32>
    %105 = vector.shape_cast %104 : vector<1x2x32xf32> to vector<2x32xf32>
    %106 = vector.shape_cast %103 : vector<2x32xf32> to vector<1x2x32xf32>
    tpu.vector_store %arg5[%c0_58, %c0_59, %c0_60], %106 {strides = array<i32>} : memref<8x2x32xf32, #tpu.memory_space<vmem>>, vector<1x2x32xf32>,
    %107 = vector.extract_strided_slice %34 {offsets = [1, 0, 0], sizes = [1, 2, 32], strides = [1, 1, 1]} : vector<8x2x32xf32> to vector<1x2x32xf32>
    %108 = vector.shape_cast %107 : vector<1x2x32xf32> to vector<2x32xf32>
    %cst_61 = arith.constant dense<0.000000e+00> : vector<2x32xf32>
    %109 = tpu.matmul %69, %1, %cst_61 {dimension_numbers = #tpu.dot_dimension_numbers<[1], [0], [0], [1], [0, 0, 1, 1], [], []>} : vector<2x32xf32>, vector<32x32xf32>, vector<2x32xf32> -> vector<2x32xf32>
    %110 = arith.addf %108, %109 : vector<2x32xf32>
    %111 = arith.negf %110 : vector<2x32xf32>
    %112 = math.exp %111 : vector<2x32xf32>
    %cst_62 = arith.constant 1.000000e+00 : f32
    %113 = vector.broadcast %cst_62 : f32 to vector<2x32xf32>
    %114 = arith.addf %113, %112 : vector<2x32xf32>
    %115 = arith.divf %113, %114 : vector<2x32xf32>
    %116 = vector.extract_strided_slice %35 {offsets = [1, 0, 0], sizes = [1, 2, 32], strides = [1, 1, 1]} : vector<8x2x32xf32> to vector<1x2x32xf32>
    %117 = vector.shape_cast %116 : vector<1x2x32xf32> to vector<2x32xf32>
    %cst_63 = arith.constant dense<0.000000e+00> : vector<2x32xf32>
    %118 = tpu.matmul %69, %3, %cst_63 {dimension_numbers = #tpu.dot_dimension_numbers<[1], [0], [0], [1], [0, 0, 1, 1], [], []>} : vector<2x32xf32>, vector<32x32xf32>, vector<2x32xf32> -> vector<2x32xf32>
    %119 = arith.addf %117, %118 : vector<2x32xf32>
    %120 = arith.negf %119 : vector<2x32xf32>
    %121 = math.exp %120 : vector<2x32xf32>
    %cst_64 = arith.constant 1.000000e+00 : f32
    %122 = vector.broadcast %cst_64 : f32 to vector<2x32xf32>
    %123 = arith.addf %122, %121 : vector<2x32xf32>
    %124 = arith.divf %122, %123 : vector<2x32xf32>
    %125 = vector.extract_strided_slice %36 {offsets = [1, 0, 0], sizes = [1, 2, 32], strides = [1, 1, 1]} : vector<8x2x32xf32> to vector<1x2x32xf32>
    %126 = vector.shape_cast %125 : vector<1x2x32xf32> to vector<2x32xf32>
    %cst_65 = arith.constant dense<0.000000e+00> : vector<2x32xf32>
    %127 = tpu.matmul %69, %5, %cst_65 {dimension_numbers = #tpu.dot_dimension_numbers<[1], [0], [0], [1], [0, 0, 1, 1], [], []>} : vector<2x32xf32>, vector<32x32xf32>, vector<2x32xf32> -> vector<2x32xf32>
    %128 = vector.broadcast %21 : vector<1x32xf32> to vector<2x32xf32>
    %129 = arith.addf %127, %128 : vector<2x32xf32>
    %130 = arith.mulf %115, %129 : vector<2x32xf32>
    %131 = arith.addf %126, %130 : vector<2x32xf32>
    %132 = math.tanh %131 : vector<2x32xf32>
    %cst_66 = arith.constant 1.000000e+00 : f32
    %133 = vector.broadcast %cst_66 : f32 to vector<2x32xf32>
    %134 = arith.subf %133, %124 : vector<2x32xf32>
    %135 = arith.mulf %134, %132 : vector<2x32xf32>
    %136 = arith.mulf %124, %69 : vector<2x32xf32>
    %137 = arith.addf %135, %136 : vector<2x32xf32>
    %cst_67 = arith.constant dense<0.000000e+00> : vector<2x32xf32>
    %138 = tpu.matmul %137, %7, %cst_67 {dimension_numbers = #tpu.dot_dimension_numbers<[1], [0], [0], [1], [0, 0, 1, 1], [], []>} : vector<2x32xf32>, vector<32x32xf32>, vector<2x32xf32> -> vector<2x32xf32>
    %cst_68 = arith.constant dense<0.000000e+00> : vector<2x32xf32>
    %139 = tpu.matmul %103, %13, %cst_68 {dimension_numbers = #tpu.dot_dimension_numbers<[1], [0], [0], [1], [0, 0, 1, 1], [], []>} : vector<2x32xf32>, vector<32x32xf32>, vector<2x32xf32> -> vector<2x32xf32>
    %140 = arith.addf %138, %139 : vector<2x32xf32>
    %141 = vector.broadcast %22 : vector<1x32xf32> to vector<2x32xf32>
    %142 = arith.addf %140, %141 : vector<2x32xf32>
    %143 = arith.negf %142 : vector<2x32xf32>
    %144 = math.exp %143 : vector<2x32xf32>
    %cst_69 = arith.constant 1.000000e+00 : f32
    %145 = vector.broadcast %cst_69 : f32 to vector<2x32xf32>
    %146 = arith.addf %145, %144 : vector<2x32xf32>
    %147 = arith.divf %145, %146 : vector<2x32xf32>
    %cst_70 = arith.constant dense<0.000000e+00> : vector<2x32xf32>
    %148 = tpu.matmul %137, %9, %cst_70 {dimension_numbers = #tpu.dot_dimension_numbers<[1], [0], [0], [1], [0, 0, 1, 1], [], []>} : vector<2x32xf32>, vector<32x32xf32>, vector<2x32xf32> -> vector<2x32xf32>
    %cst_71 = arith.constant dense<0.000000e+00> : vector<2x32xf32>
    %149 = tpu.matmul %103, %15, %cst_71 {dimension_numbers = #tpu.dot_dimension_numbers<[1], [0], [0], [1], [0, 0, 1, 1], [], []>} : vector<2x32xf32>, vector<32x32xf32>, vector<2x32xf32> -> vector<2x32xf32>
    %150 = arith.addf %148, %149 : vector<2x32xf32>
    %151 = vector.broadcast %23 : vector<1x32xf32> to vector<2x32xf32>
    %152 = arith.addf %150, %151 : vector<2x32xf32>
    %153 = arith.negf %152 : vector<2x32xf32>
    %154 = math.exp %153 : vector<2x32xf32>
    %cst_72 = arith.constant 1.000000e+00 : f32
    %155 = vector.broadcast %cst_72 : f32 to vector<2x32xf32>
    %156 = arith.addf %155, %154 : vector<2x32xf32>
    %157 = arith.divf %155, %156 : vector<2x32xf32>
    %cst_73 = arith.constant dense<0.000000e+00> : vector<2x32xf32>
    %158 = tpu.matmul %137, %11, %cst_73 {dimension_numbers = #tpu.dot_dimension_numbers<[1], [0], [0], [1], [0, 0, 1, 1], [], []>} : vector<2x32xf32>, vector<32x32xf32>, vector<2x32xf32> -> vector<2x32xf32>
    %159 = vector.broadcast %24 : vector<1x32xf32> to vector<2x32xf32>
    %160 = arith.addf %158, %159 : vector<2x32xf32>
    %cst_74 = arith.constant dense<0.000000e+00> : vector<2x32xf32>
    %161 = tpu.matmul %103, %17, %cst_74 {dimension_numbers = #tpu.dot_dimension_numbers<[1], [0], [0], [1], [0, 0, 1, 1], [], []>} : vector<2x32xf32>, vector<32x32xf32>, vector<2x32xf32> -> vector<2x32xf32>
    %162 = vector.broadcast %25 : vector<1x32xf32> to vector<2x32xf32>
    %163 = arith.addf %161, %162 : vector<2x32xf32>
    %164 = arith.mulf %147, %163 : vector<2x32xf32>
    %165 = arith.addf %160, %164 : vector<2x32xf32>
    %166 = math.tanh %165 : vector<2x32xf32>
    %cst_75 = arith.constant 1.000000e+00 : f32
    %167 = vector.broadcast %cst_75 : f32 to vector<2x32xf32>
    %168 = arith.subf %167, %157 : vector<2x32xf32>
    %169 = arith.mulf %168, %166 : vector<2x32xf32>
    %170 = arith.mulf %157, %103 : vector<2x32xf32>
    %171 = arith.addf %169, %170 : vector<2x32xf32>
    %c1_76 = arith.constant 1 : index
    %c0_77 = arith.constant 0 : index
    %c0_78 = arith.constant 0 : index
    %172 = vector.load %arg5[%c1_76, %c0_77, %c0_78] : memref<8x2x32xf32, #tpu.memory_space<vmem>>, vector<1x2x32xf32>
    %173 = vector.shape_cast %172 : vector<1x2x32xf32> to vector<2x32xf32>
    %174 = vector.shape_cast %171 : vector<2x32xf32> to vector<1x2x32xf32>
    tpu.vector_store %arg5[%c1_76, %c0_77, %c0_78], %174 {strides = array<i32>} : memref<8x2x32xf32, #tpu.memory_space<vmem>>, vector<1x2x32xf32>,
    %175 = vector.extract_strided_slice %34 {offsets = [2, 0, 0], sizes = [1, 2, 32], strides = [1, 1, 1]} : vector<8x2x32xf32> to vector<1x2x32xf32>
    %176 = vector.shape_cast %175 : vector<1x2x32xf32> to vector<2x32xf32>
    %cst_79 = arith.constant dense<0.000000e+00> : vector<2x32xf32>
    %177 = tpu.matmul %137, %1, %cst_79 {dimension_numbers = #tpu.dot_dimension_numbers<[1], [0], [0], [1], [0, 0, 1, 1], [], []>} : vector<2x32xf32>, vector<32x32xf32>, vector<2x32xf32> -> vector<2x32xf32>
    %178 = arith.addf %176, %177 : vector<2x32xf32>
    %179 = arith.negf %178 : vector<2x32xf32>
    %180 = math.exp %179 : vector<2x32xf32>
    %cst_80 = arith.constant 1.000000e+00 : f32
    %181 = vector.broadcast %cst_80 : f32 to vector<2x32xf32>
    %182 = arith.addf %181, %180 : vector<2x32xf32>
    %183 = arith.divf %181, %182 : vector<2x32xf32>
    %184 = vector.extract_strided_slice %35 {offsets = [2, 0, 0], sizes = [1, 2, 32], strides = [1, 1, 1]} : vector<8x2x32xf32> to vector<1x2x32xf32>
    %185 = vector.shape_cast %184 : vector<1x2x32xf32> to vector<2x32xf32>
    %cst_81 = arith.constant dense<0.000000e+00> : vector<2x32xf32>
    %186 = tpu.matmul %137, %3, %cst_81 {dimension_numbers = #tpu.dot_dimension_numbers<[1], [0], [0], [1], [0, 0, 1, 1], [], []>} : vector<2x32xf32>, vector<32x32xf32>, vector<2x32xf32> -> vector<2x32xf32>
    %187 = arith.addf %185, %186 : vector<2x32xf32>
    %188 = arith.negf %187 : vector<2x32xf32>
    %189 = math.exp %188 : vector<2x32xf32>
    %cst_82 = arith.constant 1.000000e+00 : f32
    %190 = vector.broadcast %cst_82 : f32 to vector<2x32xf32>
    %191 = arith.addf %190, %189 : vector<2x32xf32>
    %192 = arith.divf %190, %191 : vector<2x32xf32>
    %193 = vector.extract_strided_slice %36 {offsets = [2, 0, 0], sizes = [1, 2, 32], strides = [1, 1, 1]} : vector<8x2x32xf32> to vector<1x2x32xf32>
    %194 = vector.shape_cast %193 : vector<1x2x32xf32> to vector<2x32xf32>
    %cst_83 = arith.constant dense<0.000000e+00> : vector<2x32xf32>
    %195 = tpu.matmul %137, %5, %cst_83 {dimension_numbers = #tpu.dot_dimension_numbers<[1], [0], [0], [1], [0, 0, 1, 1], [], []>} : vector<2x32xf32>, vector<32x32xf32>, vector<2x32xf32> -> vector<2x32xf32>
    %196 = vector.broadcast %21 : vector<1x32xf32> to vector<2x32xf32>
    %197 = arith.addf %195, %196 : vector<2x32xf32>
    %198 = arith.mulf %183, %197 : vector<2x32xf32>
    %199 = arith.addf %194, %198 : vector<2x32xf32>
    %200 = math.tanh %199 : vector<2x32xf32>
    %cst_84 = arith.constant 1.000000e+00 : f32
    %201 = vector.broadcast %cst_84 : f32 to vector<2x32xf32>
    %202 = arith.subf %201, %192 : vector<2x32xf32>
    %203 = arith.mulf %202, %200 : vector<2x32xf32>
    %204 = arith.mulf %192, %137 : vector<2x32xf32>
    %205 = arith.addf %203, %204 : vector<2x32xf32>
    %cst_85 = arith.constant dense<0.000000e+00> : vector<2x32xf32>
    %206 = tpu.matmul %205, %7, %cst_85 {dimension_numbers = #tpu.dot_dimension_numbers<[1], [0], [0], [1], [0, 0, 1, 1], [], []>} : vector<2x32xf32>, vector<32x32xf32>, vector<2x32xf32> -> vector<2x32xf32>
    %cst_86 = arith.constant dense<0.000000e+00> : vector<2x32xf32>
    %207 = tpu.matmul %171, %13, %cst_86 {dimension_numbers = #tpu.dot_dimension_numbers<[1], [0], [0], [1], [0, 0, 1, 1], [], []>} : vector<2x32xf32>, vector<32x32xf32>, vector<2x32xf32> -> vector<2x32xf32>
    %208 = arith.addf %206, %207 : vector<2x32xf32>
    %209 = vector.broadcast %22 : vector<1x32xf32> to vector<2x32xf32>
    %210 = arith.addf %208, %209 : vector<2x32xf32>
    %211 = arith.negf %210 : vector<2x32xf32>
    %212 = math.exp %211 : vector<2x32xf32>
    %cst_87 = arith.constant 1.000000e+00 : f32
    %213 = vector.broadcast %cst_87 : f32 to vector<2x32xf32>
    %214 = arith.addf %213, %212 : vector<2x32xf32>
    %215 = arith.divf %213, %214 : vector<2x32xf32>
    %cst_88 = arith.constant dense<0.000000e+00> : vector<2x32xf32>
    %216 = tpu.matmul %205, %9, %cst_88 {dimension_numbers = #tpu.dot_dimension_numbers<[1], [0], [0], [1], [0, 0, 1, 1], [], []>} : vector<2x32xf32>, vector<32x32xf32>, vector<2x32xf32> -> vector<2x32xf32>
    %cst_89 = arith.constant dense<0.000000e+00> : vector<2x32xf32>
    %217 = tpu.matmul %171, %15, %cst_89 {dimension_numbers = #tpu.dot_dimension_numbers<[1], [0], [0], [1], [0, 0, 1, 1], [], []>} : vector<2x32xf32>, vector<32x32xf32>, vector<2x32xf32> -> vector<2x32xf32>
    %218 = arith.addf %216, %217 : vector<2x32xf32>
    %219 = vector.broadcast %23 : vector<1x32xf32> to vector<2x32xf32>
    %220 = arith.addf %218, %219 : vector<2x32xf32>
    %221 = arith.negf %220 : vector<2x32xf32>
    %222 = math.exp %221 : vector<2x32xf32>
    %cst_90 = arith.constant 1.000000e+00 : f32
    %223 = vector.broadcast %cst_90 : f32 to vector<2x32xf32>
    %224 = arith.addf %223, %222 : vector<2x32xf32>
    %225 = arith.divf %223, %224 : vector<2x32xf32>
    %cst_91 = arith.constant dense<0.000000e+00> : vector<2x32xf32>
    %226 = tpu.matmul %205, %11, %cst_91 {dimension_numbers = #tpu.dot_dimension_numbers<[1], [0], [0], [1], [0, 0, 1, 1], [], []>} : vector<2x32xf32>, vector<32x32xf32>, vector<2x32xf32> -> vector<2x32xf32>
    %227 = vector.broadcast %24 : vector<1x32xf32> to vector<2x32xf32>
    %228 = arith.addf %226, %227 : vector<2x32xf32>
    %cst_92 = arith.constant dense<0.000000e+00> : vector<2x32xf32>
    %229 = tpu.matmul %171, %17, %cst_92 {dimension_numbers = #tpu.dot_dimension_numbers<[1], [0], [0], [1], [0, 0, 1, 1], [], []>} : vector<2x32xf32>, vector<32x32xf32>, vector<2x32xf32> -> vector<2x32xf32>
    %230 = vector.broadcast %25 : vector<1x32xf32> to vector<2x32xf32>
    %231 = arith.addf %229, %230 : vector<2x32xf32>
    %232 = arith.mulf %215, %231 : vector<2x32xf32>
    %233 = arith.addf %228, %232 : vector<2x32xf32>
    %234 = math.tanh %233 : vector<2x32xf32>
    %cst_93 = arith.constant 1.000000e+00 : f32
    %235 = vector.broadcast %cst_93 : f32 to vector<2x32xf32>
    %236 = arith.subf %235, %225 : vector<2x32xf32>
    %237 = arith.mulf %236, %234 : vector<2x32xf32>
    %238 = arith.mulf %225, %171 : vector<2x32xf32>
    %239 = arith.addf %237, %238 : vector<2x32xf32>
    %c2_94 = arith.constant 2 : index
    %c0_95 = arith.constant 0 : index
    %c0_96 = arith.constant 0 : index
    %240 = vector.load %arg5[%c2_94, %c0_95, %c0_96] : memref<8x2x32xf32, #tpu.memory_space<vmem>>, vector<1x2x32xf32>
    %241 = vector.shape_cast %240 : vector<1x2x32xf32> to vector<2x32xf32>
    %242 = vector.shape_cast %239 : vector<2x32xf32> to vector<1x2x32xf32>
    tpu.vector_store %arg5[%c2_94, %c0_95, %c0_96], %242 {strides = array<i32>} : memref<8x2x32xf32, #tpu.memory_space<vmem>>, vector<1x2x32xf32>,
    %243 = vector.extract_strided_slice %34 {offsets = [3, 0, 0], sizes = [1, 2, 32], strides = [1, 1, 1]} : vector<8x2x32xf32> to vector<1x2x32xf32>
    %244 = vector.shape_cast %243 : vector<1x2x32xf32> to vector<2x32xf32>
    %cst_97 = arith.constant dense<0.000000e+00> : vector<2x32xf32>
    %245 = tpu.matmul %205, %1, %cst_97 {dimension_numbers = #tpu.dot_dimension_numbers<[1], [0], [0], [1], [0, 0, 1, 1], [], []>} : vector<2x32xf32>, vector<32x32xf32>, vector<2x32xf32> -> vector<2x32xf32>
    %246 = arith.addf %244, %245 : vector<2x32xf32>
    %247 = arith.negf %246 : vector<2x32xf32>
    %248 = math.exp %247 : vector<2x32xf32>
    %cst_98 = arith.constant 1.000000e+00 : f32
    %249 = vector.broadcast %cst_98 : f32 to vector<2x32xf32>
    %250 = arith.addf %249, %248 : vector<2x32xf32>
    %251 = arith.divf %249, %250 : vector<2x32xf32>
    %252 = vector.extract_strided_slice %35 {offsets = [3, 0, 0], sizes = [1, 2, 32], strides = [1, 1, 1]} : vector<8x2x32xf32> to vector<1x2x32xf32>
    %253 = vector.shape_cast %252 : vector<1x2x32xf32> to vector<2x32xf32>
    %cst_99 = arith.constant dense<0.000000e+00> : vector<2x32xf32>
    %254 = tpu.matmul %205, %3, %cst_99 {dimension_numbers = #tpu.dot_dimension_numbers<[1], [0], [0], [1], [0, 0, 1, 1], [], []>} : vector<2x32xf32>, vector<32x32xf32>, vector<2x32xf32> -> vector<2x32xf32>
    %255 = arith.addf %253, %254 : vector<2x32xf32>
    %256 = arith.negf %255 : vector<2x32xf32>
    %257 = math.exp %256 : vector<2x32xf32>
    %cst_100 = arith.constant 1.000000e+00 : f32
    %258 = vector.broadcast %cst_100 : f32 to vector<2x32xf32>
    %259 = arith.addf %258, %257 : vector<2x32xf32>
    %260 = arith.divf %258, %259 : vector<2x32xf32>
    %261 = vector.extract_strided_slice %36 {offsets = [3, 0, 0], sizes = [1, 2, 32], strides = [1, 1, 1]} : vector<8x2x32xf32> to vector<1x2x32xf32>
    %262 = vector.shape_cast %261 : vector<1x2x32xf32> to vector<2x32xf32>
    %cst_101 = arith.constant dense<0.000000e+00> : vector<2x32xf32>
    %263 = tpu.matmul %205, %5, %cst_101 {dimension_numbers = #tpu.dot_dimension_numbers<[1], [0], [0], [1], [0, 0, 1, 1], [], []>} : vector<2x32xf32>, vector<32x32xf32>, vector<2x32xf32> -> vector<2x32xf32>
    %264 = vector.broadcast %21 : vector<1x32xf32> to vector<2x32xf32>
    %265 = arith.addf %263, %264 : vector<2x32xf32>
    %266 = arith.mulf %251, %265 : vector<2x32xf32>
    %267 = arith.addf %262, %266 : vector<2x32xf32>
    %268 = math.tanh %267 : vector<2x32xf32>
    %cst_102 = arith.constant 1.000000e+00 : f32
    %269 = vector.broadcast %cst_102 : f32 to vector<2x32xf32>
    %270 = arith.subf %269, %260 : vector<2x32xf32>
    %271 = arith.mulf %270, %268 : vector<2x32xf32>
    %272 = arith.mulf %260, %205 : vector<2x32xf32>
    %273 = arith.addf %271, %272 : vector<2x32xf32>
    %cst_103 = arith.constant dense<0.000000e+00> : vector<2x32xf32>
    %274 = tpu.matmul %273, %7, %cst_103 {dimension_numbers = #tpu.dot_dimension_numbers<[1], [0], [0], [1], [0, 0, 1, 1], [], []>} : vector<2x32xf32>, vector<32x32xf32>, vector<2x32xf32> -> vector<2x32xf32>
    %cst_104 = arith.constant dense<0.000000e+00> : vector<2x32xf32>
    %275 = tpu.matmul %239, %13, %cst_104 {dimension_numbers = #tpu.dot_dimension_numbers<[1], [0], [0], [1], [0, 0, 1, 1], [], []>} : vector<2x32xf32>, vector<32x32xf32>, vector<2x32xf32> -> vector<2x32xf32>
    %276 = arith.addf %274, %275 : vector<2x32xf32>
    %277 = vector.broadcast %22 : vector<1x32xf32> to vector<2x32xf32>
    %278 = arith.addf %276, %277 : vector<2x32xf32>
    %279 = arith.negf %278 : vector<2x32xf32>
    %280 = math.exp %279 : vector<2x32xf32>
    %cst_105 = arith.constant 1.000000e+00 : f32
    %281 = vector.broadcast %cst_105 : f32 to vector<2x32xf32>
    %282 = arith.addf %281, %280 : vector<2x32xf32>
    %283 = arith.divf %281, %282 : vector<2x32xf32>
    %cst_106 = arith.constant dense<0.000000e+00> : vector<2x32xf32>
    %284 = tpu.matmul %273, %9, %cst_106 {dimension_numbers = #tpu.dot_dimension_numbers<[1], [0], [0], [1], [0, 0, 1, 1], [], []>} : vector<2x32xf32>, vector<32x32xf32>, vector<2x32xf32> -> vector<2x32xf32>
    %cst_107 = arith.constant dense<0.000000e+00> : vector<2x32xf32>
    %285 = tpu.matmul %239, %15, %cst_107 {dimension_numbers = #tpu.dot_dimension_numbers<[1], [0], [0], [1], [0, 0, 1, 1], [], []>} : vector<2x32xf32>, vector<32x32xf32>, vector<2x32xf32> -> vector<2x32xf32>
    %286 = arith.addf %284, %285 : vector<2x32xf32>
    %287 = vector.broadcast %23 : vector<1x32xf32> to vector<2x32xf32>
    %288 = arith.addf %286, %287 : vector<2x32xf32>
    %289 = arith.negf %288 : vector<2x32xf32>
    %290 = math.exp %289 : vector<2x32xf32>
    %cst_108 = arith.constant 1.000000e+00 : f32
    %291 = vector.broadcast %cst_108 : f32 to vector<2x32xf32>
    %292 = arith.addf %291, %290 : vector<2x32xf32>
    %293 = arith.divf %291, %292 : vector<2x32xf32>
    %cst_109 = arith.constant dense<0.000000e+00> : vector<2x32xf32>
    %294 = tpu.matmul %273, %11, %cst_109 {dimension_numbers = #tpu.dot_dimension_numbers<[1], [0], [0], [1], [0, 0, 1, 1], [], []>} : vector<2x32xf32>, vector<32x32xf32>, vector<2x32xf32> -> vector<2x32xf32>
    %295 = vector.broadcast %24 : vector<1x32xf32> to vector<2x32xf32>
    %296 = arith.addf %294, %295 : vector<2x32xf32>
    %cst_110 = arith.constant dense<0.000000e+00> : vector<2x32xf32>
    %297 = tpu.matmul %239, %17, %cst_110 {dimension_numbers = #tpu.dot_dimension_numbers<[1], [0], [0], [1], [0, 0, 1, 1], [], []>} : vector<2x32xf32>, vector<32x32xf32>, vector<2x32xf32> -> vector<2x32xf32>
    %298 = vector.broadcast %25 : vector<1x32xf32> to vector<2x32xf32>
    %299 = arith.addf %297, %298 : vector<2x32xf32>
    %300 = arith.mulf %283, %299 : vector<2x32xf32>
    %301 = arith.addf %296, %300 : vector<2x32xf32>
    %302 = math.tanh %301 : vector<2x32xf32>
    %cst_111 = arith.constant 1.000000e+00 : f32
    %303 = vector.broadcast %cst_111 : f32 to vector<2x32xf32>
    %304 = arith.subf %303, %293 : vector<2x32xf32>
    %305 = arith.mulf %304, %302 : vector<2x32xf32>
    %306 = arith.mulf %293, %239 : vector<2x32xf32>
    %307 = arith.addf %305, %306 : vector<2x32xf32>
    %c3_112 = arith.constant 3 : index
    %c0_113 = arith.constant 0 : index
    %c0_114 = arith.constant 0 : index
    %308 = vector.load %arg5[%c3_112, %c0_113, %c0_114] : memref<8x2x32xf32, #tpu.memory_space<vmem>>, vector<1x2x32xf32>
    %309 = vector.shape_cast %308 : vector<1x2x32xf32> to vector<2x32xf32>
    %310 = vector.shape_cast %307 : vector<2x32xf32> to vector<1x2x32xf32>
    tpu.vector_store %arg5[%c3_112, %c0_113, %c0_114], %310 {strides = array<i32>} : memref<8x2x32xf32, #tpu.memory_space<vmem>>, vector<1x2x32xf32>,
    %311 = vector.extract_strided_slice %34 {offsets = [4, 0, 0], sizes = [1, 2, 32], strides = [1, 1, 1]} : vector<8x2x32xf32> to vector<1x2x32xf32>
    %312 = vector.shape_cast %311 : vector<1x2x32xf32> to vector<2x32xf32>
    %cst_115 = arith.constant dense<0.000000e+00> : vector<2x32xf32>
    %313 = tpu.matmul %273, %1, %cst_115 {dimension_numbers = #tpu.dot_dimension_numbers<[1], [0], [0], [1], [0, 0, 1, 1], [], []>} : vector<2x32xf32>, vector<32x32xf32>, vector<2x32xf32> -> vector<2x32xf32>
    %314 = arith.addf %312, %313 : vector<2x32xf32>
    %315 = arith.negf %314 : vector<2x32xf32>
    %316 = math.exp %315 : vector<2x32xf32>
    %cst_116 = arith.constant 1.000000e+00 : f32
    %317 = vector.broadcast %cst_116 : f32 to vector<2x32xf32>
    %318 = arith.addf %317, %316 : vector<2x32xf32>
    %319 = arith.divf %317, %318 : vector<2x32xf32>
    %320 = vector.extract_strided_slice %35 {offsets = [4, 0, 0], sizes = [1, 2, 32], strides = [1, 1, 1]} : vector<8x2x32xf32> to vector<1x2x32xf32>
    %321 = vector.shape_cast %320 : vector<1x2x32xf32> to vector<2x32xf32>
    %cst_117 = arith.constant dense<0.000000e+00> : vector<2x32xf32>
    %322 = tpu.matmul %273, %3, %cst_117 {dimension_numbers = #tpu.dot_dimension_numbers<[1], [0], [0], [1], [0, 0, 1, 1], [], []>} : vector<2x32xf32>, vector<32x32xf32>, vector<2x32xf32> -> vector<2x32xf32>
    %323 = arith.addf %321, %322 : vector<2x32xf32>
    %324 = arith.negf %323 : vector<2x32xf32>
    %325 = math.exp %324 : vector<2x32xf32>
    %cst_118 = arith.constant 1.000000e+00 : f32
    %326 = vector.broadcast %cst_118 : f32 to vector<2x32xf32>
    %327 = arith.addf %326, %325 : vector<2x32xf32>
    %328 = arith.divf %326, %327 : vector<2x32xf32>
    %329 = vector.extract_strided_slice %36 {offsets = [4, 0, 0], sizes = [1, 2, 32], strides = [1, 1, 1]} : vector<8x2x32xf32> to vector<1x2x32xf32>
    %330 = vector.shape_cast %329 : vector<1x2x32xf32> to vector<2x32xf32>
    %cst_119 = arith.constant dense<0.000000e+00> : vector<2x32xf32>
    %331 = tpu.matmul %273, %5, %cst_119 {dimension_numbers = #tpu.dot_dimension_numbers<[1], [0], [0], [1], [0, 0, 1, 1], [], []>} : vector<2x32xf32>, vector<32x32xf32>, vector<2x32xf32> -> vector<2x32xf32>
    %332 = vector.broadcast %21 : vector<1x32xf32> to vector<2x32xf32>
    %333 = arith.addf %331, %332 : vector<2x32xf32>
    %334 = arith.mulf %319, %333 : vector<2x32xf32>
    %335 = arith.addf %330, %334 : vector<2x32xf32>
    %336 = math.tanh %335 : vector<2x32xf32>
    %cst_120 = arith.constant 1.000000e+00 : f32
    %337 = vector.broadcast %cst_120 : f32 to vector<2x32xf32>
    %338 = arith.subf %337, %328 : vector<2x32xf32>
    %339 = arith.mulf %338, %336 : vector<2x32xf32>
    %340 = arith.mulf %328, %273 : vector<2x32xf32>
    %341 = arith.addf %339, %340 : vector<2x32xf32>
    %cst_121 = arith.constant dense<0.000000e+00> : vector<2x32xf32>
    %342 = tpu.matmul %341, %7, %cst_121 {dimension_numbers = #tpu.dot_dimension_numbers<[1], [0], [0], [1], [0, 0, 1, 1], [], []>} : vector<2x32xf32>, vector<32x32xf32>, vector<2x32xf32> -> vector<2x32xf32>
    %cst_122 = arith.constant dense<0.000000e+00> : vector<2x32xf32>
    %343 = tpu.matmul %307, %13, %cst_122 {dimension_numbers = #tpu.dot_dimension_numbers<[1], [0], [0], [1], [0, 0, 1, 1], [], []>} : vector<2x32xf32>, vector<32x32xf32>, vector<2x32xf32> -> vector<2x32xf32>
    %344 = arith.addf %342, %343 : vector<2x32xf32>
    %345 = vector.broadcast %22 : vector<1x32xf32> to vector<2x32xf32>
    %346 = arith.addf %344, %345 : vector<2x32xf32>
    %347 = arith.negf %346 : vector<2x32xf32>
    %348 = math.exp %347 : vector<2x32xf32>
    %cst_123 = arith.constant 1.000000e+00 : f32
    %349 = vector.broadcast %cst_123 : f32 to vector<2x32xf32>
    %350 = arith.addf %349, %348 : vector<2x32xf32>
    %351 = arith.divf %349, %350 : vector<2x32xf32>
    %cst_124 = arith.constant dense<0.000000e+00> : vector<2x32xf32>
    %352 = tpu.matmul %341, %9, %cst_124 {dimension_numbers = #tpu.dot_dimension_numbers<[1], [0], [0], [1], [0, 0, 1, 1], [], []>} : vector<2x32xf32>, vector<32x32xf32>, vector<2x32xf32> -> vector<2x32xf32>
    %cst_125 = arith.constant dense<0.000000e+00> : vector<2x32xf32>
    %353 = tpu.matmul %307, %15, %cst_125 {dimension_numbers = #tpu.dot_dimension_numbers<[1], [0], [0], [1], [0, 0, 1, 1], [], []>} : vector<2x32xf32>, vector<32x32xf32>, vector<2x32xf32> -> vector<2x32xf32>
    %354 = arith.addf %352, %353 : vector<2x32xf32>
    %355 = vector.broadcast %23 : vector<1x32xf32> to vector<2x32xf32>
    %356 = arith.addf %354, %355 : vector<2x32xf32>
    %357 = arith.negf %356 : vector<2x32xf32>
    %358 = math.exp %357 : vector<2x32xf32>
    %cst_126 = arith.constant 1.000000e+00 : f32
    %359 = vector.broadcast %cst_126 : f32 to vector<2x32xf32>
    %360 = arith.addf %359, %358 : vector<2x32xf32>
    %361 = arith.divf %359, %360 : vector<2x32xf32>
    %cst_127 = arith.constant dense<0.000000e+00> : vector<2x32xf32>
    %362 = tpu.matmul %341, %11, %cst_127 {dimension_numbers = #tpu.dot_dimension_numbers<[1], [0], [0], [1], [0, 0, 1, 1], [], []>} : vector<2x32xf32>, vector<32x32xf32>, vector<2x32xf32> -> vector<2x32xf32>
    %363 = vector.broadcast %24 : vector<1x32xf32> to vector<2x32xf32>
    %364 = arith.addf %362, %363 : vector<2x32xf32>
    %cst_128 = arith.constant dense<0.000000e+00> : vector<2x32xf32>
    %365 = tpu.matmul %307, %17, %cst_128 {dimension_numbers = #tpu.dot_dimension_numbers<[1], [0], [0], [1], [0, 0, 1, 1], [], []>} : vector<2x32xf32>, vector<32x32xf32>, vector<2x32xf32> -> vector<2x32xf32>
    %366 = vector.broadcast %25 : vector<1x32xf32> to vector<2x32xf32>
    %367 = arith.addf %365, %366 : vector<2x32xf32>
    %368 = arith.mulf %351, %367 : vector<2x32xf32>
    %369 = arith.addf %364, %368 : vector<2x32xf32>
    %370 = math.tanh %369 : vector<2x32xf32>
    %cst_129 = arith.constant 1.000000e+00 : f32
    %371 = vector.broadcast %cst_129 : f32 to vector<2x32xf32>
    %372 = arith.subf %371, %361 : vector<2x32xf32>
    %373 = arith.mulf %372, %370 : vector<2x32xf32>
    %374 = arith.mulf %361, %307 : vector<2x32xf32>
    %375 = arith.addf %373, %374 : vector<2x32xf32>
    %c4_130 = arith.constant 4 : index
    %c0_131 = arith.constant 0 : index
    %c0_132 = arith.constant 0 : index
    %376 = vector.load %arg5[%c4_130, %c0_131, %c0_132] : memref<8x2x32xf32, #tpu.memory_space<vmem>>, vector<1x2x32xf32>
    %377 = vector.shape_cast %376 : vector<1x2x32xf32> to vector<2x32xf32>
    %378 = vector.shape_cast %375 : vector<2x32xf32> to vector<1x2x32xf32>
    tpu.vector_store %arg5[%c4_130, %c0_131, %c0_132], %378 {strides = array<i32>} : memref<8x2x32xf32, #tpu.memory_space<vmem>>, vector<1x2x32xf32>,
    %379 = vector.extract_strided_slice %34 {offsets = [5, 0, 0], sizes = [1, 2, 32], strides = [1, 1, 1]} : vector<8x2x32xf32> to vector<1x2x32xf32>
    %380 = vector.shape_cast %379 : vector<1x2x32xf32> to vector<2x32xf32>
    %cst_133 = arith.constant dense<0.000000e+00> : vector<2x32xf32>
    %381 = tpu.matmul %341, %1, %cst_133 {dimension_numbers = #tpu.dot_dimension_numbers<[1], [0], [0], [1], [0, 0, 1, 1], [], []>} : vector<2x32xf32>, vector<32x32xf32>, vector<2x32xf32> -> vector<2x32xf32>
    %382 = arith.addf %380, %381 : vector<2x32xf32>
    %383 = arith.negf %382 : vector<2x32xf32>
    %384 = math.exp %383 : vector<2x32xf32>
    %cst_134 = arith.constant 1.000000e+00 : f32
    %385 = vector.broadcast %cst_134 : f32 to vector<2x32xf32>
    %386 = arith.addf %385, %384 : vector<2x32xf32>
    %387 = arith.divf %385, %386 : vector<2x32xf32>
    %388 = vector.extract_strided_slice %35 {offsets = [5, 0, 0], sizes = [1, 2, 32], strides = [1, 1, 1]} : vector<8x2x32xf32> to vector<1x2x32xf32>
    %389 = vector.shape_cast %388 : vector<1x2x32xf32> to vector<2x32xf32>
    %cst_135 = arith.constant dense<0.000000e+00> : vector<2x32xf32>
    %390 = tpu.matmul %341, %3, %cst_135 {dimension_numbers = #tpu.dot_dimension_numbers<[1], [0], [0], [1], [0, 0, 1, 1], [], []>} : vector<2x32xf32>, vector<32x32xf32>, vector<2x32xf32> -> vector<2x32xf32>
    %391 = arith.addf %389, %390 : vector<2x32xf32>
    %392 = arith.negf %391 : vector<2x32xf32>
    %393 = math.exp %392 : vector<2x32xf32>
    %cst_136 = arith.constant 1.000000e+00 : f32
    %394 = vector.broadcast %cst_136 : f32 to vector<2x32xf32>
    %395 = arith.addf %394, %393 : vector<2x32xf32>
    %396 = arith.divf %394, %395 : vector<2x32xf32>
    %397 = vector.extract_strided_slice %36 {offsets = [5, 0, 0], sizes = [1, 2, 32], strides = [1, 1, 1]} : vector<8x2x32xf32> to vector<1x2x32xf32>
    %398 = vector.shape_cast %397 : vector<1x2x32xf32> to vector<2x32xf32>
    %cst_137 = arith.constant dense<0.000000e+00> : vector<2x32xf32>
    %399 = tpu.matmul %341, %5, %cst_137 {dimension_numbers = #tpu.dot_dimension_numbers<[1], [0], [0], [1], [0, 0, 1, 1], [], []>} : vector<2x32xf32>, vector<32x32xf32>, vector<2x32xf32> -> vector<2x32xf32>
    %400 = vector.broadcast %21 : vector<1x32xf32> to vector<2x32xf32>
    %401 = arith.addf %399, %400 : vector<2x32xf32>
    %402 = arith.mulf %387, %401 : vector<2x32xf32>
    %403 = arith.addf %398, %402 : vector<2x32xf32>
    %404 = math.tanh %403 : vector<2x32xf32>
    %cst_138 = arith.constant 1.000000e+00 : f32
    %405 = vector.broadcast %cst_138 : f32 to vector<2x32xf32>
    %406 = arith.subf %405, %396 : vector<2x32xf32>
    %407 = arith.mulf %406, %404 : vector<2x32xf32>
    %408 = arith.mulf %396, %341 : vector<2x32xf32>
    %409 = arith.addf %407, %408 : vector<2x32xf32>
    %cst_139 = arith.constant dense<0.000000e+00> : vector<2x32xf32>
    %410 = tpu.matmul %409, %7, %cst_139 {dimension_numbers = #tpu.dot_dimension_numbers<[1], [0], [0], [1], [0, 0, 1, 1], [], []>} : vector<2x32xf32>, vector<32x32xf32>, vector<2x32xf32> -> vector<2x32xf32>
    %cst_140 = arith.constant dense<0.000000e+00> : vector<2x32xf32>
    %411 = tpu.matmul %375, %13, %cst_140 {dimension_numbers = #tpu.dot_dimension_numbers<[1], [0], [0], [1], [0, 0, 1, 1], [], []>} : vector<2x32xf32>, vector<32x32xf32>, vector<2x32xf32> -> vector<2x32xf32>
    %412 = arith.addf %410, %411 : vector<2x32xf32>
    %413 = vector.broadcast %22 : vector<1x32xf32> to vector<2x32xf32>
    %414 = arith.addf %412, %413 : vector<2x32xf32>
    %415 = arith.negf %414 : vector<2x32xf32>
    %416 = math.exp %415 : vector<2x32xf32>
    %cst_141 = arith.constant 1.000000e+00 : f32
    %417 = vector.broadcast %cst_141 : f32 to vector<2x32xf32>
    %418 = arith.addf %417, %416 : vector<2x32xf32>
    %419 = arith.divf %417, %418 : vector<2x32xf32>
    %cst_142 = arith.constant dense<0.000000e+00> : vector<2x32xf32>
    %420 = tpu.matmul %409, %9, %cst_142 {dimension_numbers = #tpu.dot_dimension_numbers<[1], [0], [0], [1], [0, 0, 1, 1], [], []>} : vector<2x32xf32>, vector<32x32xf32>, vector<2x32xf32> -> vector<2x32xf32>
    %cst_143 = arith.constant dense<0.000000e+00> : vector<2x32xf32>
    %421 = tpu.matmul %375, %15, %cst_143 {dimension_numbers = #tpu.dot_dimension_numbers<[1], [0], [0], [1], [0, 0, 1, 1], [], []>} : vector<2x32xf32>, vector<32x32xf32>, vector<2x32xf32> -> vector<2x32xf32>
    %422 = arith.addf %420, %421 : vector<2x32xf32>
    %423 = vector.broadcast %23 : vector<1x32xf32> to vector<2x32xf32>
    %424 = arith.addf %422, %423 : vector<2x32xf32>
    %425 = arith.negf %424 : vector<2x32xf32>
    %426 = math.exp %425 : vector<2x32xf32>
    %cst_144 = arith.constant 1.000000e+00 : f32
    %427 = vector.broadcast %cst_144 : f32 to vector<2x32xf32>
    %428 = arith.addf %427, %426 : vector<2x32xf32>
    %429 = arith.divf %427, %428 : vector<2x32xf32>
    %cst_145 = arith.constant dense<0.000000e+00> : vector<2x32xf32>
    %430 = tpu.matmul %409, %11, %cst_145 {dimension_numbers = #tpu.dot_dimension_numbers<[1], [0], [0], [1], [0, 0, 1, 1], [], []>} : vector<2x32xf32>, vector<32x32xf32>, vector<2x32xf32> -> vector<2x32xf32>
    %431 = vector.broadcast %24 : vector<1x32xf32> to vector<2x32xf32>
    %432 = arith.addf %430, %431 : vector<2x32xf32>
    %cst_146 = arith.constant dense<0.000000e+00> : vector<2x32xf32>
    %433 = tpu.matmul %375, %17, %cst_146 {dimension_numbers = #tpu.dot_dimension_numbers<[1], [0], [0], [1], [0, 0, 1, 1], [], []>} : vector<2x32xf32>, vector<32x32xf32>, vector<2x32xf32> -> vector<2x32xf32>
    %434 = vector.broadcast %25 : vector<1x32xf32> to vector<2x32xf32>
    %435 = arith.addf %433, %434 : vector<2x32xf32>
    %436 = arith.mulf %419, %435 : vector<2x32xf32>
    %437 = arith.addf %432, %436 : vector<2x32xf32>
    %438 = math.tanh %437 : vector<2x32xf32>
    %cst_147 = arith.constant 1.000000e+00 : f32
    %439 = vector.broadcast %cst_147 : f32 to vector<2x32xf32>
    %440 = arith.subf %439, %429 : vector<2x32xf32>
    %441 = arith.mulf %440, %438 : vector<2x32xf32>
    %442 = arith.mulf %429, %375 : vector<2x32xf32>
    %443 = arith.addf %441, %442 : vector<2x32xf32>
    %c5_148 = arith.constant 5 : index
    %c0_149 = arith.constant 0 : index
    %c0_150 = arith.constant 0 : index
    %444 = vector.load %arg5[%c5_148, %c0_149, %c0_150] : memref<8x2x32xf32, #tpu.memory_space<vmem>>, vector<1x2x32xf32>
    %445 = vector.shape_cast %444 : vector<1x2x32xf32> to vector<2x32xf32>
    %446 = vector.shape_cast %443 : vector<2x32xf32> to vector<1x2x32xf32>
    tpu.vector_store %arg5[%c5_148, %c0_149, %c0_150], %446 {strides = array<i32>} : memref<8x2x32xf32, #tpu.memory_space<vmem>>, vector<1x2x32xf32>,
    %447 = vector.extract_strided_slice %34 {offsets = [6, 0, 0], sizes = [1, 2, 32], strides = [1, 1, 1]} : vector<8x2x32xf32> to vector<1x2x32xf32>
    %448 = vector.shape_cast %447 : vector<1x2x32xf32> to vector<2x32xf32>
    %cst_151 = arith.constant dense<0.000000e+00> : vector<2x32xf32>
    %449 = tpu.matmul %409, %1, %cst_151 {dimension_numbers = #tpu.dot_dimension_numbers<[1], [0], [0], [1], [0, 0, 1, 1], [], []>} : vector<2x32xf32>, vector<32x32xf32>, vector<2x32xf32> -> vector<2x32xf32>
    %450 = arith.addf %448, %449 : vector<2x32xf32>
    %451 = arith.negf %450 : vector<2x32xf32>
    %452 = math.exp %451 : vector<2x32xf32>
    %cst_152 = arith.constant 1.000000e+00 : f32
    %453 = vector.broadcast %cst_152 : f32 to vector<2x32xf32>
    %454 = arith.addf %453, %452 : vector<2x32xf32>
    %455 = arith.divf %453, %454 : vector<2x32xf32>
    %456 = vector.extract_strided_slice %35 {offsets = [6, 0, 0], sizes = [1, 2, 32], strides = [1, 1, 1]} : vector<8x2x32xf32> to vector<1x2x32xf32>
    %457 = vector.shape_cast %456 : vector<1x2x32xf32> to vector<2x32xf32>
    %cst_153 = arith.constant dense<0.000000e+00> : vector<2x32xf32>
    %458 = tpu.matmul %409, %3, %cst_153 {dimension_numbers = #tpu.dot_dimension_numbers<[1], [0], [0], [1], [0, 0, 1, 1], [], []>} : vector<2x32xf32>, vector<32x32xf32>, vector<2x32xf32> -> vector<2x32xf32>
    %459 = arith.addf %457, %458 : vector<2x32xf32>
    %460 = arith.negf %459 : vector<2x32xf32>
    %461 = math.exp %460 : vector<2x32xf32>
    %cst_154 = arith.constant 1.000000e+00 : f32
    %462 = vector.broadcast %cst_154 : f32 to vector<2x32xf32>
    %463 = arith.addf %462, %461 : vector<2x32xf32>
    %464 = arith.divf %462, %463 : vector<2x32xf32>
    %465 = vector.extract_strided_slice %36 {offsets = [6, 0, 0], sizes = [1, 2, 32], strides = [1, 1, 1]} : vector<8x2x32xf32> to vector<1x2x32xf32>
    %466 = vector.shape_cast %465 : vector<1x2x32xf32> to vector<2x32xf32>
    %cst_155 = arith.constant dense<0.000000e+00> : vector<2x32xf32>
    %467 = tpu.matmul %409, %5, %cst_155 {dimension_numbers = #tpu.dot_dimension_numbers<[1], [0], [0], [1], [0, 0, 1, 1], [], []>} : vector<2x32xf32>, vector<32x32xf32>, vector<2x32xf32> -> vector<2x32xf32>
    %468 = vector.broadcast %21 : vector<1x32xf32> to vector<2x32xf32>
    %469 = arith.addf %467, %468 : vector<2x32xf32>
    %470 = arith.mulf %455, %469 : vector<2x32xf32>
    %471 = arith.addf %466, %470 : vector<2x32xf32>
    %472 = math.tanh %471 : vector<2x32xf32>
    %cst_156 = arith.constant 1.000000e+00 : f32
    %473 = vector.broadcast %cst_156 : f32 to vector<2x32xf32>
    %474 = arith.subf %473, %464 : vector<2x32xf32>
    %475 = arith.mulf %474, %472 : vector<2x32xf32>
    %476 = arith.mulf %464, %409 : vector<2x32xf32>
    %477 = arith.addf %475, %476 : vector<2x32xf32>
    %cst_157 = arith.constant dense<0.000000e+00> : vector<2x32xf32>
    %478 = tpu.matmul %477, %7, %cst_157 {dimension_numbers = #tpu.dot_dimension_numbers<[1], [0], [0], [1], [0, 0, 1, 1], [], []>} : vector<2x32xf32>, vector<32x32xf32>, vector<2x32xf32> -> vector<2x32xf32>
    %cst_158 = arith.constant dense<0.000000e+00> : vector<2x32xf32>
    %479 = tpu.matmul %443, %13, %cst_158 {dimension_numbers = #tpu.dot_dimension_numbers<[1], [0], [0], [1], [0, 0, 1, 1], [], []>} : vector<2x32xf32>, vector<32x32xf32>, vector<2x32xf32> -> vector<2x32xf32>
    %480 = arith.addf %478, %479 : vector<2x32xf32>
    %481 = vector.broadcast %22 : vector<1x32xf32> to vector<2x32xf32>
    %482 = arith.addf %480, %481 : vector<2x32xf32>
    %483 = arith.negf %482 : vector<2x32xf32>
    %484 = math.exp %483 : vector<2x32xf32>
    %cst_159 = arith.constant 1.000000e+00 : f32
    %485 = vector.broadcast %cst_159 : f32 to vector<2x32xf32>
    %486 = arith.addf %485, %484 : vector<2x32xf32>
    %487 = arith.divf %485, %486 : vector<2x32xf32>
    %cst_160 = arith.constant dense<0.000000e+00> : vector<2x32xf32>
    %488 = tpu.matmul %477, %9, %cst_160 {dimension_numbers = #tpu.dot_dimension_numbers<[1], [0], [0], [1], [0, 0, 1, 1], [], []>} : vector<2x32xf32>, vector<32x32xf32>, vector<2x32xf32> -> vector<2x32xf32>
    %cst_161 = arith.constant dense<0.000000e+00> : vector<2x32xf32>
    %489 = tpu.matmul %443, %15, %cst_161 {dimension_numbers = #tpu.dot_dimension_numbers<[1], [0], [0], [1], [0, 0, 1, 1], [], []>} : vector<2x32xf32>, vector<32x32xf32>, vector<2x32xf32> -> vector<2x32xf32>
    %490 = arith.addf %488, %489 : vector<2x32xf32>
    %491 = vector.broadcast %23 : vector<1x32xf32> to vector<2x32xf32>
    %492 = arith.addf %490, %491 : vector<2x32xf32>
    %493 = arith.negf %492 : vector<2x32xf32>
    %494 = math.exp %493 : vector<2x32xf32>
    %cst_162 = arith.constant 1.000000e+00 : f32
    %495 = vector.broadcast %cst_162 : f32 to vector<2x32xf32>
    %496 = arith.addf %495, %494 : vector<2x32xf32>
    %497 = arith.divf %495, %496 : vector<2x32xf32>
    %cst_163 = arith.constant dense<0.000000e+00> : vector<2x32xf32>
    %498 = tpu.matmul %477, %11, %cst_163 {dimension_numbers = #tpu.dot_dimension_numbers<[1], [0], [0], [1], [0, 0, 1, 1], [], []>} : vector<2x32xf32>, vector<32x32xf32>, vector<2x32xf32> -> vector<2x32xf32>
    %499 = vector.broadcast %24 : vector<1x32xf32> to vector<2x32xf32>
    %500 = arith.addf %498, %499 : vector<2x32xf32>
    %cst_164 = arith.constant dense<0.000000e+00> : vector<2x32xf32>
    %501 = tpu.matmul %443, %17, %cst_164 {dimension_numbers = #tpu.dot_dimension_numbers<[1], [0], [0], [1], [0, 0, 1, 1], [], []>} : vector<2x32xf32>, vector<32x32xf32>, vector<2x32xf32> -> vector<2x32xf32>
    %502 = vector.broadcast %25 : vector<1x32xf32> to vector<2x32xf32>
    %503 = arith.addf %501, %502 : vector<2x32xf32>
    %504 = arith.mulf %487, %503 : vector<2x32xf32>
    %505 = arith.addf %500, %504 : vector<2x32xf32>
    %506 = math.tanh %505 : vector<2x32xf32>
    %cst_165 = arith.constant 1.000000e+00 : f32
    %507 = vector.broadcast %cst_165 : f32 to vector<2x32xf32>
    %508 = arith.subf %507, %497 : vector<2x32xf32>
    %509 = arith.mulf %508, %506 : vector<2x32xf32>
    %510 = arith.mulf %497, %443 : vector<2x32xf32>
    %511 = arith.addf %509, %510 : vector<2x32xf32>
    %c6_166 = arith.constant 6 : index
    %c0_167 = arith.constant 0 : index
    %c0_168 = arith.constant 0 : index
    %512 = vector.load %arg5[%c6_166, %c0_167, %c0_168] : memref<8x2x32xf32, #tpu.memory_space<vmem>>, vector<1x2x32xf32>
    %513 = vector.shape_cast %512 : vector<1x2x32xf32> to vector<2x32xf32>
    %514 = vector.shape_cast %511 : vector<2x32xf32> to vector<1x2x32xf32>
    tpu.vector_store %arg5[%c6_166, %c0_167, %c0_168], %514 {strides = array<i32>} : memref<8x2x32xf32, #tpu.memory_space<vmem>>, vector<1x2x32xf32>,
    %515 = vector.extract_strided_slice %34 {offsets = [7, 0, 0], sizes = [1, 2, 32], strides = [1, 1, 1]} : vector<8x2x32xf32> to vector<1x2x32xf32>
    %516 = vector.shape_cast %515 : vector<1x2x32xf32> to vector<2x32xf32>
    %cst_169 = arith.constant dense<0.000000e+00> : vector<2x32xf32>
    %517 = tpu.matmul %477, %1, %cst_169 {dimension_numbers = #tpu.dot_dimension_numbers<[1], [0], [0], [1], [0, 0, 1, 1], [], []>} : vector<2x32xf32>, vector<32x32xf32>, vector<2x32xf32> -> vector<2x32xf32>
    %518 = arith.addf %516, %517 : vector<2x32xf32>
    %519 = arith.negf %518 : vector<2x32xf32>
    %520 = math.exp %519 : vector<2x32xf32>
    %cst_170 = arith.constant 1.000000e+00 : f32
    %521 = vector.broadcast %cst_170 : f32 to vector<2x32xf32>
    %522 = arith.addf %521, %520 : vector<2x32xf32>
    %523 = arith.divf %521, %522 : vector<2x32xf32>
    %524 = vector.extract_strided_slice %35 {offsets = [7, 0, 0], sizes = [1, 2, 32], strides = [1, 1, 1]} : vector<8x2x32xf32> to vector<1x2x32xf32>
    %525 = vector.shape_cast %524 : vector<1x2x32xf32> to vector<2x32xf32>
    %cst_171 = arith.constant dense<0.000000e+00> : vector<2x32xf32>
    %526 = tpu.matmul %477, %3, %cst_171 {dimension_numbers = #tpu.dot_dimension_numbers<[1], [0], [0], [1], [0, 0, 1, 1], [], []>} : vector<2x32xf32>, vector<32x32xf32>, vector<2x32xf32> -> vector<2x32xf32>
    %527 = arith.addf %525, %526 : vector<2x32xf32>
    %528 = arith.negf %527 : vector<2x32xf32>
    %529 = math.exp %528 : vector<2x32xf32>
    %cst_172 = arith.constant 1.000000e+00 : f32
    %530 = vector.broadcast %cst_172 : f32 to vector<2x32xf32>
    %531 = arith.addf %530, %529 : vector<2x32xf32>
    %532 = arith.divf %530, %531 : vector<2x32xf32>
    %533 = vector.extract_strided_slice %36 {offsets = [7, 0, 0], sizes = [1, 2, 32], strides = [1, 1, 1]} : vector<8x2x32xf32> to vector<1x2x32xf32>
    %534 = vector.shape_cast %533 : vector<1x2x32xf32> to vector<2x32xf32>
    %cst_173 = arith.constant dense<0.000000e+00> : vector<2x32xf32>
    %535 = tpu.matmul %477, %5, %cst_173 {dimension_numbers = #tpu.dot_dimension_numbers<[1], [0], [0], [1], [0, 0, 1, 1], [], []>} : vector<2x32xf32>, vector<32x32xf32>, vector<2x32xf32> -> vector<2x32xf32>
    %536 = vector.broadcast %21 : vector<1x32xf32> to vector<2x32xf32>
    %537 = arith.addf %535, %536 : vector<2x32xf32>
    %538 = arith.mulf %523, %537 : vector<2x32xf32>
    %539 = arith.addf %534, %538 : vector<2x32xf32>
    %540 = math.tanh %539 : vector<2x32xf32>
    %cst_174 = arith.constant 1.000000e+00 : f32
    %541 = vector.broadcast %cst_174 : f32 to vector<2x32xf32>
    %542 = arith.subf %541, %532 : vector<2x32xf32>
    %543 = arith.mulf %542, %540 : vector<2x32xf32>
    %544 = arith.mulf %532, %477 : vector<2x32xf32>
    %545 = arith.addf %543, %544 : vector<2x32xf32>
    %cst_175 = arith.constant dense<0.000000e+00> : vector<2x32xf32>
    %546 = tpu.matmul %545, %7, %cst_175 {dimension_numbers = #tpu.dot_dimension_numbers<[1], [0], [0], [1], [0, 0, 1, 1], [], []>} : vector<2x32xf32>, vector<32x32xf32>, vector<2x32xf32> -> vector<2x32xf32>
    %cst_176 = arith.constant dense<0.000000e+00> : vector<2x32xf32>
    %547 = tpu.matmul %511, %13, %cst_176 {dimension_numbers = #tpu.dot_dimension_numbers<[1], [0], [0], [1], [0, 0, 1, 1], [], []>} : vector<2x32xf32>, vector<32x32xf32>, vector<2x32xf32> -> vector<2x32xf32>
    %548 = arith.addf %546, %547 : vector<2x32xf32>
    %549 = vector.broadcast %22 : vector<1x32xf32> to vector<2x32xf32>
    %550 = arith.addf %548, %549 : vector<2x32xf32>
    %551 = arith.negf %550 : vector<2x32xf32>
    %552 = math.exp %551 : vector<2x32xf32>
    %cst_177 = arith.constant 1.000000e+00 : f32
    %553 = vector.broadcast %cst_177 : f32 to vector<2x32xf32>
    %554 = arith.addf %553, %552 : vector<2x32xf32>
    %555 = arith.divf %553, %554 : vector<2x32xf32>
    %cst_178 = arith.constant dense<0.000000e+00> : vector<2x32xf32>
    %556 = tpu.matmul %545, %9, %cst_178 {dimension_numbers = #tpu.dot_dimension_numbers<[1], [0], [0], [1], [0, 0, 1, 1], [], []>} : vector<2x32xf32>, vector<32x32xf32>, vector<2x32xf32> -> vector<2x32xf32>
    %cst_179 = arith.constant dense<0.000000e+00> : vector<2x32xf32>
    %557 = tpu.matmul %511, %15, %cst_179 {dimension_numbers = #tpu.dot_dimension_numbers<[1], [0], [0], [1], [0, 0, 1, 1], [], []>} : vector<2x32xf32>, vector<32x32xf32>, vector<2x32xf32> -> vector<2x32xf32>
    %558 = arith.addf %556, %557 : vector<2x32xf32>
    %559 = vector.broadcast %23 : vector<1x32xf32> to vector<2x32xf32>
    %560 = arith.addf %558, %559 : vector<2x32xf32>
    %561 = arith.negf %560 : vector<2x32xf32>
    %562 = math.exp %561 : vector<2x32xf32>
    %cst_180 = arith.constant 1.000000e+00 : f32
    %563 = vector.broadcast %cst_180 : f32 to vector<2x32xf32>
    %564 = arith.addf %563, %562 : vector<2x32xf32>
    %565 = arith.divf %563, %564 : vector<2x32xf32>
    %cst_181 = arith.constant dense<0.000000e+00> : vector<2x32xf32>
    %566 = tpu.matmul %545, %11, %cst_181 {dimension_numbers = #tpu.dot_dimension_numbers<[1], [0], [0], [1], [0, 0, 1, 1], [], []>} : vector<2x32xf32>, vector<32x32xf32>, vector<2x32xf32> -> vector<2x32xf32>
    %567 = vector.broadcast %24 : vector<1x32xf32> to vector<2x32xf32>
    %568 = arith.addf %566, %567 : vector<2x32xf32>
    %cst_182 = arith.constant dense<0.000000e+00> : vector<2x32xf32>
    %569 = tpu.matmul %511, %17, %cst_182 {dimension_numbers = #tpu.dot_dimension_numbers<[1], [0], [0], [1], [0, 0, 1, 1], [], []>} : vector<2x32xf32>, vector<32x32xf32>, vector<2x32xf32> -> vector<2x32xf32>
    %570 = vector.broadcast %25 : vector<1x32xf32> to vector<2x32xf32>
    %571 = arith.addf %569, %570 : vector<2x32xf32>
    %572 = arith.mulf %555, %571 : vector<2x32xf32>
    %573 = arith.addf %568, %572 : vector<2x32xf32>
    %574 = math.tanh %573 : vector<2x32xf32>
    %cst_183 = arith.constant 1.000000e+00 : f32
    %575 = vector.broadcast %cst_183 : f32 to vector<2x32xf32>
    %576 = arith.subf %575, %565 : vector<2x32xf32>
    %577 = arith.mulf %576, %574 : vector<2x32xf32>
    %578 = arith.mulf %565, %511 : vector<2x32xf32>
    %579 = arith.addf %577, %578 : vector<2x32xf32>
    %c7_184 = arith.constant 7 : index
    %c0_185 = arith.constant 0 : index
    %c0_186 = arith.constant 0 : index
    %580 = vector.load %arg5[%c7_184, %c0_185, %c0_186] : memref<8x2x32xf32, #tpu.memory_space<vmem>>, vector<1x2x32xf32>
    %581 = vector.shape_cast %580 : vector<1x2x32xf32> to vector<2x32xf32>
    %582 = vector.shape_cast %579 : vector<2x32xf32> to vector<1x2x32xf32>
    tpu.vector_store %arg5[%c7_184, %c0_185, %c0_186], %582 {strides = array<i32>} : memref<8x2x32xf32, #tpu.memory_space<vmem>>, vector<1x2x32xf32>,
    %583 = arith.addf %545, %579 : vector<2x32xf32>
    %cst_187 = arith.constant 5.000000e-01 : f32
    %584 = vector.broadcast %cst_187 : f32 to vector<2x32xf32>
    %585 = arith.mulf %584, %583 : vector<2x32xf32>
    %c0_188 = arith.constant 0 : index
    %c0_189 = arith.constant 0 : index
    %c0_190 = arith.constant 0 : index
    %586 = vector.load %arg5[%c0_188, %c0_189, %c0_190] : memref<8x2x32xf32, #tpu.memory_space<vmem>>, vector<8x2x32xf32>
    %cst_191 = arith.constant dense<0.000000e+00> : vector<8x2x32xf32>
    %587 = tpu.matmul %586, %19, %cst_191 {dimension_numbers = #tpu.dot_dimension_numbers<[2], [0], [0, 1], [1], [0, 0, 0, 1, 1, 1], [], []>} : vector<8x2x32xf32>, vector<32x32xf32>, vector<8x2x32xf32> -> vector<8x2x32xf32>
    %588 = vector.shape_cast %26 : vector<1x32xf32> to vector<1x1x32xf32>
    %589 = vector.broadcast %588 : vector<1x1x32xf32> to vector<8x2x32xf32>
    %590 = arith.addf %587, %589 : vector<8x2x32xf32>
    %591 = math.tanh %590 : vector<8x2x32xf32>
    %592 = vector.shape_cast %27 : vector<1x32xf32> to vector<1x1x32xf32>
    %593 = vector.broadcast %592 : vector<1x1x32xf32> to vector<8x2x32xf32>
    %594 = arith.mulf %591, %593 : vector<8x2x32xf32>
    %cst_192 = arith.constant dense<0.000000e+00> : vector<8x2xf32>
    %595 = vector.multi_reduction <add>, %594, %cst_192 [2] : vector<8x2x32xf32> to vector<8x2xf32>
    %596 = vector.shape_cast %595 : vector<8x2xf32> to vector<8x2x1xf32>
    %cst_193 = arith.constant dense<0xFF800000> : vector<2x1xf32>
    %597 = vector.multi_reduction <maximumf>, %596, %cst_193 [0] : vector<8x2x1xf32> to vector<2x1xf32>
    %598 = vector.shape_cast %597 : vector<2x1xf32> to vector<1x2x1xf32>
    %599 = vector.broadcast %598 : vector<1x2x1xf32> to vector<8x2x1xf32>
    %600 = arith.subf %596, %599 : vector<8x2x1xf32>
    %601 = math.exp %600 : vector<8x2x1xf32>
    %cst_194 = arith.constant dense<0.000000e+00> : vector<2x1xf32>
    %602 = vector.multi_reduction <add>, %601, %cst_194 [0] : vector<8x2x1xf32> to vector<2x1xf32>
    %603 = vector.shape_cast %602 : vector<2x1xf32> to vector<1x2x1xf32>
    %604 = tpu.reciprocal %603 {approx = true} : vector<1x2x1xf32> -> vector<1x2x1xf32>
    %605 = arith.mulf %603, %604 : vector<1x2x1xf32>
    %cst_195 = arith.constant 2.000000e+00 : f32
    %606 = vector.broadcast %cst_195 : f32 to vector<1x2x1xf32>
    %607 = arith.subf %606, %605 : vector<1x2x1xf32>
    %608 = arith.mulf %604, %607 : vector<1x2x1xf32>
    %609 = vector.broadcast %608 : vector<1x2x1xf32> to vector<8x2x1xf32>
    %610 = arith.mulf %601, %609 : vector<8x2x1xf32>
    %611 = vector.broadcast %610 : vector<8x2x1xf32> to vector<8x2x32xf32>
    %612 = arith.mulf %586, %611 : vector<8x2x32xf32>
    %cst_196 = arith.constant dense<0.000000e+00> : vector<2x32xf32>
    %613 = vector.multi_reduction <add>, %612, %cst_196 [0] : vector<8x2x32xf32> to vector<2x32xf32>
    %c0_197 = arith.constant 0 : index
    %c0_198 = arith.constant 0 : index
    %614 = vector.load %arg4[%c0_197, %c0_198] : memref<2x64xf32, #tpu.memory_space<vmem>>, vector<2x32xf32>
    tpu.vector_store %arg4[%c0_197, %c0_198], %585 {strides = array<i32>} : memref<2x64xf32, #tpu.memory_space<vmem>>, vector<2x32xf32>,
    %c0_199 = arith.constant 0 : index
    %c32 = arith.constant 32 : index
    %615 = vector.load %arg4[%c0_199, %c32] : memref<2x64xf32, #tpu.memory_space<vmem>>, vector<2x32xf32>
    tpu.vector_store %arg4[%c0_199, %c32], %613 {strides = array<i32>} : memref<2x64xf32, #tpu.memory_space<vmem>>, vector<2x32xf32>,
    return
  }
}

</mosaic_0001>

<bundles_post_ra>
// kernel: tpu_custom_call.1
= control target key start
LH: loop header
LB: loop body
LE: loop exit
PB: predicated region body
PF: predicated region fallthrough
CT: control target
= control target key end

     0   :  { %9 = vsyncpa [#allocation4], 0  ;;  %s4574_s0 = inlined_call_operand.hbm [shape: f32[8,2,16], index: 0, kind: input, shape index: {}]   ;;  %s4575_s1 = inlined_call_operand.hbm [shape: f32[16,96], index: 1, kind: input, shape index: {}]   ;;  %s4576_s2 = inlined_call_operand.hbm [shape: f32[10,32,32], index: 2, kind: input, shape index: {}]   ;;  %s4577_s3 = inlined_call_operand.hbm [shape: f32[8,96], index: 3, kind: input, shape index: {}]   ;;  %s4578_s4 = inlined_call_operand.hbm [shape: f32[2,64], index: 4, kind: output, shape index: {}]  }
   0x1   :  { %10 = vsyncpa [#allocation7], 0 }
   0x2   :  { %11 = vsyncpa [#allocation10], 0  ;;  %s30_s17 = sshll.u32 %s4575_s1, 4  ;;  %s31_s17 = int_to_ptr.hbm [resolvable:$true] %s30_s17 }
   0x3   :  { %12 = vsyncpa [#allocation5], 0  ;;  %s3636_s18 = smov [#allocation6]   ;;  %s17_s22 = sshll.u32 %s4574_s0, 4  ;;  %s18_s22 = int_to_ptr.hbm [resolvable:$true] %s17_s22 }
   0x4   :  { %s32_s19 = sshll.u32 %s3636_s18, 4  ;;  %s3637_s23 = smov 128   ;;  %s33_s19 = int_to_ptr.vmem [resolvable:$true] %s32_s19 }
   0x5   :  { %s3638_s24 = smov 8   ;;  %s3639_s25 = smov [#allocation3]  }
   0x6   :  { %38 = dma.hbm_to_vmem [thread:$0]  %s31_s17, 256, %s33_s19, [#allocation7], %s3637_s23, %s3637_s23, %s3638_s24  }
   0x7   :  { %s19_s26 = sshll.u32 %s3639_s25, 4  ;;  %s3640_s27 = smov 32   ;;  %s20_s26 = int_to_ptr.vmem [resolvable:$true] %s19_s26 }
   0x8   :  { %s3641_s28 = smov 2   ;;  %s43_s30 = sshll.u32 %s4576_s2, 4  ;;  %s44_s30 = int_to_ptr.hbm [resolvable:$true] %s43_s30 }
   0x9   :  { %25 = dma.hbm_to_vmem [thread:$0]  %s18_s22, 256, %s20_s26, [#allocation4], %s3640_s27, %s3640_s27, %s3641_s28  }
   0xa   :  { %s3642_s5 = smov [#allocation8]   ;;  %s57_s8 = sshll.u32 %s4577_s3, 4  ;;  %s58_s8 = int_to_ptr.hbm [resolvable:$true] %s57_s8 }
   0xb   :  { %s45_s6 = sshll.u32 %s3642_s5, 4  ;;  %s3643_s9 = smov [#allocation9]   ;;  %s46_s6 = int_to_ptr.vmem [resolvable:$true] %s45_s6 }
   0xc   :  { %51 = dma.hbm_to_vmem [thread:$0]  %s44_s30, 5120, %s46_s6, [#allocation7], %s3637_s23, %s3637_s23, %s3638_s24  }
   0xd   :  { %s59_s10 = sshll.u32 %s3643_s9, 4  ;;  %s60_s10 = int_to_ptr.vmem [resolvable:$true] %s59_s10 }
   0xe   :  { %62 = dma.hbm_to_vmem [thread:$0]  %s58_s8, 128, %s60_s10, [#allocation10]  }
   0xf   :  { %3628 = dma.done.wait [#allocation4], 256  }
  0x10   :  { %3629 = vsyncadd [#allocation4], 4294967040 }
  0x11   :  { %3630 = dma.done.wait [#allocation7], 5376  }
  0x12   :  { %3631 = vsyncadd [#allocation7], 4294961920 }
  0x13   :  { %3632 = dma.done.wait [#allocation10], 128  }
  0x14   :  { %3633 = vsyncadd [#allocation10], 4294967168  ;;  %v3687_v0 = vld [vmem:[#allocation8 + $0x18] sm:$0xff]  ;;  %v3689_v2 = vld [vmem:[#allocation8 + $0x10] sm:$0xff]  ;;  %v3644_v14 = vmov 0.0   ;;  %vm192_vm0 = vcmask 130048  }
  0x15   :  { %v145_v1 = vld [vmem:[#allocation6 + $0x8] sm:$0xff]  ;;  %4595 = vst [vmem:[#allocation16_spill] sm:$0xff] %v3689_v2  ;;  %250 = vmatpush.msra.mxu1 %v3687_v0  ;;  %v144_v3 = vld [vmem:[#allocation6] sm:$0xff]  ;;  %v136_v4 = vld [vmem:[#allocation3] sm:$0x3]  ;;  %s3645_s2 = smov 64  }
  0x16   :  { %211 = vmatpush.msra.mxu0 %v145_v1  ;;  %v3692_v5 = vld [vmem:[#allocation8 + $0x8] sm:$0xff]  ;;  %v137_v6 = vld [vmem:[#allocation3 + $0x2] sm:$0x3]  ;;  %v138_v7 = vld [vmem:[#allocation3 + $0x4] sm:$0x3]  ;;  %s3646_s3 = smov 96  }
  0x17   :  { %4596 = vst [vmem:[#allocation17_spill] sm:$0xff] %v3692_v5  ;;  %251 = vmatpush.msra.mxu1 %v3689_v2  ;;  %v139_v8 = vld [vmem:[#allocation3 + $0x6] sm:$0x3]  ;;  %v3695_v9 = vld [vmem:[#allocation8 + $0x38] sm:$0xff]  ;;  %v3697_v10 = vld [vmem:[#allocation8 + $0x30] sm:$0xff]  ;;  %vm234_vm9 = vcmask 261120  }
  0x18   :  { %212 = vmatpush.msra.mxu0 %v144_v3  ;;  %155 = vst [vmem:[#allocation1] ss:$4 sm:$0xff] %v136_v4  ;;  %v3699_v11 = vld [vmem:[#allocation8] sm:$0xff]  ;;  %290 = vmatpush.msra.mxu3 %v3695_v9  ;;  %v3703_v12 = vld [vmem:[#allocation8 + $0x28] sm:$0xff]  ;;  %v3711_v15 = vld [vmem:[#allocation8 + $0x58] sm:$0xff]  ;;  %s3647_s11 = smov [#allocation11]  }
  0x19   :  { %157 = vst [vmem:[#allocation1 + $0x1] ss:$4 sm:$0xff] %v137_v6  ;;  %252 = vmatpush.msra.mxu1 %v3692_v5  ;;  %v3706_v13 = vld [vmem:[#allocation8 + $0x20] sm:$0xff]  ;;  %v3717_v17 = vld [vmem:[#allocation8 + $0x50] sm:$0xff]  ;;  %v3720_v19 = vld [vmem:[#allocation8 + $0x48] sm:$0xff]  ;;  %s3096_s12 = sshll.u32 %s3647_s11, 4  ;;  %s3097_s12 = int_to_ptr.vmem [resolvable:$true] %s3096_s12 }
  0x1a   :  { %4597 = vst [vmem:[#allocation18_spill] sm:$0xff] %v3699_v11  ;;  %291 = vmatpush.msra.mxu3 %v3697_v10  ;;  %v3714_v16 = vld [vmem:[#allocation9] ss:$0 sm:$0xff]  ;;  %v3736_v32 = vld [vmem:[#allocation9 + $0x1] ss:$0 sm:$0xff]  ;;  %s3098_s15 = sshll.u32 %s4578_s4, 4  ;;  %s3099_s15 = int_to_ptr.hbm [resolvable:$true] %s3098_s15 }
  0x1b   :  { %159 = vst [vmem:[#allocation1 + $0x2] ss:$4 sm:$0xff] %v138_v7  ;;  %253 = vmatpush.msra.mxu1 %v3699_v11  ;;  %v3725_v20 = vld [vmem:[#allocation8 + $0x40] sm:$0xff] }
  0x1c   :  { %161 = vst [vmem:[#allocation1 + $0x3] ss:$4 sm:$0xff] %v139_v8  ;;  %254 = vmatmul.f32.vlgmr.msra.gmra.mxu1 %v3644_v14  ;;  %292 = vmatpush.msra.mxu3 %v3703_v12 }
  0x1e   :  { %293 = vmatpush.msra.mxu3 %v3706_v13 }
  0x1f   :  { %294 = vmatmul.f32.vlgmr.msra.gmra.mxu3 %v3644_v14 }
  0x20   :  { %335 = vmatpush.msrb.mxu3 %v3711_v15 }
  0x22   :  { %336 = vmatpush.msrb.mxu3 %v3717_v17 }
  0x23   :  { %v170_v18 = vld.sshfl [vmem:[#allocation1] sm:$0xff pattern:$0x73625140] }
  0x24   :  { %3110 = vmatmul.msk.f32.vlgmr.msra.gmra.mxu0 %vm192_vm0, %v170_v18  ;;  %173 = vst [vmem:[#allocation1] ss:$4 sm:$0xff] %v3714_v16  ;;  %337 = vmatpush.msrb.mxu3 %v3720_v19  ;;  %v3752_v18 = vld [vmem:[#allocation8 + $0xd8] sm:$0xff] }
  0x25   :  { %175 = vst [vmem:[#allocation1 + $0x1] ss:$4 sm:$0xff] %v3714_v16  ;;  %370 = vmatpush.msrb.mxu1 %v3752_v18 }
  0x26   :  { %177 = vst [vmem:[#allocation1 + $0x2] ss:$4 sm:$0xff] %v3714_v16  ;;  %338 = vmatpush.msrb.mxu3 %v3725_v20 }
  0x27   :  { %179 = vst [vmem:[#allocation1 + $0x3] ss:$4 sm:$0xff] %v3714_v16  ;;  %339 = vmatmul.f32.vlgmr.msrb.gmra.mxu3 %v3644_v14 }
  0x2e   :  { %v188_v21 = vld.sshfl [vmem:[#allocation1] sm:$0xff pattern:$0x73625140] }
  0x99   :  { %v255_v23 = vpop.f32.mrf.mxu1 }
  0xa1   :  { %v214_v22 = vpop.f32.mrf.mxu0 }
  0xa2   :  { %v3733_v24 = vadd.f32 %v214_v22, %v188_v21  ;;  %v295_v29 = vpop.f32.mrf.mxu3  ;;  %v3754_v21 = vld [vmem:[#allocation8 + $0xd0] sm:$0xff]  ;;  %v3757_v22 = vld [vmem:[#allocation8 + $0xc8] sm:$0xff] }
  0xa3   :  { %371 = vmatpush.msrb.mxu1 %v3754_v21 }
  0xa4   :  { %4598 = vst [vmem:[#allocation19_spill] sm:$0xff] %v3733_v24  ;;  %v258_v25 = vadd.f32 %v255_v23, %v3733_v24  ;;  %v3760_v23 = vld [vmem:[#allocation8 + $0xc0] sm:$0xff] }
  0xa5   :  { %372 = vmatpush.msrb.mxu1 %v3757_v22 }
  0xa6   :  { %v3112_v26 = vmul.f32 -1.442695, %v258_v25  ;;  %v3763_v25 = vld [vmem:[#allocation8 + $0xb8] sm:$0xff] }
  0xa7   :  { %373 = vmatpush.msrb.mxu1 %v3760_v23 }
  0xa8   :  { %3232 = vpow2.f32 %v3112_v26  ;;  %374 = vmatmul.f32.vlgmr.msrb.gmra.mxu1 %v3644_v14 }
  0xa9   :  { %512 = vmatpush.msra.mxu1 %v3763_v25 }
  0xaa   :  { %v340_v34 = vpop.f32.mrf.mxu3 }
  0xab   :  { %v341_v38 = vadd.f32 %v3736_v32, %v340_v34  ;;  %v141_v34 = vld [vmem:[#allocation3 + $0xa] sm:$0x3] }
  0xac   :  { %165 = vst [vmem:[#allocation1 + $0x21] ss:$4 sm:$0xff] %v141_v34 }
  0xae   :  { %v3233_v27 = vpop.eup %3232 }
  0xaf   :  { %v262_v28 = vadd.f32 1.0, %v3233_v27  ;;  %v3769_v27 = vld [vmem:[#allocation8 + $0xb0] sm:$0xff] }
  0xb0   :  { %513 = vmatpush.msra.mxu1 %v3769_v27 }
  0xb1   :  { %3234 = vrcp.f32 %v262_v28  ;;  %v274_v35 = vand.u32 2147483648, %v262_v28  ;;  %v272_v37 = vand.u32 2147483647, %v262_v28  ;;  %vm268_vm2 = vweird.f32 %v262_v28 }
  0xb3   :  { %v275_v40 = vor.u32 1.1754944e-38, %v274_v35  ;;  %vm273_vm4 = vcmp.eq.f32.partialorder %v272_v37, 8.507059e+37  ;;  %v3787_v35 = vld [vmem:[#allocation8 + $0xf8] sm:$0xff]  ;;  %v142_v37 = vld [vmem:[#allocation3 + $0xc] sm:$0x3] }
  0xb4   :  { %438 = vmatpush.msra.mxu3 %v3787_v35  ;;  %167 = vst [vmem:[#allocation1 + $0x22] ss:$4 sm:$0xff] %v142_v37 }
  0xb7   :  { %v3235_v30 = vpop.eup %3234 }
  0xb8   :  { %v264_v31 = vmul.f32 %v3235_v30, %v262_v28  ;;  %vm269_vm1 = vweird.f32 %v3235_v30  ;;  %v3772_v28 = vld [vmem:[#allocation8 + $0xa8] sm:$0xff] }
  0xb9   :  { %vm270_vm3 = vmor %vm268_vm2, %vm269_vm1  ;;  %514 = vmatpush.msra.mxu1 %v3772_v28 }
  0xba   :  { %v265_v33 = vsub.f32 1.0, %v264_v31 }
  0xbc   :  { %v266_v36 = vmul.f32 %v3235_v30, %v265_v33  ;;  %v140_v33 = vld [vmem:[#allocation3 + $0x8] sm:$0x3] }
  0xbd   :  { %163 = vst [vmem:[#allocation1 + $0x20] ss:$4 sm:$0xff] %v140_v33 }
  0xbe   :  { %v267_v39 = vadd.f32 %v3235_v30, %v266_v36  ;;  %v3789_v36 = vld [vmem:[#allocation8 + $0xf0] sm:$0xff] }
  0xbf   :  { %439 = vmatpush.msra.mxu3 %v3789_v36 }
  0xc0   :  { %v271_v41 = vsel %vm270_vm3, %v3235_v30, %v267_v39  ;;  %v3792_v39 = vld [vmem:[#allocation8 + $0xe8] sm:$0xff] }
  0xc1   :  { %v276_v42 = vsel %vm273_vm4, %v275_v40, %v271_v41  ;;  %v3794_v40 = vld [vmem:[#allocation8 + $0x98] sm:$0xff]  ;;  %v3796_v41 = vld [vmem:[#allocation8 + $0x90] sm:$0xff]  ;;  %440 = vmatpush.msra.mxu3 %v3792_v39 }
  0xc2   :  { %v343_v43 = vmul.f32 %v341_v38, %v276_v42  ;;  %v143_v38 = vld [vmem:[#allocation3 + $0xe] sm:$0x3]  ;;  %464 = vmatpush.msrb.mxu0 %v3794_v40  ;;  %v3800_v42 = vld [vmem:[#allocation8 + $0xe0] sm:$0xff] }
  0xc3   :  { %169 = vst [vmem:[#allocation1 + $0x23] ss:$4 sm:$0xff] %v143_v38  ;;  %441 = vmatpush.msra.mxu3 %v3800_v42 }
  0xc4   :  { %345 = vrot.lane.b32.xlu0 %v343_v43, %s3645_s2  ;;  %v3802_v43 = vld [vmem:[#allocation8 + $0x88] sm:$0xff]  ;;  %465 = vmatpush.msrb.mxu0 %v3796_v41 }
  0xc5   :  { %442 = vmatmul.f32.vlgmr.msra.gmra.mxu3 %v3644_v14 }
  0xc6   :  { %466 = vmatpush.msrb.mxu0 %v3802_v43  ;;  %568 = vmatpush.msrb.mxu3 %v3687_v0 }
  0xc8   :  { %569 = vmatpush.msrb.mxu3 %v3689_v2 }
  0xca   :  { %570 = vmatpush.msrb.mxu3 %v3692_v5 }
  0xcc   :  { %299 = vrot.lane.b32.xlu0 %v295_v29, %s3640_s27  ;;  %v3775_v29 = vld [vmem:[#allocation8 + $0xa0] sm:$0xff]  ;;  %571 = vmatpush.msrb.mxu3 %v3699_v11 }
  0xcd   :  { %515 = vmatpush.msra.mxu1 %v3775_v29 }
  0xcf   :  { %664 = vmatpush.msrb.mxu1 %v3711_v15 }
  0xd1   :  { %665 = vmatpush.msrb.mxu1 %v3717_v17 }
  0xd3   :  { %666 = vmatpush.msrb.mxu1 %v3720_v19 }
  0xd5   :  { %667 = vmatpush.msrb.mxu1 %v3725_v20 }
 0x136   :  { %v346_v44 = vpop.permute.xlu0 %345 }
 0x137   :  { %v348_v45 = vadd.f32 %v346_v44, %v3733_v24  ;;  %v3806_v44 = vld [vmem:[#allocation8 + $0x80] sm:$0xff] }
 0x138   :  { %467 = vmatpush.msrb.mxu0 %v3806_v44 }
 0x139   :  { %3236 = vtanh.f32 %v348_v45  ;;  %v171_v45 = vld.sshfl [vmem:[#allocation1 + $0x20] sm:$0xff pattern:$0x73625140] }
 0x13a   :  { %614 = vmatpush.msra.mxu0 %v3695_v9  ;;  %181 = vst [vmem:[#allocation1 + $0x20] ss:$4 sm:$0xff] %v3714_v16 }
 0x13b   :  { %3111 = vmatmul.msk.f32.gmra.mxu0 %vm192_vm0, %v171_v45  ;;  %183 = vst [vmem:[#allocation1 + $0x21] ss:$4 sm:$0xff] %v3714_v16 }
 0x13c   :  { %615 = vmatpush.msra.mxu0 %v3697_v10  ;;  %185 = vst [vmem:[#allocation1 + $0x22] ss:$4 sm:$0xff] %v3714_v16 }
 0x13d   :  { %187 = vst [vmem:[#allocation1 + $0x23] ss:$4 sm:$0xff] %v3714_v16  ;;  %v3835_v16 = vld [vmem:[#allocation8 + $0x60] sm:$0xff] }
 0x13e   :  { %v300_v47 = vpop.permute.xlu0 %299  ;;  %616 = vmatpush.msra.mxu0 %v3703_v12 }
 0x13f   :  { %v3237_v46 = vpop.eup %3236  ;;  %v302_v48 = vadd.f32 %v300_v47, %v3733_v24  ;;  %v3827_v47 = vld [vmem:[#allocation8 + $0x70] sm:$0xff] }
 0x140   :  { %352 = vrot.lane.b32.xlu1 %v3237_v46, %s3646_s3  ;;  %617 = vmatpush.msra.mxu0 %v3706_v13  ;;  %v3825_v46 = vld [vmem:[#allocation8 + $0x78] sm:$0xff] }
 0x141   :  { %v3113_v49 = vmul.f32 -1.442695, %v302_v48  ;;  %397 = vmatpush.msra.mxu2 %v3825_v46  ;;  %729 = vmatpush.msra.mxu3 %v3825_v46  ;;  %v3831_v48 = vld [vmem:[#allocation8 + $0x68] sm:$0xff] }
 0x143   :  { %3238 = vpow2.f32 %v3113_v49  ;;  %398 = vmatpush.msra.mxu2 %v3827_v47  ;;  %730 = vmatpush.msra.mxu3 %v3827_v47 }
 0x145   :  { %399 = vmatpush.msra.mxu2 %v3831_v48  ;;  %731 = vmatpush.msra.mxu3 %v3831_v48 }
 0x147   :  { %400 = vmatpush.msra.mxu2 %v3835_v16  ;;  %732 = vmatpush.msra.mxu3 %v3835_v16 }
 0x149   :  { %v3239_v50 = vpop.eup %3238 }
 0x14a   :  { %v306_v51 = vadd.f32 1.0, %v3239_v50  ;;  %v3846_v50 = vld [vmem:[#allocation8 + $0x118] sm:$0xff] }
 0x14b   :  { %533 = vmatpush.msrb.mxu2 %v3846_v50 }
 0x14c   :  { %3240 = vrcp.f32 %v306_v51  ;;  %v318_v57 = vand.u32 2147483648, %v306_v51  ;;  %vm312_vm6 = vweird.f32 %v306_v51  ;;  %v316_v58 = vand.u32 2147483647, %v306_v51 }
 0x14e   :  { %v319_v60 = vor.u32 1.1754944e-38, %v318_v57  ;;  %vm317_vm8 = vcmp.eq.f32.partialorder %v316_v58, 8.507059e+37 }
 0x152   :  { %v3241_v52 = vpop.eup %3240 }
 0x153   :  { %v308_v53 = vmul.f32 %v3241_v52, %v306_v51  ;;  %vm313_vm5 = vweird.f32 %v3241_v52  ;;  %v3848_v51 = vld [vmem:[#allocation8 + $0x110] sm:$0xff] }
 0x154   :  { %vm314_vm7 = vmor %vm312_vm6, %vm313_vm5  ;;  %534 = vmatpush.msrb.mxu2 %v3848_v51  ;;  %vm548_vm6 = vcmask 254976  }
 0x155   :  { %v309_v54 = vsub.f32 1.0, %v308_v53  ;;  %v3854_v53 = vld [vmem:[#allocation8 + $0x100] sm:$0xff] }
 0x157   :  { %v310_v55 = vmul.f32 %v3241_v52, %v309_v54 }
 0x159   :  { %v311_v56 = vadd.f32 %v3241_v52, %v310_v55 }
 0x15b   :  { %v315_v59 = vsel %vm314_vm7, %v3241_v52, %v311_v56  ;;  %v3851_v52 = vld [vmem:[#allocation8 + $0x108] sm:$0xff] }
 0x15c   :  { %v320_v61 = vsel %vm317_vm8, %v319_v60, %v315_v59  ;;  %535 = vmatpush.msrb.mxu2 %v3851_v52  ;;  %v443_v60 = vpop.f32.mrf.mxu3 }
 0x15d   :  { %v350_v62 = vsub.f32 1.0, %v320_v61  ;;  %v356_v3 = vmul.f32 0.0, %v320_v61 }
 0x15e   :  { %536 = vmatpush.msrb.mxu2 %v3854_v53 }
 0x1b2   :  { %v353_v63 = vpop.permute.xlu1 %352 }
 0x1b3   :  { %v355_v1 = vmul.f32 %v353_v63, %v350_v62  ;;  %v3890_v62 = vld [vmem:[#allocation9 + $0x3] ss:$0 sm:$0xff] }
 0x1b4   :  { %4600 = vst [vmem:[#allocation21_spill] sm:$0xff] %v3890_v62 }
 0x1b5   :  { %v3744_v4 = vadd.f32 %v356_v3, %v355_v1  ;;  %v375_v3 = vpop.f32.mrf.mxu1 }
 0x1b7   :  { %379 = vst [vmem:[#allocation1] ss:$4 sm:$0xff] %v3744_v4 }
 0x1b8   :  { %v3888_v59 = vpop.f32.mrf.mxu0 }
 0x1b9   :  { %4599 = vst [vmem:[#allocation20_spill] sm:$0xff] %v3888_v59 }
 0x1be   :  { %v380_v6 = vld.sshfl [vmem:[#allocation1] sm:$0xff pattern:$0x73625140] }
 0x1bf   :  { %446 = vst [vmem:[#allocation1] ss:$4 sm:$0xff] %v3744_v4 }
 0x1c6   :  { %v447_v7 = vld.sshfl [vmem:[#allocation1] sm:$0xff pattern:$0x73625140] }
 0x1c7   :  { %494 = vst [vmem:[#allocation1] ss:$4 sm:$0xff] %v3744_v4  ;;  %448 = vrot.lane.b32.xlu0 %v447_v7, %s3646_s3  ;;  %v3896_v7 = vrot.slane %v3733_v24, 2 }
 0x1ce   :  { %v495_v8 = vld.sshfl [vmem:[#allocation1] sm:$0xff pattern:$0x73625140] }
 0x1cf   :  { %550 = vst [vmem:[#allocation1] ss:$4 sm:$0xff] %v3744_v4  ;;  %496 = vrot.lane.b32.xlu2 %v495_v8, %s3646_s3 }
 0x1d6   :  { %v551_v26 = vld.sshfl [vmem:[#allocation1] sm:$0xff pattern:$0x73625140] }
 0x1d7   :  { %596 = vst [vmem:[#allocation1] ss:$4 sm:$0xff] %v3744_v4  ;;  %552 = vrot.lane.b32.xlu1 %v551_v26, %s3646_s3 }
 0x1de   :  { %v597_v30 = vld.sshfl [vmem:[#allocation1] sm:$0xff pattern:$0x73625140] }
 0x1df   :  { %646 = vst [vmem:[#allocation1] ss:$4 sm:$0xff] %v3744_v4  ;;  %598 = vrot.lane.b32.xlu1 %v597_v30, %s3646_s3 }
 0x1e6   :  { %v647_v31 = vld.sshfl [vmem:[#allocation1] sm:$0xff pattern:$0x73625140] }
 0x1e7   :  { %648 = vrot.lane.b32.xlu2 %v647_v31, %s3646_s3 }
 0x1ef   :  { %381 = vrot.lane.b32.xlu2 %v380_v6, %s3646_s3  ;;  %v3893_v6 = vld [vmem:[#allocation9 + $0x2] ss:$0 sm:$0xff] }
 0x1f0   :  { %4601 = vst [vmem:[#allocation22_spill] sm:$0xff] %v3893_v6 }
 0x229   :  { %v497_v49 = vpop.permute.xlu2 %496 }
 0x22a   :  { %3118 = vmatmul.msk.f32.vlgmr.msra.gmra.mxu1 %vm234_vm9, %v497_v49 }
 0x22b   :  { %795 = vmatpush.msra.mxu1 %v3794_v40 }
 0x22d   :  { %796 = vmatpush.msra.mxu1 %v3796_v41 }
 0x22f   :  { %797 = vmatpush.msra.mxu1 %v3802_v43 }
 0x231   :  { %798 = vmatpush.msra.mxu1 %v3806_v44 }
 0x239   :  { %v449_v54 = vpop.permute.xlu0 %448 }
 0x23a   :  { %3116 = vmatmul.msk.f32.vlgmr.msrb.gmra.mxu0 %vm234_vm9, %v449_v54 }
 0x23b   :  { %769 = vmatpush.msrb.mxu0 %v3787_v35 }
 0x23d   :  { %770 = vmatpush.msrb.mxu0 %v3789_v36 }
 0x23f   :  { %771 = vmatpush.msrb.mxu0 %v3792_v39 }
 0x241   :  { %v649_v55 = vpop.permute.xlu2 %648  ;;  %772 = vmatpush.msrb.mxu0 %v3800_v42 }
 0x242   :  { %3123 = vmatmul.msk.f32.vlgmr.msrb.gmra.mxu1 %vm234_vm9, %v649_v55 }
 0x243   :  { %942 = vmatpush.msrb.mxu1 %v3695_v9 }
 0x245   :  { %943 = vmatpush.msrb.mxu1 %v3697_v10 }
 0x247   :  { %944 = vmatpush.msrb.mxu1 %v3703_v12 }
 0x249   :  { %v553_v56 = vpop.permute.xlu1 %552  ;;  %v382_v57 = vpop.permute.xlu2 %381  ;;  %945 = vmatpush.msrb.mxu1 %v3706_v13 }
 0x24a   :  { %3114 = vmatmul.msk.f32.vlgmr.msra.gmra.mxu2 %vm234_vm9, %v382_v57  ;;  %3119 = vmatmul.msk.f32.vlgmr.msrb.gmra.mxu3 %vm234_vm9, %v553_v56 }
 0x24b   :  { %702 = vmatpush.msra.mxu2 %v3752_v18  ;;  %861 = vmatpush.msrb.mxu3 %v3846_v50 }
 0x24d   :  { %703 = vmatpush.msra.mxu2 %v3754_v21  ;;  %862 = vmatpush.msrb.mxu3 %v3848_v51 }
 0x24f   :  { %704 = vmatpush.msra.mxu2 %v3757_v22  ;;  %863 = vmatpush.msrb.mxu3 %v3851_v52 }
 0x251   :  { %v599_v58 = vpop.permute.xlu1 %598  ;;  %705 = vmatpush.msra.mxu2 %v3760_v23  ;;  %864 = vmatpush.msrb.mxu3 %v3854_v53 }
 0x252   :  { %3121 = vmatmul.msk.f32.vlgmr.msra.gmra.mxu0 %vm234_vm9, %v599_v58  ;;  %537 = vmatmul.f32.vlgmr.msrb.gmra.mxu2 %v3644_v14 }
 0x253   :  { %841 = vmatpush.msrb.mxu2 %v3763_v25  ;;  %896 = vmatpush.msra.mxu0 %v3687_v0 }
 0x255   :  { %842 = vmatpush.msrb.mxu2 %v3769_v27  ;;  %897 = vmatpush.msra.mxu0 %v3689_v2 }
 0x257   :  { %843 = vmatpush.msrb.mxu2 %v3772_v28  ;;  %898 = vmatpush.msra.mxu0 %v3692_v5 }
 0x259   :  { %844 = vmatpush.msrb.mxu2 %v3775_v29  ;;  %899 = vmatpush.msra.mxu0 %v3699_v11  ;;  %v3905_v11 = vld [vmem:[#allocation9 + $0x4] ss:$0 sm:$0xff] }
 0x2b7   :  { %v469_v14 = vpop.f32.mrf.mxu0 }
 0x2b8   :  { %v470_v61 = vadd.f32 %v469_v14, %v443_v60  ;;  %v517_v60 = vpop.f32.mrf.mxu1 }
 0x2ba   :  { %v473_v63 = vadd.f32 %v3890_v62, %v470_v61 }
 0x2bc   :  { %v3117_v1 = vmul.f32 -1.442695, %v473_v63 }
 0x2be   :  { %3242 = vpow2.f32 %v3117_v1 }
 0x2c4   :  { %v3243_v38 = vpop.eup %3242 }
 0x2c5   :  { %v477_v49 = vadd.f32 1.0, %v3243_v38 }
 0x2c7   :  { %vm483_vm3 = vweird.f32 %v477_v49 }
 0x2cd   :  { %v402_v8 = vpop.f32.mrf.mxu2  ;;  %v573_v26 = vpop.f32.mrf.mxu3 }
 0x2ce   :  { %v403_v30 = vadd.f32 %v402_v8, %v375_v3  ;;  %v576_v31 = vadd.f32 %v573_v26, %v3896_v7 }
 0x2cf   :  { %v619_v33 = vpop.f32.mrf.mxu0 }
 0x2d0   :  { %v406_v34 = vadd.f32 %v3893_v6, %v403_v30  ;;  %v3120_v37 = vmul.f32 -1.442695, %v576_v31  ;;  %623 = vrot.lane.b32.xlu1 %v619_v33, %s3640_s27  ;;  %v3901_v30 = vld [vmem:[#allocation9 + $0x5] ss:$0 sm:$0xff]  ;;  %v669_v33 = vpop.f32.mrf.mxu1 }
 0x2d1   :  { %4602 = vst [vmem:[#allocation23_spill] sm:$0xff] %v3901_v30  ;;  %v670_v24 = vadd.f32 %v3736_v32, %v669_v33  ;;  %v518_v33 = vadd.f32 %v3905_v11, %v517_v60 }
 0x2d2   :  { %v3115_v45 = vmul.f32 -1.442695, %v406_v34  ;;  %3244 = vpow2.f32 %v3120_v37 }
 0x2d4   :  { %3246 = vpow2.f32 %v3115_v45 }
 0x2d5   :  { %3248 = vrcp.f32 %v477_v49  ;;  %v538_v37 = vpop.f32.mrf.mxu2 }
 0x2d8   :  { %v3245_v54 = vpop.eup %3244 }
 0x2d9   :  { %v580_v55 = vadd.f32 1.0, %v3245_v54 }
 0x2da   :  { %v3247_v56 = vpop.eup %3246 }
 0x2db   :  { %v410_v57 = vadd.f32 1.0, %v3247_v56  ;;  %3250 = vrcp.f32 %v580_v55  ;;  %v3249_v58 = vpop.eup %3248  ;;  %v592_v31 = vand.u32 2147483648, %v580_v55  ;;  %v590_v45 = vand.u32 2147483647, %v580_v55 }
 0x2dc   :  { %v479_v61 = vmul.f32 %v3249_v58, %v477_v49  ;;  %vm586_vm11 = vweird.f32 %v580_v55  ;;  %vm484_vm2 = vweird.f32 %v3249_v58 }
 0x2dd   :  { %3252 = vrcp.f32 %v410_v57  ;;  %v422_v54 = vand.u32 2147483648, %v410_v57  ;;  %v420_v59 = vand.u32 2147483647, %v410_v57  ;;  %vm416_vm14 = vweird.f32 %v410_v57  ;;  %vm485_vm4 = vmor %vm483_vm3, %vm484_vm2 }
 0x2de   :  { %v480_v26 = vsub.f32 1.0, %v479_v61  ;;  %v539_v61 = vadd.f32 %v3901_v30, %v538_v37  ;;  %vm591_vm15 = vcmp.eq.f32.partialorder %v590_v45, 8.507059e+37  ;;  %v489_v37 = vand.u32 2147483648, %v477_v49 }
 0x2df   :  { %v423_v5 = vor.u32 1.1754944e-38, %v422_v54  ;;  %vm421_vm1 = vcmp.eq.f32.partialorder %v420_v59, 8.507059e+37 }
 0x2e0   :  { %v481_v6 = vmul.f32 %v3249_v58, %v480_v26 }
 0x2e1   :  { %v3251_v14 = vpop.eup %3250 }
 0x2e2   :  { %v582_v63 = vmul.f32 %v3251_v14, %v580_v55  ;;  %vm587_vm10 = vweird.f32 %v3251_v14 }
 0x2e3   :  { %v3253_v1 = vpop.eup %3252  ;;  %vm588_vm13 = vmor %vm586_vm11, %vm587_vm10 }
 0x2e4   :  { %v412_v3 = vmul.f32 %v3253_v1, %v410_v57  ;;  %v583_v8 = vsub.f32 1.0, %v582_v63  ;;  %vm417_vm12 = vweird.f32 %v3253_v1  ;;  %v593_v63 = vor.u32 1.1754944e-38, %v592_v31 }
 0x2e5   :  { %vm418_vm0 = vmor %vm416_vm14, %vm417_vm12  ;;  %v487_v31 = vand.u32 2147483647, %v477_v49 }
 0x2e6   :  { %v413_v34 = vsub.f32 1.0, %v412_v3  ;;  %v584_v38 = vmul.f32 %v3251_v14, %v583_v8 }
 0x2e7   :  { %vm488_vm5 = vcmp.eq.f32.partialorder %v487_v31, 8.507059e+37 }
 0x2e8   :  { %v414_v56 = vmul.f32 %v3253_v1, %v413_v34  ;;  %v585_v62 = vadd.f32 %v3251_v14, %v584_v38  ;;  %v482_v38 = vadd.f32 %v3249_v58, %v481_v6 }
 0x2ea   :  { %v415_v3 = vadd.f32 %v3253_v1, %v414_v56  ;;  %v589_v8 = vsel %vm588_vm13, %v3251_v14, %v585_v62  ;;  %v486_v57 = vsel %vm485_vm4, %v3249_v58, %v482_v38  ;;  %v490_v14 = vor.u32 1.1754944e-38, %v489_v37 }
 0x2eb   :  { %v594_v55 = vsel %vm591_vm15, %v593_v63, %v589_v8 }
 0x2ec   :  { %v419_v34 = vsel %vm418_vm0, %v3253_v1, %v415_v3  ;;  %v672_v2 = vmul.f32 %v670_v24, %v594_v55  ;;  %v491_v1 = vsel %vm488_vm5, %v490_v14, %v486_v57 }
 0x2ed   :  { %v424_v26 = vsel %vm421_vm1, %v423_v5, %v419_v34  ;;  %v544_v59 = vsub.f32 1.0, %v491_v1  ;;  %v546_v5 = vmul.f32 0.0, %v491_v1 }
 0x2ee   :  { %v541_v30 = vmul.f32 %v539_v61, %v424_v26  ;;  %674 = vrot.lane.b32.xlu0 %v672_v2, %s3645_s2 }
 0x2f0   :  { %v542_v62 = vadd.f32 %v541_v30, %v518_v33 }
 0x2f2   :  { %3254 = vtanh.f32 %v542_v62 }
 0x2f8   :  { %v3255_v24 = vpop.eup %3254 }
 0x2f9   :  { %v545_v45 = vmul.f32 %v3255_v24, %v544_v59 }
 0x2fb   :  { %v3909_v6 = vadd.f32 %v546_v5, %v545_v45 }
 0x2fd   :  { %549 = vst.msk [vmem:[#allocation2] sm:$0x3] %vm548_vm6, %v3909_v6  ;;  %3124 = vmatmul.msk.f32.vlgmr.msra.gmra.mxu2 %vm234_vm9, %v3909_v6  ;;  %3127 = vmatmul.msk.f32.vlgmr.msrb.gmra.mxu0 %vm234_vm9, %v3909_v6 }
 0x2fe   :  { %992 = vmatpush.msra.mxu2 %v3711_v15  ;;  %1057 = vmatpush.msrb.mxu0 %v3825_v46 }
 0x300   :  { %993 = vmatpush.msra.mxu2 %v3717_v17  ;;  %1058 = vmatpush.msrb.mxu0 %v3827_v47 }
 0x302   :  { %994 = vmatpush.msra.mxu2 %v3720_v19  ;;  %1059 = vmatpush.msrb.mxu0 %v3831_v48 }
 0x304   :  { %995 = vmatpush.msra.mxu2 %v3725_v20  ;;  %1060 = vmatpush.msrb.mxu0 %v3835_v16 }
 0x342   :  { %v624_v60 = vpop.permute.xlu1 %623 }
 0x343   :  { %v626_v30 = vadd.f32 %v624_v60, %v3896_v7 }
 0x345   :  { %v3122_v54 = vmul.f32 -1.442695, %v626_v30 }
 0x360   :  { %v675_v2 = vpop.permute.xlu0 %674 }
 0x361   :  { %v677_v49 = vadd.f32 %v675_v2, %v3896_v7 }
 0x363   :  { %3256 = vtanh.f32 %v677_v49 }
 0x364   :  { %3258 = vpow2.f32 %v3122_v54 }
 0x369   :  { %v3257_v58 = vpop.eup %3256 }
 0x36a   :  { %681 = vrot.lane.b32.xlu2 %v3257_v58, %s3646_s3  ;;  %v3259_v56 = vpop.eup %3258 }
 0x36b   :  { %v630_v61 = vadd.f32 1.0, %v3259_v56 }
 0x36d   :  { %3260 = vrcp.f32 %v630_v61  ;;  %v642_v26 = vand.u32 2147483648, %v630_v61  ;;  %vm636_vm8 = vweird.f32 %v630_v61  ;;  %v640_v38 = vand.u32 2147483647, %v630_v61 }
 0x36f   :  { %v643_v37 = vor.u32 1.1754944e-38, %v642_v26  ;;  %vm641_vm11 = vcmp.eq.f32.partialorder %v640_v38, 8.507059e+37 }
 0x373   :  { %v3261_v63 = vpop.eup %3260 }
 0x374   :  { %v632_v3 = vmul.f32 %v3261_v63, %v630_v61  ;;  %vm637_vm7 = vweird.f32 %v3261_v63  ;;  %v4606_v61 = vld [vmem:[#allocation19_spill] sm:$0xff] }
 0x375   :  { %vm638_vm10 = vmor %vm636_vm8, %vm637_vm7 }
 0x376   :  { %v633_v8 = vsub.f32 1.0, %v632_v3 }
 0x378   :  { %v634_v55 = vmul.f32 %v3261_v63, %v633_v8 }
 0x37a   :  { %v635_v34 = vadd.f32 %v3261_v63, %v634_v55  ;;  %v774_v56 = vpop.f32.mrf.mxu0 }
 0x37c   :  { %v639_v33 = vsel %vm638_vm10, %v3261_v63, %v635_v34  ;;  %v3980_v63 = vrot.slane %v4606_v61, 4 }
 0x37d   :  { %v644_v31 = vsel %vm641_vm11, %v643_v37, %v639_v33 }
 0x37e   :  { %v679_v7 = vsub.f32 1.0, %v644_v31  ;;  %v685_v57 = vmul.f32 %v644_v31, %v3744_v4 }
 0x380   :  { %v707_v34 = vpop.f32.mrf.mxu2 }
 0x3c4   :  { %v682_v62 = vpop.permute.xlu2 %681 }
 0x3c5   :  { %v684_v14 = vmul.f32 %v682_v62, %v679_v7 }
 0x3c7   :  { %v3929_v1 = vadd.f32 %v685_v57, %v684_v14  ;;  %v4608_v57 = vld [vmem:[#allocation21_spill] sm:$0xff] }
 0x3c9   :  { %711 = vst [vmem:[#allocation1] ss:$4 sm:$0xff] %v3929_v1 }
 0x3d0   :  { %v712_v59 = vld.sshfl [vmem:[#allocation1] sm:$0xff pattern:$0x73625140] }
 0x3d1   :  { %777 = vst [vmem:[#allocation1] ss:$4 sm:$0xff] %v3929_v1 }
 0x3d8   :  { %v778_v24 = vld.sshfl [vmem:[#allocation1] sm:$0xff pattern:$0x73625140] }
 0x3d9   :  { %823 = vst [vmem:[#allocation1] ss:$4 sm:$0xff] %v3929_v1 }
 0x3e0   :  { %v824_v45 = vld.sshfl [vmem:[#allocation1] sm:$0xff pattern:$0x73625140] }
 0x3e1   :  { %878 = vst [vmem:[#allocation1] ss:$4 sm:$0xff] %v3929_v1  ;;  %825 = vrot.lane.b32.xlu1 %v824_v45, %s3646_s3 }
 0x3e8   :  { %v879_v5 = vld.sshfl [vmem:[#allocation1] sm:$0xff pattern:$0x73625140] }
 0x3e9   :  { %924 = vst [vmem:[#allocation1] ss:$4 sm:$0xff] %v3929_v1  ;;  %880 = vrot.lane.b32.xlu0 %v879_v5, %s3646_s3 }
 0x3f0   :  { %v925_v4 = vld.sshfl [vmem:[#allocation1] sm:$0xff pattern:$0x73625140] }
 0x3f1   :  { %974 = vst [vmem:[#allocation1] ss:$4 sm:$0xff] %v3929_v1  ;;  %779 = vrot.lane.b32.xlu0 %v778_v24, %s3646_s3  ;;  %926 = vrot.lane.b32.xlu1 %v925_v4, %s3646_s3 }
 0x3f8   :  { %v975_v2 = vld.sshfl [vmem:[#allocation1] sm:$0xff pattern:$0x73625140] }
 0x3f9   :  { %976 = vrot.lane.b32.xlu2 %v975_v2, %s3646_s3 }
 0x401   :  { %713 = vrot.lane.b32.xlu2 %v712_v59, %s3646_s3 }
 0x453   :  { %v826_v49 = vpop.permute.xlu1 %825  ;;  %v977_v58 = vpop.permute.xlu2 %976 }
 0x454   :  { %3130 = vmatmul.msk.f32.vlgmr.msrb.gmra.mxu2 %vm234_vm9, %v826_v49 }
 0x455   :  { %1123 = vmatpush.msrb.mxu2 %v3794_v40 }
 0x457   :  { %1124 = vmatpush.msrb.mxu2 %v3796_v41 }
 0x459   :  { %1125 = vmatpush.msrb.mxu2 %v3802_v43 }
 0x45b   :  { %v881_v60 = vpop.permute.xlu0 %880  ;;  %v714_v30 = vpop.permute.xlu2 %713  ;;  %1126 = vmatpush.msrb.mxu2 %v3806_v44 }
 0x45c   :  { %3125 = vmatmul.msk.f32.vlgmr.msra.gmra.mxu3 %vm234_vm9, %v714_v30  ;;  %3132 = vmatmul.msk.f32.vlgmr.msra.gmra.mxu0 %vm234_vm9, %v881_v60 }
 0x45d   :  { %3136 = vmatmul.msk.f32.vlgmr.msra.gmra.mxu2 %vm234_vm9, %v977_v58  ;;  %1030 = vmatpush.msra.mxu3 %v3752_v18 }
 0x45e   :  { %1189 = vmatpush.msra.mxu0 %v3846_v50  ;;  %1270 = vmatpush.msra.mxu2 %v3695_v9 }
 0x45f   :  { %1031 = vmatpush.msra.mxu3 %v3754_v21 }
 0x460   :  { %1190 = vmatpush.msra.mxu0 %v3848_v51  ;;  %1271 = vmatpush.msra.mxu2 %v3697_v10  ;;  %v4603_v10 = vld [vmem:[#allocation16_spill] sm:$0xff] }
 0x461   :  { %1032 = vmatpush.msra.mxu3 %v3757_v22 }
 0x462   :  { %1191 = vmatpush.msra.mxu0 %v3851_v52  ;;  %1272 = vmatpush.msra.mxu2 %v3703_v12  ;;  %v4604_v12 = vld [vmem:[#allocation17_spill] sm:$0xff] }
 0x463   :  { %v780_v54 = vpop.permute.xlu0 %779  ;;  %1033 = vmatpush.msra.mxu3 %v3760_v23  ;;  %v927_v9 = vpop.permute.xlu1 %926 }
 0x464   :  { %3128 = vmatmul.msk.f32.vlgmr.msra.gmra.mxu1 %vm234_vm9, %v780_v54  ;;  %3131 = vmatmul.msk.f32.vlgmr.msrb.gmra.mxu3 %vm234_vm9, %v3909_v6 }
 0x465   :  { %1097 = vmatpush.msra.mxu1 %v3787_v35  ;;  %1169 = vmatpush.msrb.mxu3 %v3763_v25 }
 0x466   :  { %1192 = vmatpush.msra.mxu0 %v3854_v53  ;;  %1273 = vmatpush.msra.mxu2 %v3706_v13  ;;  %v4605_v13 = vld [vmem:[#allocation18_spill] sm:$0xff] }
 0x467   :  { %1098 = vmatpush.msra.mxu1 %v3789_v36  ;;  %1170 = vmatpush.msrb.mxu3 %v3769_v27 }
 0x469   :  { %1099 = vmatpush.msra.mxu1 %v3792_v39  ;;  %1171 = vmatpush.msrb.mxu3 %v3772_v28 }
 0x46b   :  { %1100 = vmatpush.msra.mxu1 %v3800_v42  ;;  %1172 = vmatpush.msrb.mxu3 %v3775_v29 }
 0x46c   :  { %3134 = vmatmul.msk.f32.vlgmr.msrb.gmra.mxu1 %vm234_vm9, %v927_v9 }
 0x46d   :  { %1224 = vmatpush.msrb.mxu1 %v3687_v0  ;;  %v4607_v0 = vld [vmem:[#allocation22_spill] sm:$0xff] }
 0x46f   :  { %1225 = vmatpush.msrb.mxu1 %v4603_v10 }
 0x471   :  { %1226 = vmatpush.msrb.mxu1 %v4604_v12 }
 0x473   :  { %1227 = vmatpush.msrb.mxu1 %v4605_v13 }
 0x4d7   :  { %v846_v45 = vpop.f32.mrf.mxu2 }
 0x4d9   :  { %v901_v3 = vpop.f32.mrf.mxu0 }
 0x4da   :  { %v904_v8 = vadd.f32 %v901_v3, %v3980_v63 }
 0x4dc   :  { %v3133_v55 = vmul.f32 -1.442695, %v904_v8 }
 0x4de   :  { %3262 = vpow2.f32 %v3133_v55 }
 0x4df   :  { %v734_v26 = vpop.f32.mrf.mxu3 }
 0x4e0   :  { %v735_v38 = vadd.f32 %v734_v26, %v707_v34  ;;  %v997_v13 = vpop.f32.mrf.mxu2 }
 0x4e1   :  { %v800_v33 = vpop.f32.mrf.mxu1  ;;  %v998_v34 = vadd.f32 %v3736_v32, %v997_v13 }
 0x4e2   :  { %v737_v37 = vadd.f32 %v4607_v0, %v735_v38  ;;  %v801_v31 = vadd.f32 %v800_v33, %v774_v56 }
 0x4e4   :  { %v3263_v7 = vpop.eup %3262  ;;  %v3126_v62 = vmul.f32 -1.442695, %v737_v37  ;;  %v803_v14 = vadd.f32 %v4608_v57, %v801_v31 }
 0x4e5   :  { %v908_v59 = vadd.f32 1.0, %v3263_v7 }
 0x4e6   :  { %3264 = vpow2.f32 %v3126_v62  ;;  %v3129_v24 = vmul.f32 -1.442695, %v803_v14 }
 0x4e7   :  { %3266 = vrcp.f32 %v908_v59  ;;  %v920_v9 = vand.u32 2147483648, %v908_v59  ;;  %v918_v12 = vand.u32 2147483647, %v908_v59  ;;  %vm914_vm13 = vweird.f32 %v908_v59 }
 0x4e8   :  { %3268 = vpow2.f32 %v3129_v24 }
 0x4e9   :  { %v947_v5 = vpop.f32.mrf.mxu1  ;;  %v921_v8 = vor.u32 1.1754944e-38, %v920_v9  ;;  %vm919_vm15 = vcmp.eq.f32.partialorder %v918_v12, 8.507059e+37  ;;  %v847_v12 = vadd.f32 %v3905_v11, %v846_v45 }
 0x4ea   :  { %951 = vrot.lane.b32.xlu1 %v947_v5, %s3640_s27 }
 0x4ec   :  { %v3265_v4 = vpop.eup %3264 }
 0x4ed   :  { %v3267_v2 = vpop.eup %3266  ;;  %v741_v49 = vadd.f32 1.0, %v3265_v4 }
 0x4ee   :  { %v3269_v58 = vpop.eup %3268  ;;  %v910_v60 = vmul.f32 %v3267_v2, %v908_v59  ;;  %vm915_vm12 = vweird.f32 %v3267_v2  ;;  %v866_v59 = vpop.f32.mrf.mxu3 }
 0x4ef   :  { %3270 = vrcp.f32 %v741_v49  ;;  %v807_v30 = vadd.f32 1.0, %v3269_v58  ;;  %vm916_vm14 = vmor %vm914_vm13, %vm915_vm12  ;;  %v753_v62 = vand.u32 2147483648, %v741_v49  ;;  %v751_v5 = vand.u32 2147483647, %v741_v49 }
 0x4f0   :  { %v911_v54 = vsub.f32 1.0, %v910_v60  ;;  %vm747_vm1 = vweird.f32 %v741_v49  ;;  %v4609_v60 = vld [vmem:[#allocation23_spill] sm:$0xff] }
 0x4f1   :  { %3272 = vrcp.f32 %v807_v30  ;;  %vm752_vm3 = vcmp.eq.f32.partialorder %v751_v5, 8.507059e+37  ;;  %v819_v13 = vand.u32 2147483648, %v807_v30  ;;  %vm813_vm5 = vweird.f32 %v807_v30 }
 0x4f2   :  { %v912_v10 = vmul.f32 %v3267_v2, %v911_v54  ;;  %v867_v54 = vadd.f32 %v4609_v60, %v866_v59 }
 0x4f4   :  { %v913_v56 = vadd.f32 %v3267_v2, %v912_v10 }
 0x4f5   :  { %v3271_v3 = vpop.eup %3270 }
 0x4f6   :  { %v917_v55 = vsel %vm916_vm14, %v3267_v2, %v913_v56  ;;  %v743_v26 = vmul.f32 %v3271_v3, %v741_v49  ;;  %vm748_vm0 = vweird.f32 %v3271_v3  ;;  %v754_v2 = vor.u32 1.1754944e-38, %v753_v62 }
 0x4f7   :  { %v3273_v38 = vpop.eup %3272  ;;  %v922_v33 = vsel %vm919_vm15, %v921_v8, %v917_v55  ;;  %vm749_vm2 = vmor %vm747_vm1, %vm748_vm0  ;;  %v817_v8 = vand.u32 2147483647, %v807_v30 }
 0x4f8   :  { %v1000_v37 = vmul.f32 %v998_v34, %v922_v33  ;;  %v809_v31 = vmul.f32 %v3273_v38, %v807_v30  ;;  %v744_v7 = vsub.f32 1.0, %v743_v26  ;;  %vm814_vm4 = vweird.f32 %v3273_v38 }
 0x4f9   :  { %vm815_vm7 = vmor %vm813_vm5, %vm814_vm4  ;;  %v820_v26 = vor.u32 1.1754944e-38, %v819_v13  ;;  %vm818_vm8 = vcmp.eq.f32.partialorder %v817_v8, 8.507059e+37 }
 0x4fa   :  { %v810_v14 = vsub.f32 1.0, %v809_v31  ;;  %v745_v24 = vmul.f32 %v3271_v3, %v744_v7  ;;  %1002 = vrot.lane.b32.xlu0 %v1000_v37, %s3645_s2 }
 0x4fc   :  { %v811_v4 = vmul.f32 %v3273_v38, %v810_v14  ;;  %v746_v58 = vadd.f32 %v3271_v3, %v745_v24 }
 0x4fe   :  { %v750_v32 = vsel %vm749_vm2, %v3271_v3, %v746_v58  ;;  %v812_v10 = vadd.f32 %v3273_v38, %v811_v4 }
 0x4ff   :  { %v755_v9 = vsel %vm752_vm3, %v754_v2, %v750_v32 }
 0x500   :  { %v869_v56 = vmul.f32 %v867_v54, %v755_v9  ;;  %v816_v34 = vsel %vm815_vm7, %v3273_v38, %v812_v10 }
 0x501   :  { %v821_v49 = vsel %vm818_vm8, %v820_v26, %v816_v34 }
 0x502   :  { %v870_v55 = vadd.f32 %v869_v56, %v847_v12  ;;  %v872_v3 = vsub.f32 1.0, %v821_v49  ;;  %v874_v31 = vmul.f32 %v821_v49, %v3909_v6  ;;  %v4035_v49 = vld [vmem:[#allocation8 + $0x38] sm:$0xff] }
 0x504   :  { %3274 = vtanh.f32 %v870_v55 }
 0x50a   :  { %v3275_v33 = vpop.eup %3274 }
 0x50b   :  { %v873_v37 = vmul.f32 %v3275_v33, %v872_v3 }
 0x50d   :  { %v3991_v7 = vadd.f32 %v874_v31, %v873_v37 }
 0x50f   :  { %877 = vst.msk [vmem:[#allocation2 + $0x2] sm:$0x3] %vm548_vm6, %v3991_v7  ;;  %3137 = vmatmul.msk.f32.vlgmr.msra.gmra.mxu3 %vm234_vm9, %v3991_v7  ;;  %3140 = vmatmul.msk.f32.vlgmr.msra.gmra.mxu1 %vm234_vm9, %v3991_v7 }
 0x510   :  { %1320 = vmatpush.msra.mxu3 %v3711_v15  ;;  %1385 = vmatpush.msra.mxu1 %v3825_v46 }
 0x512   :  { %1321 = vmatpush.msra.mxu3 %v3717_v17  ;;  %1386 = vmatpush.msra.mxu1 %v3827_v47 }
 0x514   :  { %1322 = vmatpush.msra.mxu3 %v3720_v19  ;;  %1387 = vmatpush.msra.mxu1 %v3831_v48 }
 0x516   :  { %1323 = vmatpush.msra.mxu3 %v3725_v20  ;;  %1388 = vmatpush.msra.mxu1 %v3835_v16 }
 0x55c   :  { %v952_v15 = vpop.permute.xlu1 %951 }
 0x55d   :  { %v954_v17 = vadd.f32 %v952_v15, %v3980_v63 }
 0x55f   :  { %v3135_v46 = vmul.f32 -1.442695, %v954_v17 }
 0x56c   :  { %v1003_v6 = vpop.permute.xlu0 %1002 }
 0x56d   :  { %v1005_v45 = vadd.f32 %v1003_v6, %v3980_v63 }
 0x56f   :  { %3276 = vtanh.f32 %v1005_v45 }
 0x570   :  { %3278 = vpow2.f32 %v3135_v46 }
 0x575   :  { %v3277_v30 = vpop.eup %3276 }
 0x576   :  { %1009 = vrot.lane.b32.xlu2 %v3277_v30, %s3646_s3  ;;  %v3279_v47 = vpop.eup %3278 }
 0x577   :  { %v958_v19 = vadd.f32 1.0, %v3279_v47 }
 0x579   :  { %3280 = vrcp.f32 %v958_v19  ;;  %v970_v14 = vand.u32 2147483648, %v958_v19  ;;  %vm964_vm11 = vweird.f32 %v958_v19  ;;  %v968_v24 = vand.u32 2147483647, %v958_v19 }
 0x57b   :  { %v971_v59 = vor.u32 1.1754944e-38, %v970_v14  ;;  %vm969_vm13 = vcmp.eq.f32.partialorder %v968_v24, 8.507059e+37 }
 0x57f   :  { %v3281_v48 = vpop.eup %3280 }
 0x580   :  { %v960_v38 = vmul.f32 %v3281_v48, %v958_v19  ;;  %vm965_vm10 = vweird.f32 %v3281_v48 }
 0x581   :  { %vm966_vm12 = vmor %vm964_vm11, %vm965_vm10 }
 0x582   :  { %v961_v20 = vsub.f32 1.0, %v960_v38 }
 0x584   :  { %v962_v62 = vmul.f32 %v3281_v48, %v961_v20 }
 0x586   :  { %v963_v16 = vadd.f32 %v3281_v48, %v962_v62 }
 0x588   :  { %v967_v5 = vsel %vm966_vm12, %v3281_v48, %v963_v16 }
 0x589   :  { %v972_v4 = vsel %vm969_vm13, %v971_v59, %v967_v5 }
 0x58a   :  { %v1007_v63 = vsub.f32 1.0, %v972_v4  ;;  %v1013_v2 = vmul.f32 %v972_v4, %v3929_v1 }
 0x5d0   :  { %v1010_v58 = vpop.permute.xlu2 %1009 }
 0x5d1   :  { %v1012_v32 = vmul.f32 %v1010_v58, %v1007_v63  ;;  %v4084_v63 = vld [vmem:[#allocation9 + $0x1] ss:$0 sm:$0xff] }
 0x5d3   :  { %v4011_v54 = vadd.f32 %v1013_v2, %v1012_v32 }
 0x5d5   :  { %1039 = vst [vmem:[#allocation1] ss:$4 sm:$0xff] %v4011_v54 }
 0x5dc   :  { %v1040_v9 = vld.sshfl [vmem:[#allocation1] sm:$0xff pattern:$0x73625140] }
 0x5dd   :  { %1105 = vst [vmem:[#allocation1] ss:$4 sm:$0xff] %v4011_v54 }
 0x5e4   :  { %v1106_v10 = vld.sshfl [vmem:[#allocation1] sm:$0xff pattern:$0x73625140] }
 0x5e5   :  { %1151 = vst [vmem:[#allocation1] ss:$4 sm:$0xff] %v4011_v54 }
 0x5ec   :  { %v1152_v12 = vld.sshfl [vmem:[#allocation1] sm:$0xff pattern:$0x73625140] }
 0x5ed   :  { %1206 = vst [vmem:[#allocation1] ss:$4 sm:$0xff] %v4011_v54  ;;  %1153 = vrot.lane.b32.xlu1 %v1152_v12, %s3646_s3 }
 0x5f4   :  { %v1207_v13 = vld.sshfl [vmem:[#allocation1] sm:$0xff pattern:$0x73625140] }
 0x5f5   :  { %1252 = vst [vmem:[#allocation1] ss:$4 sm:$0xff] %v4011_v54  ;;  %1208 = vrot.lane.b32.xlu0 %v1207_v13, %s3646_s3 }
 0x5fc   :  { %v1253_v1 = vld.sshfl [vmem:[#allocation1] sm:$0xff pattern:$0x73625140] }
 0x5fd   :  { %1302 = vst [vmem:[#allocation1] ss:$4 sm:$0xff] %v4011_v54  ;;  %1107 = vrot.lane.b32.xlu0 %v1106_v10, %s3646_s3  ;;  %1254 = vrot.lane.b32.xlu1 %v1253_v1, %s3646_s3 }
 0x604   :  { %v1303_v56 = vld.sshfl [vmem:[#allocation1] sm:$0xff pattern:$0x73625140] }
 0x605   :  { %1304 = vrot.lane.b32.xlu2 %v1303_v56, %s3646_s3 }
 0x60d   :  { %1041 = vrot.lane.b32.xlu2 %v1040_v9, %s3646_s3 }
 0x65f   :  { %v1154_v8 = vpop.permute.xlu1 %1153  ;;  %v1305_v55 = vpop.permute.xlu2 %1304 }
 0x660   :  { %3143 = vmatmul.msk.f32.vlgmr.msrb.gmra.mxu3 %vm234_vm9, %v1154_v8 }
 0x661   :  { %1451 = vmatpush.msrb.mxu3 %v3794_v40  ;;  %v4040_v40 = vld [vmem:[#allocation8 + $0x30] sm:$0xff] }
 0x663   :  { %1452 = vmatpush.msrb.mxu3 %v3796_v41  ;;  %v4045_v41 = vld [vmem:[#allocation8 + $0x28] sm:$0xff] }
 0x665   :  { %1453 = vmatpush.msrb.mxu3 %v3802_v43 }
 0x667   :  { %v1209_v34 = vpop.permute.xlu0 %1208  ;;  %v1042_v26 = vpop.permute.xlu2 %1041  ;;  %1454 = vmatpush.msrb.mxu3 %v3806_v44 }
 0x668   :  { %3138 = vmatmul.msk.f32.vlgmr.msrb.gmra.mxu0 %vm234_vm9, %v1042_v26  ;;  %3145 = vmatmul.msk.f32.vlgmr.msrb.gmra.mxu1 %vm234_vm9, %v1209_v34 }
 0x669   :  { %3149 = vmatmul.msk.f32.vlgmr.msra.gmra.mxu3 %vm234_vm9, %v1305_v55  ;;  %1358 = vmatpush.msrb.mxu0 %v3752_v18 }
 0x66a   :  { %1517 = vmatpush.msrb.mxu1 %v3846_v50  ;;  %1598 = vmatpush.msra.mxu3 %v4035_v49 }
 0x66b   :  { %1359 = vmatpush.msrb.mxu0 %v3754_v21  ;;  %v4055_v21 = vld [vmem:[#allocation8 + $0x20] sm:$0xff] }
 0x66c   :  { %1518 = vmatpush.msrb.mxu1 %v3848_v51  ;;  %1599 = vmatpush.msra.mxu3 %v4040_v40 }
 0x66d   :  { %1360 = vmatpush.msrb.mxu0 %v3757_v22 }
 0x66e   :  { %1519 = vmatpush.msrb.mxu1 %v3851_v52  ;;  %1600 = vmatpush.msra.mxu3 %v4045_v41 }
 0x66f   :  { %v1108_v18 = vpop.permute.xlu0 %1107  ;;  %1361 = vmatpush.msrb.mxu0 %v3760_v23  ;;  %v1255_v22 = vpop.permute.xlu1 %1254  ;;  %v4065_v23 = vld [vmem:[#allocation8 + $0x18] sm:$0xff] }
 0x670   :  { %3141 = vmatmul.msk.f32.vlgmr.msrb.gmra.mxu2 %vm234_vm9, %v1108_v18  ;;  %3144 = vmatmul.msk.f32.vlgmr.msra.gmra.mxu0 %vm234_vm9, %v3991_v7 }
 0x671   :  { %1425 = vmatpush.msrb.mxu2 %v3787_v35  ;;  %1497 = vmatpush.msra.mxu0 %v3763_v25  ;;  %v4068_v25 = vld [vmem:[#allocation8 + $0x10] sm:$0xff]  ;;  %v1102_v35 = vpop.f32.mrf.mxu1 }
 0x672   :  { %1520 = vmatpush.msrb.mxu1 %v3854_v53  ;;  %1601 = vmatpush.msra.mxu3 %v4055_v21 }
 0x673   :  { %1426 = vmatpush.msrb.mxu2 %v3789_v36  ;;  %1498 = vmatpush.msra.mxu0 %v3769_v27  ;;  %v4071_v27 = vld [vmem:[#allocation8 + $0x8] sm:$0xff]  ;;  %v4078_v36 = vrot.slane %v4606_v61, 6 }
 0x675   :  { %1427 = vmatpush.msrb.mxu2 %v3792_v39  ;;  %1499 = vmatpush.msra.mxu0 %v3772_v28  ;;  %v4074_v28 = vld [vmem:[#allocation8] sm:$0xff] }
 0x676   :  { %4610 = vst [vmem:[#allocation16_spill] sm:$0xff] %v4074_v28 }
 0x677   :  { %1428 = vmatpush.msrb.mxu2 %v3800_v42  ;;  %1500 = vmatpush.msra.mxu0 %v3775_v29  ;;  %v1035_v29 = vpop.f32.mrf.mxu3 }
 0x678   :  { %3147 = vmatmul.msk.f32.vlgmr.msra.gmra.mxu2 %vm234_vm9, %v1255_v22 }
 0x679   :  { %1552 = vmatpush.msra.mxu2 %v4065_v23 }
 0x67b   :  { %1553 = vmatpush.msra.mxu2 %v4068_v25 }
 0x67d   :  { %1554 = vmatpush.msra.mxu2 %v4071_v27 }
 0x67f   :  { %1555 = vmatpush.msra.mxu2 %v4074_v28 }
 0x6e3   :  { %v1174_v6 = vpop.f32.mrf.mxu3 }
 0x6e4   :  { %v1175_v18 = vadd.f32 %v3905_v11, %v1174_v6  ;;  %v4108_v6 = vld [vmem:[#allocation8 + $0x70] sm:$0xff] }
 0x6e5   :  { %v1062_v39 = vpop.f32.mrf.mxu0  ;;  %v1229_v42 = vpop.f32.mrf.mxu1 }
 0x6e6   :  { %v1063_v43 = vadd.f32 %v1062_v39, %v1035_v29  ;;  %v1232_v44 = vadd.f32 %v1229_v42, %v4078_v36 }
 0x6e8   :  { %v1065_v50 = vadd.f32 %v4607_v0, %v1063_v43  ;;  %v3146_v51 = vmul.f32 -1.442695, %v1232_v44 }
 0x6ea   :  { %v3139_v52 = vmul.f32 -1.442695, %v1065_v50  ;;  %3282 = vpow2.f32 %v3146_v51 }
 0x6ec   :  { %3284 = vpow2.f32 %v3139_v52  ;;  %v1325_v62 = vpop.f32.mrf.mxu3 }
 0x6ed   :  { %v1326_v58 = vadd.f32 %v4084_v63, %v1325_v62  ;;  %v1194_v10 = vpop.f32.mrf.mxu0 }
 0x6ee   :  { %v1195_v55 = vadd.f32 %v4609_v60, %v1194_v10 }
 0x6f0   :  { %v3283_v53 = vpop.eup %3282 }
 0x6f1   :  { %v1236_v3 = vadd.f32 1.0, %v3283_v53 }
 0x6f2   :  { %v3285_v33 = vpop.eup %3284 }
 0x6f3   :  { %v1069_v37 = vadd.f32 1.0, %v3285_v33  ;;  %3286 = vrcp.f32 %v1236_v3  ;;  %v1128_v31 = vpop.f32.mrf.mxu2  ;;  %v1248_v48 = vand.u32 2147483648, %v1236_v3  ;;  %v1246_v20 = vand.u32 2147483647, %v1236_v3 }
 0x6f4   :  { %v1129_v61 = vadd.f32 %v1128_v31, %v1102_v35  ;;  %vm1242_vm15 = vweird.f32 %v1236_v3  ;;  %v4102_v31 = vld [vmem:[#allocation8 + $0x78] sm:$0xff] }
 0x6f5   :  { %3288 = vrcp.f32 %v1069_v37  ;;  %v1081_v14 = vand.u32 2147483648, %v1069_v37  ;;  %v1079_v59 = vand.u32 2147483647, %v1069_v37  ;;  %v1249_v4 = vor.u32 1.1754944e-38, %v1248_v48 }
 0x6f6   :  { %v1131_v45 = vadd.f32 %v4608_v57, %v1129_v61  ;;  %vm1247_vm2 = vcmp.eq.f32.partialorder %v1246_v20, 8.507059e+37  ;;  %vm1075_vm3 = vweird.f32 %v1069_v37  ;;  %v4111_v61 = vld [vmem:[#allocation8 + $0x48] sm:$0xff] }
 0x6f7   :  { %v1082_v13 = vor.u32 1.1754944e-38, %v1081_v14  ;;  %vm1080_vm5 = vcmp.eq.f32.partialorder %v1079_v59, 8.507059e+37 }
 0x6f8   :  { %v3142_v30 = vmul.f32 -1.442695, %v1131_v45  ;;  %v4114_v45 = vld [vmem:[#allocation8 + $0x68] sm:$0xff] }
 0x6f9   :  { %v3287_v15 = vpop.eup %3286 }
 0x6fa   :  { %v1238_v17 = vmul.f32 %v3287_v15, %v1236_v3  ;;  %3290 = vpow2.f32 %v3142_v30  ;;  %vm1243_vm14 = vweird.f32 %v3287_v15  ;;  %v4117_v30 = vld [vmem:[#allocation8 + $0x40] sm:$0xff] }
 0x6fb   :  { %v3289_v0 = vpop.eup %3288  ;;  %v1275_v46 = vpop.f32.mrf.mxu2  ;;  %vm1244_vm1 = vmor %vm1242_vm15, %vm1243_vm14 }
 0x6fc   :  { %v1239_v47 = vsub.f32 1.0, %v1238_v17  ;;  %v1071_v19 = vmul.f32 %v3289_v0, %v1069_v37  ;;  %1279 = vrot.lane.b32.xlu1 %v1275_v46, %s3640_s27  ;;  %vm1076_vm0 = vweird.f32 %v3289_v0  ;;  %v4099_v37 = vld [vmem:[#allocation8 + $0x58] sm:$0xff] }
 0x6fd   :  { %vm1077_vm4 = vmor %vm1075_vm3, %vm1076_vm0 }
 0x6fe   :  { %v1240_v38 = vmul.f32 %v3287_v15, %v1239_v47  ;;  %v1072_v16 = vsub.f32 1.0, %v1071_v19 }
 0x700   :  { %v3291_v24 = vpop.eup %3290  ;;  %v1241_v57 = vadd.f32 %v3287_v15, %v1240_v38  ;;  %v1073_v5 = vmul.f32 %v3289_v0, %v1072_v16 }
 0x701   :  { %v1135_v2 = vadd.f32 1.0, %v3291_v24 }
 0x702   :  { %v1245_v32 = vsel %vm1244_vm1, %v3287_v15, %v1241_v57  ;;  %v1074_v9 = vadd.f32 %v3289_v0, %v1073_v5  ;;  %v4120_v15 = vld [vmem:[#allocation8 + $0x60] sm:$0xff] }
 0x703   :  { %v1250_v12 = vsel %vm1247_vm2, %v1249_v4, %v1245_v32  ;;  %3292 = vrcp.f32 %v1135_v2  ;;  %v1147_v39 = vand.u32 2147483648, %v1135_v2  ;;  %v1145_v43 = vand.u32 2147483647, %v1135_v2 }
 0x704   :  { %v1328_v1 = vmul.f32 %v1326_v58, %v1250_v12  ;;  %v1078_v56 = vsel %vm1077_vm4, %v3289_v0, %v1074_v9  ;;  %vm1141_vm8 = vweird.f32 %v1135_v2 }
 0x705   :  { %v1083_v8 = vsel %vm1080_vm5, %v1082_v13, %v1078_v56  ;;  %v1148_v50 = vor.u32 1.1754944e-38, %v1147_v39  ;;  %vm1146_vm11 = vcmp.eq.f32.partialorder %v1145_v43, 8.507059e+37  ;;  %v4157_v43 = vld [vmem:[#allocation8 + $0xd8] sm:$0xff] }
 0x706   :  { %1330 = vrot.lane.b32.xlu0 %v1328_v1, %s3645_s2  ;;  %v1197_v34 = vmul.f32 %v1195_v55, %v1083_v8 }
 0x708   :  { %v1198_v35 = vadd.f32 %v1197_v34, %v1175_v18  ;;  %v4142_v18 = vld [vmem:[#allocation8 + $0x98] sm:$0xff] }
 0x709   :  { %v3293_v26 = vpop.eup %3292 }
 0x70a   :  { %v1137_v22 = vmul.f32 %v3293_v26, %v1135_v2  ;;  %vm1142_vm7 = vweird.f32 %v3293_v26  ;;  %3294 = vtanh.f32 %v1198_v35  ;;  %v4148_v35 = vld [vmem:[#allocation8 + $0x88] sm:$0xff] }
 0x70b   :  { %vm1143_vm10 = vmor %vm1141_vm8, %vm1142_vm7 }
 0x70c   :  { %v1138_v29 = vsub.f32 1.0, %v1137_v22  ;;  %v4145_v22 = vld [vmem:[#allocation8 + $0x90] sm:$0xff] }
 0x70e   :  { %v1139_v42 = vmul.f32 %v3293_v26, %v1138_v29 }
 0x710   :  { %v1140_v44 = vadd.f32 %v3293_v26, %v1139_v42  ;;  %v3295_v53 = vpop.eup %3294  ;;  %v4151_v42 = vld [vmem:[#allocation8 + $0x80] sm:$0xff] }
 0x712   :  { %v1144_v51 = vsel %vm1143_vm10, %v3293_v26, %v1140_v44  ;;  %v4160_v44 = vld [vmem:[#allocation8 + $0x118] sm:$0xff] }
 0x713   :  { %v1149_v60 = vsel %vm1146_vm11, %v1148_v50, %v1144_v51  ;;  %v4164_v50 = vld [vmem:[#allocation8 + $0xd0] sm:$0xff] }
 0x714   :  { %v1200_v52 = vsub.f32 1.0, %v1149_v60  ;;  %v1202_v11 = vmul.f32 %v1149_v60, %v3991_v7  ;;  %v4105_v7 = vld [vmem:[#allocation8 + $0x50] sm:$0xff]  ;;  %v4171_v60 = vld [vmem:[#allocation8 + $0xc8] sm:$0xff] }
 0x715   :  { %v4167_v51 = vld [vmem:[#allocation8 + $0x110] sm:$0xff] }
 0x716   :  { %v1201_v3 = vmul.f32 %v3295_v53, %v1200_v52  ;;  %v4174_v52 = vld [vmem:[#allocation8 + $0x108] sm:$0xff] }
 0x718   :  { %v4091_v33 = vadd.f32 %v1202_v11, %v1201_v3  ;;  %v4178_v3 = vld [vmem:[#allocation8 + $0xc0] sm:$0xff]  ;;  %v4184_v11 = vld [vmem:[#allocation8 + $0xf8] sm:$0xff] }
 0x71a   :  { %1205 = vst.msk [vmem:[#allocation2 + $0x4] sm:$0x3] %vm548_vm6, %v4091_v33  ;;  %3150 = vmatmul.msk.f32.vlgmr.msrb.gmra.mxu0 %vm234_vm9, %v4091_v33  ;;  %3153 = vmatmul.msk.f32.vlgmr.msrb.gmra.mxu2 %vm234_vm9, %v4091_v33 }
 0x71b   :  { %1648 = vmatpush.msrb.mxu0 %v4099_v37  ;;  %1713 = vmatpush.msrb.mxu2 %v4102_v31 }
 0x71d   :  { %1649 = vmatpush.msrb.mxu0 %v4105_v7  ;;  %1714 = vmatpush.msrb.mxu2 %v4108_v6 }
 0x71f   :  { %1650 = vmatpush.msrb.mxu0 %v4111_v61  ;;  %1715 = vmatpush.msrb.mxu2 %v4114_v45 }
 0x721   :  { %1651 = vmatpush.msrb.mxu0 %v4117_v30  ;;  %1716 = vmatpush.msrb.mxu2 %v4120_v15 }
 0x76e   :  { %v1280_v47 = vpop.permute.xlu1 %1279 }
 0x76f   :  { %v1282_v19 = vadd.f32 %v1280_v47, %v4078_v36  ;;  %v4197_v47 = vld [vmem:[#allocation8 + $0xb0] sm:$0xff] }
 0x771   :  { %v3148_v48 = vmul.f32 -1.442695, %v1282_v19  ;;  %v4200_v19 = vld [vmem:[#allocation8 + $0xe8] sm:$0xff] }
 0x778   :  { %v1331_v17 = vpop.permute.xlu0 %1330 }
 0x779   :  { %v1333_v0 = vadd.f32 %v1331_v17, %v4078_v36  ;;  %v4187_v17 = vld [vmem:[#allocation8 + $0xb8] sm:$0xff] }
 0x77b   :  { %3296 = vtanh.f32 %v1333_v0  ;;  %v4190_v0 = vld [vmem:[#allocation8 + $0x100] sm:$0xff] }
 0x77c   :  { %3298 = vpow2.f32 %v3148_v48  ;;  %v4203_v48 = vld [vmem:[#allocation8 + $0xa8] sm:$0xff] }
 0x781   :  { %v3297_v46 = vpop.eup %3296 }
 0x782   :  { %1337 = vrot.lane.b32.xlu2 %v3297_v46, %s3646_s3  ;;  %v3299_v38 = vpop.eup %3298  ;;  %v4194_v46 = vld [vmem:[#allocation8 + $0xf0] sm:$0xff] }
 0x783   :  { %v1286_v20 = vadd.f32 1.0, %v3299_v38 }
 0x785   :  { %3300 = vrcp.f32 %v1286_v20  ;;  %v1298_v5 = vand.u32 2147483648, %v1286_v20  ;;  %vm1292_vm13 = vweird.f32 %v1286_v20  ;;  %v1296_v59 = vand.u32 2147483647, %v1286_v20 }
 0x787   :  { %v1299_v58 = vor.u32 1.1754944e-38, %v1298_v5  ;;  %vm1297_vm15 = vcmp.eq.f32.partialorder %v1296_v59, 8.507059e+37  ;;  %v189_v5 = vld.sshfl [vmem:[#allocation1 + $0x20] sm:$0xff pattern:$0x73625140] }
 0x788   :  { %v4217_v59 = vld [vmem:[#allocation9 + $0x2] ss:$0 sm:$0xff] }
 0x789   :  { %4611 = vst [vmem:[#allocation17_spill] sm:$0xff] %v4217_v59 }
 0x78b   :  { %v3301_v62 = vpop.eup %3300 }
 0x78c   :  { %v1288_v16 = vmul.f32 %v3301_v62, %v1286_v20  ;;  %vm1293_vm12 = vweird.f32 %v3301_v62  ;;  %v4206_v20 = vld [vmem:[#allocation8 + $0xe0] sm:$0xff] }
 0x78d   :  { %vm1294_vm14 = vmor %vm1292_vm13, %vm1293_vm12 }
 0x78e   :  { %v1289_v14 = vsub.f32 1.0, %v1288_v16 }
 0x790   :  { %v1290_v24 = vmul.f32 %v3301_v62, %v1289_v14 }
 0x792   :  { %v1291_v57 = vadd.f32 %v3301_v62, %v1290_v24 }
 0x794   :  { %v1295_v4 = vsel %vm1294_vm14, %v3301_v62, %v1291_v57  ;;  %v4209_v62 = vld [vmem:[#allocation8 + $0xa0] sm:$0xff] }
 0x795   :  { %v1300_v2 = vsel %vm1297_vm15, %v1299_v58, %v1295_v4  ;;  %v4612_v58 = vld [vmem:[#allocation20_spill] sm:$0xff] }
 0x796   :  { %v1335_v36 = vsub.f32 1.0, %v1300_v2  ;;  %v1341_v9 = vmul.f32 %v1300_v2, %v4011_v54  ;;  %v4221_v2 = vadd.f32 %v4612_v58, %v189_v5 }
 0x797   :  { %v1363_v14 = vpop.f32.mrf.mxu0 }
 0x79d   :  { %v1430_v16 = vpop.f32.mrf.mxu2 }
 0x7dc   :  { %v1338_v32 = vpop.permute.xlu2 %1337 }
 0x7dd   :  { %v1340_v10 = vmul.f32 %v1338_v32, %v1335_v36 }
 0x7df   :  { %v4127_v12 = vadd.f32 %v1341_v9, %v1340_v10 }
 0x7e1   :  { %1367 = vst [vmem:[#allocation1] ss:$4 sm:$0xff] %v4127_v12 }
 0x7e8   :  { %v1368_v13 = vld.sshfl [vmem:[#allocation1] sm:$0xff pattern:$0x73625140] }
 0x7e9   :  { %1433 = vst [vmem:[#allocation1] ss:$4 sm:$0xff] %v4127_v12 }
 0x7f0   :  { %v1434_v1 = vld.sshfl [vmem:[#allocation1] sm:$0xff pattern:$0x73625140] }
 0x7f1   :  { %1479 = vst [vmem:[#allocation1] ss:$4 sm:$0xff] %v4127_v12 }
 0x7f8   :  { %v1480_v56 = vld.sshfl [vmem:[#allocation1] sm:$0xff pattern:$0x73625140] }
 0x7f9   :  { %1481 = vrot.lane.b32.xlu1 %v1480_v56, %s3646_s3  ;;  %1534 = vst [vmem:[#allocation1] ss:$4 sm:$0xff] %v4127_v12 }
 0x800   :  { %v1535_v8 = vld.sshfl [vmem:[#allocation1] sm:$0xff pattern:$0x73625140] }
 0x801   :  { %1536 = vrot.lane.b32.xlu0 %v1535_v8, %s3646_s3  ;;  %1580 = vst [vmem:[#allocation1] ss:$4 sm:$0xff] %v4127_v12 }
 0x808   :  { %v1581_v54 = vld.sshfl [vmem:[#allocation1] sm:$0xff pattern:$0x73625140] }
 0x809   :  { %1435 = vrot.lane.b32.xlu0 %v1434_v1, %s3646_s3  ;;  %1582 = vrot.lane.b32.xlu1 %v1581_v54, %s3646_s3  ;;  %1630 = vst [vmem:[#allocation1] ss:$4 sm:$0xff] %v4127_v12 }
 0x810   :  { %v1631_v55 = vld.sshfl [vmem:[#allocation1] sm:$0xff pattern:$0x73625140] }
 0x811   :  { %1632 = vrot.lane.b32.xlu2 %v1631_v55, %s3646_s3  ;;  %v4224_v55 = vld [vmem:[#allocation9 + $0x3] ss:$0 sm:$0xff] }
 0x812   :  { %4613 = vst [vmem:[#allocation18_spill] sm:$0xff] %v4224_v55 }
 0x819   :  { %1369 = vrot.lane.b32.xlu2 %v1368_v13, %s3646_s3 }
 0x86b   :  { %v1482_v34 = vpop.permute.xlu1 %1481  ;;  %v1633_v26 = vpop.permute.xlu2 %1632 }
 0x86c   :  { %3156 = vmatmul.msk.f32.vlgmr.msra.gmra.mxu0 %vm234_vm9, %v1482_v34 }
 0x86d   :  { %1779 = vmatpush.msra.mxu0 %v4142_v18 }
 0x86f   :  { %1780 = vmatpush.msra.mxu0 %v4145_v22 }
 0x871   :  { %1781 = vmatpush.msra.mxu0 %v4148_v35 }
 0x873   :  { %v1537_v29 = vpop.permute.xlu0 %1536  ;;  %v1370_v39 = vpop.permute.xlu2 %1369  ;;  %1782 = vmatpush.msra.mxu0 %v4151_v42 }
 0x874   :  { %3151 = vmatmul.msk.f32.vlgmr.msra.gmra.mxu1 %vm234_vm9, %v1370_v39  ;;  %3158 = vmatmul.msk.f32.vlgmr.msra.gmra.mxu2 %vm234_vm9, %v1537_v29 }
 0x875   :  { %3162 = vmatmul.msk.f32.vlgmr.msrb.gmra.mxu0 %vm234_vm9, %v1633_v26  ;;  %1686 = vmatpush.msra.mxu1 %v4157_v43 }
 0x876   :  { %1845 = vmatpush.msra.mxu2 %v4160_v44  ;;  %1926 = vmatpush.msrb.mxu0 %v4035_v49 }
 0x877   :  { %1687 = vmatpush.msra.mxu1 %v4164_v50 }
 0x878   :  { %1846 = vmatpush.msra.mxu2 %v4167_v51  ;;  %1927 = vmatpush.msrb.mxu0 %v4040_v40 }
 0x879   :  { %1688 = vmatpush.msra.mxu1 %v4171_v60 }
 0x87a   :  { %1847 = vmatpush.msra.mxu2 %v4174_v52  ;;  %1928 = vmatpush.msrb.mxu0 %v4045_v41 }
 0x87b   :  { %v1436_v53 = vpop.permute.xlu0 %1435  ;;  %1689 = vmatpush.msra.mxu1 %v4178_v3  ;;  %v1583_v38 = vpop.permute.xlu1 %1582 }
 0x87c   :  { %3154 = vmatmul.msk.f32.vlgmr.msrb.gmra.mxu3 %vm234_vm9, %v1436_v53  ;;  %3157 = vmatmul.msk.f32.vlgmr.msrb.gmra.mxu1 %vm234_vm9, %v4091_v33 }
 0x87d   :  { %1753 = vmatpush.msrb.mxu3 %v4184_v11  ;;  %1825 = vmatpush.msrb.mxu1 %v4187_v17 }
 0x87e   :  { %1848 = vmatpush.msra.mxu2 %v4190_v0  ;;  %1929 = vmatpush.msrb.mxu0 %v4055_v21 }
 0x87f   :  { %1754 = vmatpush.msrb.mxu3 %v4194_v46  ;;  %1826 = vmatpush.msrb.mxu1 %v4197_v47 }
 0x881   :  { %1755 = vmatpush.msrb.mxu3 %v4200_v19  ;;  %1827 = vmatpush.msrb.mxu1 %v4203_v48 }
 0x883   :  { %1756 = vmatpush.msrb.mxu3 %v4206_v20  ;;  %1828 = vmatpush.msrb.mxu1 %v4209_v62 }
 0x884   :  { %3160 = vmatmul.msk.f32.vlgmr.msra.gmra.mxu3 %vm234_vm9, %v1583_v38 }
 0x885   :  { %1880 = vmatpush.msra.mxu3 %v4065_v23 }
 0x887   :  { %1881 = vmatpush.msra.mxu3 %v4068_v25 }
 0x889   :  { %1882 = vmatpush.msra.mxu3 %v4071_v27 }
 0x88b   :  { %1883 = vmatpush.msra.mxu3 %v4074_v28 }
 0x8e9   :  { %v1502_v53 = vpop.f32.mrf.mxu0 }
 0x8f1   :  { %v1390_v24 = vpop.f32.mrf.mxu1 }
 0x8f2   :  { %v1391_v57 = vadd.f32 %v1390_v24, %v1363_v14 }
 0x8f4   :  { %v1393_v4 = vadd.f32 %v4217_v59, %v1391_v57 }
 0x8f6   :  { %v3152_v36 = vmul.f32 -1.442695, %v1393_v4 }
 0x8f7   :  { %v1557_v32 = vpop.f32.mrf.mxu2 }
 0x8f8   :  { %3302 = vpow2.f32 %v3152_v36  ;;  %v1560_v9 = vadd.f32 %v1557_v32, %v4221_v2 }
 0x8fa   :  { %v3159_v10 = vmul.f32 -1.442695, %v1560_v9 }
 0x8fc   :  { %3304 = vpow2.f32 %v3159_v10  ;;  %v1522_v10 = vpop.f32.mrf.mxu1 }
 0x8fe   :  { %v3303_v13 = vpop.eup %3302 }
 0x8ff   :  { %v1397_v1 = vadd.f32 1.0, %v3303_v13  ;;  %v1456_v56 = vpop.f32.mrf.mxu3 }
 0x900   :  { %v1457_v8 = vadd.f32 %v1456_v56, %v1430_v16 }
 0x901   :  { %3306 = vrcp.f32 %v1397_v1  ;;  %v1407_v5 = vand.u32 2147483647, %v1397_v1  ;;  %v1409_v16 = vand.u32 2147483648, %v1397_v1  ;;  %vm1403_vm1 = vweird.f32 %v1397_v1 }
 0x902   :  { %v3305_v54 = vpop.eup %3304  ;;  %v1459_v34 = vadd.f32 %v4224_v55, %v1457_v8  ;;  %v4228_v55 = vld [vmem:[#allocation9 + $0x5] ss:$0 sm:$0xff] }
 0x903   :  { %v1564_v26 = vadd.f32 1.0, %v3305_v54  ;;  %vm1408_vm3 = vcmp.eq.f32.partialorder %v1407_v5, 8.507059e+37  ;;  %v1410_v56 = vor.u32 1.1754944e-38, %v1409_v16 }
 0x904   :  { %v3155_v29 = vmul.f32 -1.442695, %v1459_v34 }
 0x905   :  { %3308 = vrcp.f32 %v1564_v26  ;;  %v1576_v8 = vand.u32 2147483648, %v1564_v26  ;;  %vm1570_vm5 = vweird.f32 %v1564_v26 }
 0x906   :  { %3310 = vpow2.f32 %v3155_v29  ;;  %v1574_v29 = vand.u32 2147483647, %v1564_v26 }
 0x907   :  { %v3307_v39 = vpop.eup %3306  ;;  %v1603_v38 = vpop.f32.mrf.mxu3 }
 0x908   :  { %v1399_v14 = vmul.f32 %v3307_v39, %v1397_v1  ;;  %1607 = vrot.lane.b32.xlu1 %v1603_v38, %s3640_s27  ;;  %vm1404_vm0 = vweird.f32 %v3307_v39  ;;  %v1653_v38 = vpop.f32.mrf.mxu0  ;;  %vm1575_vm8 = vcmp.eq.f32.partialorder %v1574_v29, 8.507059e+37 }
 0x909   :  { %vm1405_vm2 = vmor %vm1403_vm1, %vm1404_vm0  ;;  %v1654_v5 = vadd.f32 %v4084_v63, %v1653_v38 }
 0x90a   :  { %v1400_v24 = vsub.f32 1.0, %v1399_v14 }
 0x90b   :  { %v3309_v57 = vpop.eup %3308 }
 0x90c   :  { %v3311_v4 = vpop.eup %3310  ;;  %v1566_v58 = vmul.f32 %v3309_v57, %v1564_v26  ;;  %v1401_v36 = vmul.f32 %v3307_v39, %v1400_v24  ;;  %vm1571_vm4 = vweird.f32 %v3309_v57  ;;  %v1523_v24 = vadd.f32 %v4228_v55, %v1522_v10 }
 0x90d   :  { %v1463_v32 = vadd.f32 1.0, %v3311_v4  ;;  %vm1572_vm7 = vmor %vm1570_vm5, %vm1571_vm4 }
 0x90e   :  { %v1402_v9 = vadd.f32 %v3307_v39, %v1401_v36  ;;  %v1567_v13 = vsub.f32 1.0, %v1566_v58  ;;  %v1577_v58 = vor.u32 1.1754944e-38, %v1576_v8 }
 0x90f   :  { %3312 = vrcp.f32 %v1463_v32  ;;  %v1475_v26 = vand.u32 2147483648, %v1463_v32  ;;  %v1473_v8 = vand.u32 2147483647, %v1463_v32  ;;  %vm1469_vm11 = vweird.f32 %v1463_v32 }
 0x910   :  { %v1406_v54 = vsel %vm1405_vm2, %v3307_v39, %v1402_v9  ;;  %v1568_v34 = vmul.f32 %v3309_v57, %v1567_v13  ;;  %v4232_v39 = vld [vmem:[#allocation9 + $0x4] ss:$0 sm:$0xff] }
 0x911   :  { %v1411_v14 = vsel %vm1408_vm3, %v1410_v56, %v1406_v54  ;;  %v1503_v9 = vadd.f32 %v4232_v39, %v1502_v53  ;;  %vm1474_vm13 = vcmp.eq.f32.partialorder %v1473_v8, 8.507059e+37 }
 0x912   :  { %v1569_v4 = vadd.f32 %v3309_v57, %v1568_v34  ;;  %v1525_v1 = vmul.f32 %v1523_v24, %v1411_v14  ;;  %v1476_v34 = vor.u32 1.1754944e-38, %v1475_v26 }
 0x914   :  { %v1573_v16 = vsel %vm1572_vm7, %v3309_v57, %v1569_v4  ;;  %v1526_v59 = vadd.f32 %v1525_v1, %v1503_v9 }
 0x915   :  { %v3313_v36 = vpop.eup %3312  ;;  %v1578_v13 = vsel %vm1575_vm8, %v1577_v58, %v1573_v16 }
 0x916   :  { %v1465_v56 = vmul.f32 %v3313_v36, %v1463_v32  ;;  %v1656_v54 = vmul.f32 %v1654_v5, %v1578_v13  ;;  %vm1470_vm10 = vweird.f32 %v3313_v36  ;;  %3314 = vtanh.f32 %v1526_v59 }
 0x917   :  { %vm1471_vm12 = vmor %vm1469_vm11, %vm1470_vm10 }
 0x918   :  { %v1466_v28 = vsub.f32 1.0, %v1465_v56  ;;  %1658 = vrot.lane.b32.xlu0 %v1656_v54, %s3645_s2 }
 0x91a   :  { %v1467_v10 = vmul.f32 %v3313_v36, %v1466_v28 }
 0x91c   :  { %v1468_v57 = vadd.f32 %v3313_v36, %v1467_v10  ;;  %v3315_v14 = vpop.eup %3314 }
 0x91e   :  { %v1472_v29 = vsel %vm1471_vm12, %v3313_v36, %v1468_v57 }
 0x91f   :  { %v1477_v38 = vsel %vm1474_vm13, %v1476_v34, %v1472_v29 }
 0x920   :  { %v1528_v53 = vsub.f32 1.0, %v1477_v38  ;;  %v1530_v4 = vmul.f32 %v1477_v38, %v4091_v33 }
 0x922   :  { %v1529_v24 = vmul.f32 %v3315_v14, %v1528_v53 }
 0x924   :  { %v4237_v1 = vadd.f32 %v1530_v4, %v1529_v24 }
 0x926   :  { %1533 = vst.msk [vmem:[#allocation2 + $0x6] sm:$0x3] %vm548_vm6, %v4237_v1  ;;  %3163 = vmatmul.msk.f32.vlgmr.msra.gmra.mxu1 %vm234_vm9, %v4237_v1  ;;  %3166 = vmatmul.msk.f32.vlgmr.msrb.gmra.mxu3 %vm234_vm9, %v4237_v1 }
 0x927   :  { %1976 = vmatpush.msra.mxu1 %v4099_v37  ;;  %2041 = vmatpush.msrb.mxu3 %v4102_v31 }
 0x929   :  { %1977 = vmatpush.msra.mxu1 %v4105_v7  ;;  %2042 = vmatpush.msrb.mxu3 %v4108_v6 }
 0x92b   :  { %1978 = vmatpush.msra.mxu1 %v4111_v61  ;;  %2043 = vmatpush.msrb.mxu3 %v4114_v45 }
 0x92d   :  { %1979 = vmatpush.msra.mxu1 %v4117_v30  ;;  %2044 = vmatpush.msrb.mxu3 %v4120_v15 }
 0x97a   :  { %v1608_v32 = vpop.permute.xlu1 %1607 }
 0x97b   :  { %v1610_v58 = vadd.f32 %v1608_v32, %v4221_v2 }
 0x97d   :  { %v3161_v5 = vmul.f32 -1.442695, %v1610_v58 }
 0x98a   :  { %v1659_v28 = vpop.permute.xlu0 %1658 }
 0x98b   :  { %v1661_v33 = vadd.f32 %v1659_v28, %v4221_v2 }
 0x98d   :  { %3316 = vtanh.f32 %v1661_v33 }
 0x98e   :  { %3318 = vpow2.f32 %v3161_v5 }
 0x993   :  { %v3317_v59 = vpop.eup %3316 }
 0x994   :  { %1665 = vrot.lane.b32.xlu2 %v3317_v59, %s3646_s3  ;;  %v3319_v16 = vpop.eup %3318 }
 0x995   :  { %v1614_v36 = vadd.f32 1.0, %v3319_v16 }
 0x997   :  { %3320 = vrcp.f32 %v1614_v36  ;;  %v1626_v10 = vand.u32 2147483648, %v1614_v36  ;;  %vm1620_vm15 = vweird.f32 %v1614_v36  ;;  %v1624_v8 = vand.u32 2147483647, %v1614_v36 }
 0x999   :  { %v1627_v34 = vor.u32 1.1754944e-38, %v1626_v10  ;;  %vm1625_vm1 = vcmp.eq.f32.partialorder %v1624_v8, 8.507059e+37 }
 0x99d   :  { %v3321_v9 = vpop.eup %3320 }
 0x99e   :  { %v1616_v13 = vmul.f32 %v3321_v9, %v1614_v36  ;;  %vm1621_vm14 = vweird.f32 %v3321_v9 }
 0x99f   :  { %vm1622_vm0 = vmor %vm1620_vm15, %vm1621_vm14 }
 0x9a0   :  { %v1617_v56 = vsub.f32 1.0, %v1616_v13 }
 0x9a2   :  { %v1618_v54 = vmul.f32 %v3321_v9, %v1617_v56  ;;  %v4308_v56 = vrot.slane %v4221_v2, 2 }
 0x9a4   :  { %v1619_v26 = vadd.f32 %v3321_v9, %v1618_v54 }
 0x9a6   :  { %v1623_v57 = vsel %vm1622_vm0, %v3321_v9, %v1619_v26 }
 0x9a7   :  { %v1628_v29 = vsel %vm1625_vm1, %v1627_v34, %v1623_v57  ;;  %v4615_v34 = vld [vmem:[#allocation17_spill] sm:$0xff] }
 0x9a8   :  { %v1663_v38 = vsub.f32 1.0, %v1628_v29  ;;  %v1669_v14 = vmul.f32 %v1628_v29, %v4127_v12 }
 0x9ee   :  { %v1666_v53 = vpop.permute.xlu2 %1665 }
 0x9ef   :  { %v1668_v24 = vmul.f32 %v1666_v53, %v1663_v38 }
 0x9f1   :  { %v4257_v4 = vadd.f32 %v1669_v14, %v1668_v24 }
 0x9f3   :  { %1695 = vst [vmem:[#allocation1] ss:$4 sm:$0xff] %v4257_v4 }
 0x9fa   :  { %v1696_v28 = vld.sshfl [vmem:[#allocation1] sm:$0xff pattern:$0x73625140] }
 0x9fb   :  { %1761 = vst [vmem:[#allocation1] ss:$4 sm:$0xff] %v4257_v4 }
 0xa02   :  { %v1762_v33 = vld.sshfl [vmem:[#allocation1] sm:$0xff pattern:$0x73625140] }
 0xa03   :  { %1807 = vst [vmem:[#allocation1] ss:$4 sm:$0xff] %v4257_v4 }
 0xa0a   :  { %v1808_v59 = vld.sshfl [vmem:[#allocation1] sm:$0xff pattern:$0x73625140] }
 0xa0b   :  { %1809 = vrot.lane.b32.xlu1 %v1808_v59, %s3646_s3  ;;  %1862 = vst [vmem:[#allocation1] ss:$4 sm:$0xff] %v4257_v4 }
 0xa12   :  { %v1863_v32 = vld.sshfl [vmem:[#allocation1] sm:$0xff pattern:$0x73625140] }
 0xa13   :  { %1864 = vrot.lane.b32.xlu0 %v1863_v32, %s3646_s3  ;;  %1908 = vst [vmem:[#allocation1] ss:$4 sm:$0xff] %v4257_v4 }
 0xa1a   :  { %v1909_v12 = vld.sshfl [vmem:[#allocation1] sm:$0xff pattern:$0x73625140] }
 0xa1b   :  { %1763 = vrot.lane.b32.xlu0 %v1762_v33, %s3646_s3  ;;  %1910 = vrot.lane.b32.xlu1 %v1909_v12, %s3646_s3  ;;  %1958 = vst [vmem:[#allocation1] ss:$4 sm:$0xff] %v4257_v4 }
 0xa22   :  { %v1959_v58 = vld.sshfl [vmem:[#allocation1] sm:$0xff pattern:$0x73625140] }
 0xa23   :  { %1960 = vrot.lane.b32.xlu2 %v1959_v58, %s3646_s3 }
 0xa2b   :  { %1697 = vrot.lane.b32.xlu2 %v1696_v28, %s3646_s3 }
 0xa7d   :  { %v1810_v5 = vpop.permute.xlu1 %1809  ;;  %v1961_v16 = vpop.permute.xlu2 %1960 }
 0xa7e   :  { %3169 = vmatmul.msk.f32.vlgmr.msrb.gmra.mxu1 %vm234_vm9, %v1810_v5 }
 0xa7f   :  { %2107 = vmatpush.msrb.mxu1 %v4142_v18 }
 0xa81   :  { %2108 = vmatpush.msrb.mxu1 %v4145_v22 }
 0xa83   :  { %2109 = vmatpush.msrb.mxu1 %v4148_v35 }
 0xa85   :  { %v1865_v36 = vpop.permute.xlu0 %1864  ;;  %v1698_v9 = vpop.permute.xlu2 %1697  ;;  %2110 = vmatpush.msrb.mxu1 %v4151_v42 }
 0xa86   :  { %3164 = vmatmul.msk.f32.vlgmr.msrb.gmra.mxu2 %vm234_vm9, %v1698_v9  ;;  %3171 = vmatmul.msk.f32.vlgmr.msra.gmra.mxu3 %vm234_vm9, %v1865_v36 }
 0xa87   :  { %3175 = vmatmul.msk.f32.vlgmr.msra.gmra.mxu1 %vm234_vm9, %v1961_v16  ;;  %2014 = vmatpush.msrb.mxu2 %v4157_v43 }
 0xa88   :  { %2173 = vmatpush.msra.mxu3 %v4160_v44  ;;  %2254 = vmatpush.msra.mxu1 %v4035_v49 }
 0xa89   :  { %2015 = vmatpush.msrb.mxu2 %v4164_v50 }
 0xa8a   :  { %2174 = vmatpush.msra.mxu3 %v4167_v51  ;;  %2255 = vmatpush.msra.mxu1 %v4040_v40  ;;  %v4614_v40 = vld [vmem:[#allocation16_spill] sm:$0xff] }
 0xa8b   :  { %2016 = vmatpush.msrb.mxu2 %v4171_v60 }
 0xa8c   :  { %2175 = vmatpush.msra.mxu3 %v4174_v52  ;;  %2256 = vmatpush.msra.mxu1 %v4045_v41  ;;  %v1758_v41 = vpop.f32.mrf.mxu3 }
 0xa8d   :  { %v1764_v13 = vpop.permute.xlu0 %1763  ;;  %2017 = vmatpush.msrb.mxu2 %v4178_v3  ;;  %v1911_v49 = vpop.permute.xlu1 %1910 }
 0xa8e   :  { %3167 = vmatmul.msk.f32.vlgmr.msra.gmra.mxu0 %vm234_vm9, %v1764_v13  ;;  %3170 = vmatmul.msk.f32.vlgmr.msra.gmra.mxu2 %vm234_vm9, %v4237_v1 }
 0xa8f   :  { %2081 = vmatpush.msra.mxu0 %v4184_v11  ;;  %2153 = vmatpush.msra.mxu2 %v4187_v17 }
 0xa90   :  { %2176 = vmatpush.msra.mxu3 %v4190_v0  ;;  %2257 = vmatpush.msra.mxu1 %v4055_v21  ;;  %v1691_v21 = vpop.f32.mrf.mxu1 }
 0xa91   :  { %2082 = vmatpush.msra.mxu0 %v4194_v46  ;;  %2154 = vmatpush.msra.mxu2 %v4197_v47 }
 0xa93   :  { %2083 = vmatpush.msra.mxu0 %v4200_v19  ;;  %2155 = vmatpush.msra.mxu2 %v4203_v48 }
 0xa95   :  { %2084 = vmatpush.msra.mxu0 %v4206_v20  ;;  %2156 = vmatpush.msra.mxu2 %v4209_v62 }
 0xa96   :  { %3173 = vmatmul.msk.f32.vlgmr.msrb.gmra.mxu0 %vm234_vm9, %v1911_v49 }
 0xa97   :  { %2208 = vmatpush.msrb.mxu0 %v4065_v23 }
 0xa99   :  { %2209 = vmatpush.msrb.mxu0 %v4068_v25 }
 0xa9b   :  { %2210 = vmatpush.msrb.mxu0 %v4071_v27  ;;  %v4616_v27 = vld [vmem:[#allocation18_spill] sm:$0xff] }
 0xa9d   :  { %2211 = vmatpush.msrb.mxu0 %v4614_v40 }
 0xafb   :  { %v1830_v58 = vpop.f32.mrf.mxu1 }
 0xb09   :  { %v1718_v54 = vpop.f32.mrf.mxu2  ;;  %v1885_v26 = vpop.f32.mrf.mxu3 }
 0xb0a   :  { %v1719_v10 = vadd.f32 %v1718_v54, %v1691_v21  ;;  %v1888_v8 = vadd.f32 %v1885_v26, %v4308_v56  ;;  %v1981_v54 = vpop.f32.mrf.mxu1 }
 0xb0b   :  { %v1784_v57 = vpop.f32.mrf.mxu0 }
 0xb0c   :  { %v1721_v29 = vadd.f32 %v4615_v34, %v1719_v10  ;;  %v3172_v23 = vmul.f32 -1.442695, %v1888_v8  ;;  %v1785_v38 = vadd.f32 %v1784_v57, %v1758_v41 }
 0xb0e   :  { %v3165_v25 = vmul.f32 -1.442695, %v1721_v29  ;;  %3322 = vpow2.f32 %v3172_v23  ;;  %v1787_v53 = vadd.f32 %v4616_v27, %v1785_v38 }
 0xb10   :  { %3324 = vpow2.f32 %v3165_v25  ;;  %v3168_v14 = vmul.f32 -1.442695, %v1787_v53  ;;  %v1982_v53 = vadd.f32 %v4084_v63, %v1981_v54  ;;  %v1831_v63 = vadd.f32 %v4232_v39, %v1830_v58 }
 0xb12   :  { %3326 = vpow2.f32 %v3168_v14  ;;  %v1850_v14 = vpop.f32.mrf.mxu2 }
 0xb13   :  { %v1931_v24 = vpop.f32.mrf.mxu0 }
 0xb14   :  { %v3323_v28 = vpop.eup %3322  ;;  %1935 = vrot.lane.b32.xlu1 %v1931_v24, %s3640_s27 }
 0xb15   :  { %v1892_v33 = vadd.f32 1.0, %v3323_v28 }
 0xb16   :  { %v3325_v59 = vpop.eup %3324 }
 0xb17   :  { %v1725_v32 = vadd.f32 1.0, %v3325_v59  ;;  %3328 = vrcp.f32 %v1892_v33  ;;  %v1902_v41 = vand.u32 2147483647, %v1892_v33  ;;  %v1904_v21 = vand.u32 2147483648, %v1892_v33 }
 0xb18   :  { %v3327_v12 = vpop.eup %3326  ;;  %vm1898_vm3 = vweird.f32 %v1892_v33 }
 0xb19   :  { %3330 = vrcp.f32 %v1725_v32  ;;  %v1791_v5 = vadd.f32 1.0, %v3327_v12  ;;  %v1735_v57 = vand.u32 2147483647, %v1725_v32  ;;  %v1737_v29 = vand.u32 2147483648, %v1725_v32 }
 0xb1a   :  { %vm1731_vm5 = vweird.f32 %v1725_v32  ;;  %v1905_v24 = vor.u32 1.1754944e-38, %v1904_v21  ;;  %vm1903_vm8 = vcmp.eq.f32.partialorder %v1902_v41, 8.507059e+37 }
 0xb1b   :  { %3332 = vrcp.f32 %v1791_v5  ;;  %vm1736_vm11 = vcmp.eq.f32.partialorder %v1735_v57, 8.507059e+37  ;;  %vm1797_vm13 = vweird.f32 %v1791_v5 }
 0xb1d   :  { %v3329_v16 = vpop.eup %3328 }
 0xb1e   :  { %v1894_v36 = vmul.f32 %v3329_v16, %v1892_v33  ;;  %vm1899_vm2 = vweird.f32 %v3329_v16  ;;  %v1851_v33 = vadd.f32 %v4228_v55, %v1850_v14 }
 0xb1f   :  { %v3331_v9 = vpop.eup %3330  ;;  %vm1900_vm7 = vmor %vm1898_vm3, %vm1899_vm2 }
 0xb20   :  { %v1727_v13 = vmul.f32 %v3331_v9, %v1725_v32  ;;  %v1895_v49 = vsub.f32 1.0, %v1894_v36  ;;  %vm1732_vm4 = vweird.f32 %v3331_v9  ;;  %v1738_v36 = vor.u32 1.1754944e-38, %v1737_v29 }
 0xb21   :  { %v3333_v40 = vpop.eup %3332  ;;  %vm1733_vm10 = vmor %vm1731_vm5, %vm1732_vm4  ;;  %v1803_v32 = vand.u32 2147483648, %v1791_v5 }
 0xb22   :  { %v1793_v26 = vmul.f32 %v3333_v40, %v1791_v5  ;;  %v1728_v10 = vsub.f32 1.0, %v1727_v13  ;;  %v1896_v8 = vmul.f32 %v3329_v16, %v1895_v49  ;;  %vm1798_vm12 = vweird.f32 %v3333_v40 }
 0xb23   :  { %vm1799_vm14 = vmor %vm1797_vm13, %vm1798_vm12  ;;  %v1804_v29 = vor.u32 1.1754944e-38, %v1803_v32 }
 0xb24   :  { %v1794_v23 = vsub.f32 1.0, %v1793_v26  ;;  %v1729_v38 = vmul.f32 %v3331_v9, %v1728_v10  ;;  %v1897_v25 = vadd.f32 %v3329_v16, %v1896_v8 }
 0xb26   :  { %v1795_v28 = vmul.f32 %v3333_v40, %v1794_v23  ;;  %v1730_v59 = vadd.f32 %v3331_v9, %v1729_v38  ;;  %v1901_v12 = vsel %vm1900_vm7, %v3329_v16, %v1897_v25  ;;  %v1801_v16 = vand.u32 2147483647, %v1791_v5 }
 0xb27   :  { %v1906_v13 = vsel %vm1903_vm8, %v1905_v24, %v1901_v12 }
 0xb28   :  { %v1734_v49 = vsel %vm1733_vm10, %v3331_v9, %v1730_v59  ;;  %v1984_v26 = vmul.f32 %v1982_v53, %v1906_v13  ;;  %v1796_v8 = vadd.f32 %v3333_v40, %v1795_v28  ;;  %vm1802_vm15 = vcmp.eq.f32.partialorder %v1801_v16, 8.507059e+37 }
 0xb29   :  { %v1739_v10 = vsel %vm1736_vm11, %v1738_v36, %v1734_v49 }
 0xb2a   :  { %v1853_v54 = vmul.f32 %v1851_v33, %v1739_v10  ;;  %1986 = vrot.lane.b32.xlu0 %v1984_v26, %s3645_s2  ;;  %v1800_v21 = vsel %vm1799_vm14, %v3333_v40, %v1796_v8 }
 0xb2b   :  { %v1805_v9 = vsel %vm1802_vm15, %v1804_v29, %v1800_v21 }
 0xb2c   :  { %v1854_v41 = vadd.f32 %v1853_v54, %v1831_v63  ;;  %v1856_v57 = vsub.f32 1.0, %v1805_v9  ;;  %v1858_v25 = vmul.f32 %v1805_v9, %v4237_v1 }
 0xb2e   :  { %3334 = vtanh.f32 %v1854_v41 }
 0xb34   :  { %v3335_v23 = vpop.eup %3334 }
 0xb35   :  { %v1857_v38 = vmul.f32 %v3335_v23, %v1856_v57  ;;  %v3467_v57 = vld [vmem:[#allocation8 + $0x38] sm:$0xff] }
 0xb37   :  { %v4319_v53 = vadd.f32 %v1858_v25, %v1857_v38 }
 0xb39   :  { %1861 = vst.msk [vmem:[#allocation2 + $0x8] sm:$0x3] %vm548_vm6, %v4319_v53  ;;  %3176 = vmatmul.msk.f32.vlgmr.msrb.gmra.mxu2 %vm234_vm9, %v4319_v53  ;;  %3179 = vmatmul.msk.f32.vlgmr.msra.gmra.mxu0 %vm234_vm9, %v4319_v53 }
 0xb3a   :  { %2304 = vmatpush.msrb.mxu2 %v4099_v37  ;;  %2369 = vmatpush.msra.mxu0 %v4102_v31 }
 0xb3c   :  { %2305 = vmatpush.msrb.mxu2 %v4105_v7  ;;  %2370 = vmatpush.msra.mxu0 %v4108_v6 }
 0xb3e   :  { %2306 = vmatpush.msrb.mxu2 %v4111_v61  ;;  %2371 = vmatpush.msra.mxu0 %v4114_v45 }
 0xb40   :  { %2307 = vmatpush.msrb.mxu2 %v4117_v30  ;;  %2372 = vmatpush.msra.mxu0 %v4120_v15  ;;  %v4335_v1 = vld [vmem:[#allocation2 + $0x8] sm:$0x3] }
 0xb41   :  { %2877 = vst [vmem:[#allocation1 + $0x20] ss:$4 sm:$0xff] %v4335_v1 }
 0xb86   :  { %v1936_v7 = vpop.permute.xlu1 %1935 }
 0xb87   :  { %v1938_v6 = vadd.f32 %v1936_v7, %v4308_v56 }
 0xb89   :  { %v3174_v61 = vmul.f32 -1.442695, %v1938_v6 }
 0xb9c   :  { %v1987_v58 = vpop.permute.xlu0 %1986 }
 0xb9d   :  { %v1989_v37 = vadd.f32 %v1987_v58, %v4308_v56 }
 0xb9f   :  { %3336 = vtanh.f32 %v1989_v37 }
 0xba0   :  { %3338 = vpow2.f32 %v3174_v61 }
 0xba5   :  { %v3337_v31 = vpop.eup %3336 }
 0xba6   :  { %1993 = vrot.lane.b32.xlu2 %v3337_v31, %s3646_s3  ;;  %v3339_v45 = vpop.eup %3338 }
 0xba7   :  { %v1942_v30 = vadd.f32 1.0, %v3339_v45 }
 0xba9   :  { %3340 = vrcp.f32 %v1942_v30  ;;  %v1954_v28 = vand.u32 2147483648, %v1942_v30  ;;  %vm1948_vm1 = vweird.f32 %v1942_v30  ;;  %v1952_v59 = vand.u32 2147483647, %v1942_v30 }
 0xbab   :  { %v1955_v36 = vor.u32 1.1754944e-38, %v1954_v28  ;;  %vm1953_vm3 = vcmp.eq.f32.partialorder %v1952_v59, 8.507059e+37 }
 0xbaf   :  { %v3341_v15 = vpop.eup %3340 }
 0xbb0   :  { %v1944_v5 = vmul.f32 %v3341_v15, %v1942_v30  ;;  %vm1949_vm0 = vweird.f32 %v3341_v15 }
 0xbb1   :  { %vm1950_vm2 = vmor %vm1948_vm1, %vm1949_vm0 }
 0xbb2   :  { %v1945_v40 = vsub.f32 1.0, %v1944_v5 }
 0xbb4   :  { %v1946_v14 = vmul.f32 %v3341_v15, %v1945_v40 }
 0xbb6   :  { %v1947_v24 = vadd.f32 %v3341_v15, %v1946_v14 }
 0xbb8   :  { %v1951_v12 = vsel %vm1950_vm2, %v3341_v15, %v1947_v24 }
 0xbb9   :  { %v1956_v13 = vsel %vm1953_vm3, %v1955_v36, %v1951_v12 }
 0xbba   :  { %v1991_v56 = vsub.f32 1.0, %v1956_v13  ;;  %v1997_v33 = vmul.f32 %v1956_v13, %v4257_v4  ;;  %v4391_v13 = vld [vmem:[#allocation9 + $0x1] ss:$0 sm:$0xff] }
 0xc00   :  { %v1994_v49 = vpop.permute.xlu2 %1993 }
 0xc01   :  { %v1996_v26 = vmul.f32 %v1994_v49, %v1991_v56 }
 0xc03   :  { %v4342_v10 = vadd.f32 %v1997_v33, %v1996_v26 }
 0xc05   :  { %2023 = vst [vmem:[#allocation1] ss:$4 sm:$0xff] %v4342_v10 }
 0xc0c   :  { %v2024_v8 = vld.sshfl [vmem:[#allocation1] sm:$0xff pattern:$0x73625140] }
 0xc0d   :  { %2089 = vst [vmem:[#allocation1] ss:$4 sm:$0xff] %v4342_v10 }
 0xc14   :  { %v2090_v63 = vld.sshfl [vmem:[#allocation1] sm:$0xff pattern:$0x73625140] }
 0xc15   :  { %2135 = vst [vmem:[#allocation1] ss:$4 sm:$0xff] %v4342_v10 }
 0xc1c   :  { %v2136_v32 = vld.sshfl [vmem:[#allocation1] sm:$0xff pattern:$0x73625140] }
 0xc1d   :  { %2137 = vrot.lane.b32.xlu1 %v2136_v32, %s3646_s3  ;;  %2190 = vst [vmem:[#allocation1] ss:$4 sm:$0xff] %v4342_v10 }
 0xc24   :  { %v2191_v54 = vld.sshfl [vmem:[#allocation1] sm:$0xff pattern:$0x73625140] }
 0xc25   :  { %2192 = vrot.lane.b32.xlu0 %v2191_v54, %s3646_s3  ;;  %2236 = vst [vmem:[#allocation1] ss:$4 sm:$0xff] %v4342_v10 }
 0xc2c   :  { %v2237_v4 = vld.sshfl [vmem:[#allocation1] sm:$0xff pattern:$0x73625140] }
 0xc2d   :  { %2091 = vrot.lane.b32.xlu0 %v2090_v63, %s3646_s3  ;;  %2238 = vrot.lane.b32.xlu1 %v2237_v4, %s3646_s3  ;;  %2286 = vst [vmem:[#allocation1] ss:$4 sm:$0xff] %v4342_v10 }
 0xc34   :  { %v2287_v16 = vld.sshfl [vmem:[#allocation1] sm:$0xff pattern:$0x73625140] }
 0xc35   :  { %2288 = vrot.lane.b32.xlu2 %v2287_v16, %s3646_s3 }
 0xc3d   :  { %2025 = vrot.lane.b32.xlu2 %v2024_v8, %s3646_s3 }
 0xc8f   :  { %v2138_v41 = vpop.permute.xlu1 %2137  ;;  %v2289_v21 = vpop.permute.xlu2 %2288 }
 0xc90   :  { %3182 = vmatmul.msk.f32.vlgmr.msra.gmra.mxu2 %vm234_vm9, %v2138_v41 }
 0xc91   :  { %2435 = vmatpush.msra.mxu2 %v4142_v18  ;;  %v3468_v18 = vld [vmem:[#allocation8 + $0x30] sm:$0xff] }
 0xc93   :  { %2436 = vmatpush.msra.mxu2 %v4145_v22  ;;  %v3469_v22 = vld [vmem:[#allocation8 + $0x28] sm:$0xff] }
 0xc95   :  { %2437 = vmatpush.msra.mxu2 %v4148_v35 }
 0xc97   :  { %v2193_v29 = vpop.permute.xlu0 %2192  ;;  %v2026_v9 = vpop.permute.xlu2 %2025  ;;  %2438 = vmatpush.msra.mxu2 %v4151_v42  ;;  %v3470_v42 = vld [vmem:[#allocation8 + $0x20] sm:$0xff] }
 0xc98   :  { %3177 = vmatmul.msk.f32.vlgmr.msrb.gmra.mxu3 %vm234_vm9, %v2026_v9  ;;  %3184 = vmatmul.msk.f32.vlgmr.msrb.gmra.mxu0 %vm234_vm9, %v2193_v29 }
 0xc99   :  { %3188 = vmatmul.msk.f32.vlgmr.msrb.gmra.mxu2 %vm234_vm9, %v2289_v21  ;;  %2342 = vmatpush.msrb.mxu3 %v4157_v43 }
 0xc9a   :  { %2501 = vmatpush.msrb.mxu0 %v4160_v44  ;;  %2582 = vmatpush.msrb.mxu2 %v3467_v57  ;;  %v3471_v44 = vld [vmem:[#allocation8 + $0x18] sm:$0xff] }
 0xc9b   :  { %2343 = vmatpush.msrb.mxu3 %v4164_v50  ;;  %v3472_v50 = vld [vmem:[#allocation8 + $0x10] sm:$0xff] }
 0xc9c   :  { %2502 = vmatpush.msrb.mxu0 %v4167_v51  ;;  %2583 = vmatpush.msrb.mxu2 %v3468_v18  ;;  %v3473_v51 = vld [vmem:[#allocation8 + $0x8] sm:$0xff] }
 0xc9d   :  { %2344 = vmatpush.msrb.mxu3 %v4171_v60  ;;  %v3474_v60 = vld [vmem:[#allocation8] sm:$0xff] }
 0xc9e   :  { %2503 = vmatpush.msrb.mxu0 %v4174_v52  ;;  %2584 = vmatpush.msrb.mxu2 %v3469_v22  ;;  %v2086_v52 = vpop.f32.mrf.mxu0 }
 0xc9f   :  { %v2092_v35 = vpop.permute.xlu0 %2091  ;;  %2345 = vmatpush.msrb.mxu3 %v4178_v3  ;;  %v2239_v43 = vpop.permute.xlu1 %2238  ;;  %v4385_v3 = vrot.slane %v4221_v2, 4 }
 0xca0   :  { %3180 = vmatmul.msk.f32.vlgmr.msrb.gmra.mxu1 %vm234_vm9, %v2092_v35  ;;  %3183 = vmatmul.msk.f32.vlgmr.msra.gmra.mxu3 %vm234_vm9, %v4319_v53 }
 0xca1   :  { %2409 = vmatpush.msrb.mxu1 %v4184_v11  ;;  %2481 = vmatpush.msra.mxu3 %v4187_v17 }
 0xca2   :  { %2504 = vmatpush.msrb.mxu0 %v4190_v0  ;;  %2585 = vmatpush.msrb.mxu2 %v3470_v42 }
 0xca3   :  { %2410 = vmatpush.msrb.mxu1 %v4194_v46  ;;  %2482 = vmatpush.msra.mxu3 %v4197_v47  ;;  %v2019_v46 = vpop.f32.mrf.mxu2 }
 0xca5   :  { %2411 = vmatpush.msrb.mxu1 %v4200_v19  ;;  %2483 = vmatpush.msra.mxu3 %v4203_v48 }
 0xca7   :  { %2412 = vmatpush.msrb.mxu1 %v4206_v20  ;;  %2484 = vmatpush.msra.mxu3 %v4209_v62 }
 0xca8   :  { %3186 = vmatmul.msk.f32.vlgmr.msra.gmra.mxu1 %vm234_vm9, %v2239_v43 }
 0xca9   :  { %2536 = vmatpush.msra.mxu1 %v3471_v44 }
 0xcab   :  { %2537 = vmatpush.msra.mxu1 %v3472_v50 }
 0xcad   :  { %2538 = vmatpush.msra.mxu1 %v3473_v51 }
 0xcaf   :  { %2539 = vmatpush.msra.mxu1 %v3474_v60 }
 0xd13   :  { %v2158_v31 = vpop.f32.mrf.mxu2 }
 0xd14   :  { %v2159_v43 = vadd.f32 %v4232_v39, %v2158_v31  ;;  %v3476_v39 = vld [vmem:[#allocation8 + $0x58] sm:$0xff] }
 0xd15   :  { %v2213_v11 = vpop.f32.mrf.mxu0 }
 0xd16   :  { %v2216_v17 = vadd.f32 %v2213_v11, %v4385_v3 }
 0xd18   :  { %v3185_v0 = vmul.f32 -1.442695, %v2216_v17 }
 0xd1a   :  { %3342 = vpow2.f32 %v3185_v0 }
 0xd1b   :  { %v2046_v47 = vpop.f32.mrf.mxu3 }
 0xd1c   :  { %v2047_v19 = vadd.f32 %v2046_v47, %v2019_v46  ;;  %v2309_v24 = vpop.f32.mrf.mxu2 }
 0xd1d   :  { %v2112_v48 = vpop.f32.mrf.mxu1  ;;  %v2310_v56 = vadd.f32 %v4391_v13, %v2309_v24 }
 0xd1e   :  { %v2049_v20 = vadd.f32 %v4615_v34, %v2047_v19  ;;  %v2113_v62 = vadd.f32 %v2112_v48, %v2086_v52  ;;  %v3477_v48 = vld [vmem:[#allocation8 + $0x78] sm:$0xff] }
 0xd20   :  { %v3343_v23 = vpop.eup %3342  ;;  %v3178_v38 = vmul.f32 -1.442695, %v2049_v20  ;;  %v2115_v25 = vadd.f32 %v4616_v27, %v2113_v62  ;;  %v3478_v20 = vld [vmem:[#allocation8 + $0x50] sm:$0xff] }
 0xd21   :  { %v2220_v58 = vadd.f32 1.0, %v3343_v23  ;;  %v3479_v62 = vld [vmem:[#allocation8 + $0x70] sm:$0xff]  ;;  %v3481_v23 = vld [vmem:[#allocation8 + $0x68] sm:$0xff] }
 0xd22   :  { %3344 = vpow2.f32 %v3178_v38  ;;  %v3181_v37 = vmul.f32 -1.442695, %v2115_v25  ;;  %v3482_v38 = vld [vmem:[#allocation8 + $0x40] sm:$0xff] }
 0xd23   :  { %3346 = vrcp.f32 %v2220_v58  ;;  %v2232_v40 = vand.u32 2147483648, %v2220_v58  ;;  %v2230_v14 = vand.u32 2147483647, %v2220_v58  ;;  %vm2226_vm5 = vweird.f32 %v2220_v58  ;;  %v2178_v21 = vpop.f32.mrf.mxu3  ;;  %v3483_v25 = vld [vmem:[#allocation8 + $0x60] sm:$0xff] }
 0xd24   :  { %3348 = vpow2.f32 %v3181_v37  ;;  %v2179_v22 = vadd.f32 %v4228_v55, %v2178_v21  ;;  %v3484_v21 = vld [vmem:[#allocation8 + $0x98] sm:$0xff] }
 0xd25   :  { %v2259_v7 = vpop.f32.mrf.mxu1  ;;  %v2233_v12 = vor.u32 1.1754944e-38, %v2232_v40  ;;  %vm2231_vm8 = vcmp.eq.f32.partialorder %v2230_v14, 8.507059e+37 }
 0xd26   :  { %2263 = vrot.lane.b32.xlu1 %v2259_v7, %s3640_s27 }
 0xd28   :  { %v3345_v6 = vpop.eup %3344 }
 0xd29   :  { %v3347_v61 = vpop.eup %3346  ;;  %v2053_v45 = vadd.f32 1.0, %v3345_v6 }
 0xd2a   :  { %v3349_v30 = vpop.eup %3348  ;;  %v2222_v15 = vmul.f32 %v3347_v61, %v2220_v58  ;;  %vm2227_vm4 = vweird.f32 %v3347_v61 }
 0xd2b   :  { %3350 = vrcp.f32 %v2053_v45  ;;  %v2119_v34 = vadd.f32 1.0, %v3349_v30  ;;  %vm2228_vm7 = vmor %vm2226_vm5, %vm2227_vm4  ;;  %v2065_v54 = vand.u32 2147483648, %v2053_v45  ;;  %v2063_v41 = vand.u32 2147483647, %v2053_v45 }
 0xd2c   :  { %v2223_v5 = vsub.f32 1.0, %v2222_v15  ;;  %vm2059_vm11 = vweird.f32 %v2053_v45 }
 0xd2d   :  { %3352 = vrcp.f32 %v2119_v34  ;;  %v2066_v57 = vor.u32 1.1754944e-38, %v2065_v54  ;;  %vm2064_vm13 = vcmp.eq.f32.partialorder %v2063_v41, 8.507059e+37  ;;  %v2131_v44 = vand.u32 2147483648, %v2119_v34 }
 0xd2e   :  { %v2224_v27 = vmul.f32 %v3347_v61, %v2223_v5  ;;  %vm2125_vm15 = vweird.f32 %v2119_v34  ;;  %v2129_v51 = vand.u32 2147483647, %v2119_v34 }
 0xd2f   :  { %v2132_v11 = vor.u32 1.1754944e-38, %v2131_v44  ;;  %v3491_v44 = vld [vmem:[#allocation8 + $0x110] sm:$0xff] }
 0xd30   :  { %v2225_v28 = vadd.f32 %v3347_v61, %v2224_v27  ;;  %vm2130_vm1 = vcmp.eq.f32.partialorder %v2129_v51, 8.507059e+37  ;;  %v3493_v51 = vld [vmem:[#allocation8 + $0x108] sm:$0xff] }
 0xd31   :  { %v3351_v59 = vpop.eup %3350 }
 0xd32   :  { %v2229_v36 = vsel %vm2228_vm7, %v3347_v61, %v2225_v28  ;;  %v2055_v49 = vmul.f32 %v3351_v59, %v2053_v45  ;;  %vm2060_vm10 = vweird.f32 %v3351_v59 }
 0xd33   :  { %v3353_v33 = vpop.eup %3352  ;;  %v2234_v26 = vsel %vm2231_vm8, %v2233_v12, %v2229_v36  ;;  %vm2061_vm12 = vmor %vm2059_vm11, %vm2060_vm10 }
 0xd34   :  { %v2312_v8 = vmul.f32 %v2310_v56, %v2234_v26  ;;  %v2121_v63 = vmul.f32 %v3353_v33, %v2119_v34  ;;  %v2056_v32 = vsub.f32 1.0, %v2055_v49  ;;  %vm2126_vm14 = vweird.f32 %v3353_v33 }
 0xd35   :  { %vm2127_vm0 = vmor %vm2125_vm15, %vm2126_vm14 }
 0xd36   :  { %v2122_v4 = vsub.f32 1.0, %v2121_v63  ;;  %v2057_v16 = vmul.f32 %v3351_v59, %v2056_v32  ;;  %2314 = vrot.lane.b32.xlu0 %v2312_v8, %s3645_s2 }
 0xd38   :  { %v2123_v29 = vmul.f32 %v3353_v33, %v2122_v4  ;;  %v2058_v9 = vadd.f32 %v3351_v59, %v2057_v16 }
 0xd3a   :  { %v2062_v18 = vsel %vm2061_vm12, %v3351_v59, %v2058_v9  ;;  %v2124_v42 = vadd.f32 %v3353_v33, %v2123_v29  ;;  %v3485_v29 = vld [vmem:[#allocation8 + $0x90] sm:$0xff]  ;;  %v3486_v9 = vld [vmem:[#allocation8 + $0x88] sm:$0xff] }
 0xd3b   :  { %v2067_v35 = vsel %vm2064_vm13, %v2066_v57, %v2062_v18 }
 0xd3c   :  { %v2181_v50 = vmul.f32 %v2179_v22, %v2067_v35  ;;  %v2128_v52 = vsel %vm2127_vm0, %v3353_v33, %v2124_v42  ;;  %v3487_v22 = vld [vmem:[#allocation8 + $0x80] sm:$0xff]  ;;  %v3488_v35 = vld [vmem:[#allocation8 + $0xd8] sm:$0xff] }
 0xd3d   :  { %v2133_v17 = vsel %vm2130_vm1, %v2132_v11, %v2128_v52  ;;  %v3489_v42 = vld [vmem:[#allocation8 + $0x118] sm:$0xff]  ;;  %v3494_v52 = vld [vmem:[#allocation8 + $0xc0] sm:$0xff] }
 0xd3e   :  { %v2182_v60 = vadd.f32 %v2181_v50, %v2159_v43  ;;  %v2184_v0 = vsub.f32 1.0, %v2133_v17  ;;  %v2186_v55 = vmul.f32 %v2133_v17, %v4319_v53  ;;  %v3480_v53 = vld [vmem:[#allocation8 + $0x48] sm:$0xff]  ;;  %v3490_v43 = vld [vmem:[#allocation8 + $0xd0] sm:$0xff]  ;;  %v3495_v11 = vld [vmem:[#allocation8 + $0xf8] sm:$0xff] }
 0xd3f   :  { %v3492_v50 = vld [vmem:[#allocation8 + $0xc8] sm:$0xff]  ;;  %v3496_v17 = vld [vmem:[#allocation8 + $0xb8] sm:$0xff] }
 0xd40   :  { %3354 = vtanh.f32 %v2182_v60 }
 0xd46   :  { %v3355_v46 = vpop.eup %3354 }
 0xd47   :  { %v2185_v47 = vmul.f32 %v3355_v46, %v2184_v0  ;;  %v3497_v0 = vld [vmem:[#allocation8 + $0x100] sm:$0xff]  ;;  %v3498_v46 = vld [vmem:[#allocation8 + $0xf0] sm:$0xff] }
 0xd49   :  { %v4398_v19 = vadd.f32 %v2186_v55, %v2185_v47  ;;  %v3499_v47 = vld [vmem:[#allocation8 + $0xb0] sm:$0xff]  ;;  %v3500_v55 = vld [vmem:[#allocation8 + $0xe8] sm:$0xff] }
 0xd4b   :  { %2189 = vst.msk [vmem:[#allocation2 + $0xa] sm:$0x3] %vm548_vm6, %v4398_v19  ;;  %3189 = vmatmul.msk.f32.vlgmr.msrb.gmra.mxu3 %vm234_vm9, %v4398_v19  ;;  %3192 = vmatmul.msk.f32.vlgmr.msrb.gmra.mxu1 %vm234_vm9, %v4398_v19 }
 0xd4c   :  { %2632 = vmatpush.msrb.mxu3 %v3476_v39  ;;  %2697 = vmatpush.msrb.mxu1 %v3477_v48  ;;  %v3501_v39 = vld [vmem:[#allocation8 + $0xa8] sm:$0xff] }
 0xd4e   :  { %2633 = vmatpush.msrb.mxu3 %v3478_v20  ;;  %2698 = vmatpush.msrb.mxu1 %v3479_v62  ;;  %v3502_v20 = vld [vmem:[#allocation8 + $0xe0] sm:$0xff] }
 0xd4f   :  { %v3503_v62 = vld [vmem:[#allocation8 + $0xa0] sm:$0xff] }
 0xd50   :  { %2634 = vmatpush.msrb.mxu3 %v3480_v53  ;;  %2699 = vmatpush.msrb.mxu1 %v3481_v23 }
 0xd52   :  { %2635 = vmatpush.msrb.mxu3 %v3482_v38  ;;  %2700 = vmatpush.msrb.mxu1 %v3483_v25  ;;  %v4406_v58 = vld [vmem:[#allocation2 + $0xa] sm:$0x3]  ;;  %v4436_v38 = vrot.slane %v4221_v2, 6 }
 0xd53   :  { %2879 = vst [vmem:[#allocation1 + $0x21] ss:$4 sm:$0xff] %v4406_v58 }
 0xd98   :  { %v2264_v6 = vpop.permute.xlu1 %2263 }
 0xd99   :  { %v2266_v61 = vadd.f32 %v2264_v6, %v4385_v3  ;;  %v4439_v6 = vld [vmem:[#allocation9 + $0x2] ss:$0 sm:$0xff] }
 0xd9b   :  { %v3187_v45 = vmul.f32 -1.442695, %v2266_v61 }
 0xda8   :  { %v2315_v37 = vpop.permute.xlu0 %2314 }
 0xda9   :  { %v2317_v31 = vadd.f32 %v2315_v37, %v4385_v3 }
 0xdab   :  { %3356 = vtanh.f32 %v2317_v31 }
 0xdac   :  { %3358 = vpow2.f32 %v3187_v45 }
 0xdb1   :  { %v3357_v7 = vpop.eup %3356 }
 0xdb2   :  { %2321 = vrot.lane.b32.xlu2 %v3357_v7, %s3646_s3  ;;  %v3359_v30 = vpop.eup %3358 }
 0xdb3   :  { %v2270_v15 = vadd.f32 1.0, %v3359_v30 }
 0xdb5   :  { %3360 = vrcp.f32 %v2270_v15  ;;  %v2282_v24 = vand.u32 2147483648, %v2270_v15  ;;  %vm2276_vm3 = vweird.f32 %v2270_v15  ;;  %v2280_v28 = vand.u32 2147483647, %v2270_v15 }
 0xdb7   :  { %v2283_v12 = vor.u32 1.1754944e-38, %v2282_v24  ;;  %vm2281_vm5 = vcmp.eq.f32.partialorder %v2280_v28, 8.507059e+37  ;;  %v4442_v24 = vld [vmem:[#allocation9 + $0x3] ss:$0 sm:$0xff] }
 0xdbb   :  { %v3361_v34 = vpop.eup %3360 }
 0xdbc   :  { %v2272_v5 = vmul.f32 %v3361_v34, %v2270_v15  ;;  %vm2277_vm2 = vweird.f32 %v3361_v34 }
 0xdbd   :  { %vm2278_vm4 = vmor %vm2276_vm3, %vm2277_vm2 }
 0xdbe   :  { %v2273_v40 = vsub.f32 1.0, %v2272_v5 }
 0xdc0   :  { %v2274_v27 = vmul.f32 %v3361_v34, %v2273_v40 }
 0xdc2   :  { %v2275_v14 = vadd.f32 %v3361_v34, %v2274_v27 }
 0xdc4   :  { %v2279_v59 = vsel %vm2278_vm4, %v3361_v34, %v2275_v14 }
 0xdc5   :  { %v2284_v36 = vsel %vm2281_vm5, %v2283_v12, %v2279_v59 }
 0xdc6   :  { %v2319_v3 = vsub.f32 1.0, %v2284_v36  ;;  %v2325_v49 = vmul.f32 %v2284_v36, %v4342_v10 }
 0xdc8   :  { %v2414_v53 = vpop.f32.mrf.mxu1 }
 0xdce   :  { %v2347_v23 = vpop.f32.mrf.mxu3 }
 0xe0c   :  { %v2322_v56 = vpop.permute.xlu2 %2321 }
 0xe0d   :  { %v2324_v33 = vmul.f32 %v2322_v56, %v2319_v3 }
 0xe0f   :  { %v4413_v26 = vadd.f32 %v2325_v49, %v2324_v33 }
 0xe11   :  { %2351 = vst [vmem:[#allocation1] ss:$4 sm:$0xff] %v4413_v26 }
 0xe18   :  { %v2352_v8 = vld.sshfl [vmem:[#allocation1] sm:$0xff pattern:$0x73625140] }
 0xe19   :  { %2417 = vst [vmem:[#allocation1] ss:$4 sm:$0xff] %v4413_v26 }
 0xe20   :  { %v2418_v63 = vld.sshfl [vmem:[#allocation1] sm:$0xff pattern:$0x73625140] }
 0xe21   :  { %2463 = vst [vmem:[#allocation1] ss:$4 sm:$0xff] %v4413_v26 }
 0xe28   :  { %v2464_v32 = vld.sshfl [vmem:[#allocation1] sm:$0xff pattern:$0x73625140] }
 0xe29   :  { %2465 = vrot.lane.b32.xlu1 %v2464_v32, %s3646_s3  ;;  %2518 = vst [vmem:[#allocation1] ss:$4 sm:$0xff] %v4413_v26 }
 0xe30   :  { %v2519_v54 = vld.sshfl [vmem:[#allocation1] sm:$0xff pattern:$0x73625140] }
 0xe31   :  { %2520 = vrot.lane.b32.xlu0 %v2519_v54, %s3646_s3  ;;  %2564 = vst [vmem:[#allocation1] ss:$4 sm:$0xff] %v4413_v26 }
 0xe38   :  { %v2565_v10 = vld.sshfl [vmem:[#allocation1] sm:$0xff pattern:$0x73625140] }
 0xe39   :  { %2419 = vrot.lane.b32.xlu0 %v2418_v63, %s3646_s3  ;;  %2566 = vrot.lane.b32.xlu1 %v2565_v10, %s3646_s3  ;;  %2614 = vst [vmem:[#allocation1] ss:$4 sm:$0xff] %v4413_v26 }
 0xe40   :  { %v2615_v4 = vld.sshfl [vmem:[#allocation1] sm:$0xff pattern:$0x73625140] }
 0xe41   :  { %2616 = vrot.lane.b32.xlu2 %v2615_v4, %s3646_s3 }
 0xe49   :  { %2353 = vrot.lane.b32.xlu2 %v2352_v8, %s3646_s3 }
 0xe9b   :  { %v2466_v16 = vpop.permute.xlu1 %2465  ;;  %v2617_v41 = vpop.permute.xlu2 %2616 }
 0xe9c   :  { %3195 = vmatmul.msk.f32.vlgmr.msra.gmra.mxu3 %vm234_vm9, %v2466_v16 }
 0xe9d   :  { %2763 = vmatpush.msra.mxu3 %v3484_v21 }
 0xe9f   :  { %2764 = vmatpush.msra.mxu3 %v3485_v29 }
 0xea1   :  { %2765 = vmatpush.msra.mxu3 %v3486_v9 }
 0xea3   :  { %v2521_v57 = vpop.permute.xlu0 %2520  ;;  %v2354_v18 = vpop.permute.xlu2 %2353  ;;  %2766 = vmatpush.msra.mxu3 %v3487_v22 }
 0xea4   :  { %3190 = vmatmul.msk.f32.vlgmr.msra.gmra.mxu0 %vm234_vm9, %v2354_v18  ;;  %3197 = vmatmul.msk.f32.vlgmr.msra.gmra.mxu1 %vm234_vm9, %v2521_v57 }
 0xea5   :  { %3201 = vmatmul.msk.f32.vlgmr.msrb.gmra.mxu3 %vm234_vm9, %v2617_v41  ;;  %2670 = vmatpush.msra.mxu0 %v3488_v35 }
 0xea6   :  { %2829 = vmatpush.msra.mxu1 %v3489_v42 }
 0xea7   :  { %2671 = vmatpush.msra.mxu0 %v3490_v43 }
 0xea8   :  { %2830 = vmatpush.msra.mxu1 %v3491_v44 }
 0xea9   :  { %2672 = vmatpush.msra.mxu0 %v3492_v50 }
 0xeaa   :  { %2831 = vmatpush.msra.mxu1 %v3493_v51 }
 0xeab   :  { %v2420_v60 = vpop.permute.xlu0 %2419  ;;  %2673 = vmatpush.msra.mxu0 %v3494_v52  ;;  %v2567_v48 = vpop.permute.xlu1 %2566  ;;  %v4447_v52 = vld [vmem:[#allocation9 + $0x5] ss:$0 sm:$0xff] }
 0xeac   :  { %3193 = vmatmul.msk.f32.vlgmr.msra.gmra.mxu2 %vm234_vm9, %v2420_v60  ;;  %3196 = vmatmul.msk.f32.vlgmr.msrb.gmra.mxu0 %vm234_vm9, %v4398_v19 }
 0xead   :  { %2737 = vmatpush.msra.mxu2 %v3495_v11  ;;  %2809 = vmatpush.msrb.mxu0 %v3496_v17 }
 0xeae   :  { %2832 = vmatpush.msra.mxu1 %v3497_v0  ;;  %v4451_v0 = vld [vmem:[#allocation9 + $0x4] ss:$0 sm:$0xff] }
 0xeaf   :  { %2738 = vmatpush.msra.mxu2 %v3498_v46  ;;  %2810 = vmatpush.msrb.mxu0 %v3499_v47 }
 0xeb1   :  { %2739 = vmatpush.msra.mxu2 %v3500_v55  ;;  %2811 = vmatpush.msrb.mxu0 %v3501_v39 }
 0xeb3   :  { %2740 = vmatpush.msra.mxu2 %v3502_v20  ;;  %2812 = vmatpush.msrb.mxu0 %v3503_v62 }
 0xeb4   :  { %3199 = vmatmul.msk.f32.vlgmr.msrb.gmra.mxu2 %vm234_vm9, %v2567_v48 }
 0xf1f   :  { %v2486_v27 = vpop.f32.mrf.mxu3 }
 0xf20   :  { %v2487_v46 = vadd.f32 %v4451_v0, %v2486_v27 }
 0xf21   :  { %v2374_v25 = vpop.f32.mrf.mxu0  ;;  %v2541_v37 = vpop.f32.mrf.mxu1 }
 0xf22   :  { %v2375_v31 = vadd.f32 %v2374_v25, %v2347_v23  ;;  %v2544_v7 = vadd.f32 %v2541_v37, %v4436_v38 }
 0xf24   :  { %v2377_v61 = vadd.f32 %v4439_v6, %v2375_v31  ;;  %v3198_v45 = vmul.f32 -1.442695, %v2544_v7 }
 0xf26   :  { %v3191_v30 = vmul.f32 -1.442695, %v2377_v61  ;;  %3362 = vpow2.f32 %v3198_v45 }
 0xf28   :  { %3364 = vpow2.f32 %v3191_v30  ;;  %v2637_v54 = vpop.f32.mrf.mxu3 }
 0xf29   :  { %v2638_v57 = vadd.f32 %v4391_v13, %v2637_v54  ;;  %v2506_v42 = vpop.f32.mrf.mxu0 }
 0xf2a   :  { %v2507_v11 = vadd.f32 %v4447_v52, %v2506_v42  ;;  %v4483_v42 = vld [vmem:[#allocation2 + $0x4] sm:$0x3] }
 0xf2c   :  { %v3363_v15 = vpop.eup %3362 }
 0xf2d   :  { %v2548_v34 = vadd.f32 1.0, %v3363_v15 }
 0xf2e   :  { %v3365_v5 = vpop.eup %3364 }
 0xf2f   :  { %v2381_v40 = vadd.f32 1.0, %v3365_v5  ;;  %3366 = vrcp.f32 %v2548_v34  ;;  %v2440_v2 = vpop.f32.mrf.mxu2  ;;  %v2560_v8 = vand.u32 2147483648, %v2548_v34  ;;  %v2558_v32 = vand.u32 2147483647, %v2548_v34 }
 0xf30   :  { %v2441_v14 = vadd.f32 %v2440_v2, %v2414_v53  ;;  %vm2554_vm8 = vweird.f32 %v2548_v34 }
 0xf31   :  { %3368 = vrcp.f32 %v2381_v40  ;;  %v2393_v4 = vand.u32 2147483648, %v2381_v40  ;;  %v2391_v29 = vand.u32 2147483647, %v2381_v40  ;;  %v2561_v9 = vor.u32 1.1754944e-38, %v2560_v8 }
 0xf32   :  { %v2443_v28 = vadd.f32 %v4442_v24, %v2441_v14  ;;  %vm2559_vm12 = vcmp.eq.f32.partialorder %v2558_v32, 8.507059e+37  ;;  %vm2387_vm13 = vweird.f32 %v2381_v40 }
 0xf33   :  { %v2394_v44 = vor.u32 1.1754944e-38, %v2393_v4  ;;  %vm2392_vm15 = vcmp.eq.f32.partialorder %v2391_v29, 8.507059e+37  ;;  %v126_v4 = vld [vmem:[#allocation8 + $0x130] sm:$0xff] }
 0xf34   :  { %v3194_v59 = vmul.f32 -1.442695, %v2443_v28 }
 0xf35   :  { %v3367_v12 = vpop.eup %3366 }
 0xf36   :  { %v2550_v36 = vmul.f32 %v3367_v12, %v2548_v34  ;;  %3370 = vpow2.f32 %v3194_v59  ;;  %vm2555_vm7 = vweird.f32 %v3367_v12 }
 0xf37   :  { %v3369_v3 = vpop.eup %3368  ;;  %v2587_v56 = vpop.f32.mrf.mxu2  ;;  %vm2556_vm11 = vmor %vm2554_vm8, %vm2555_vm7 }
 0xf38   :  { %v2551_v49 = vsub.f32 1.0, %v2550_v36  ;;  %v2383_v33 = vmul.f32 %v3369_v3, %v2381_v40  ;;  %2591 = vrot.lane.b32.xlu1 %v2587_v56, %s3640_s27  ;;  %vm2388_vm10 = vweird.f32 %v3369_v3 }
 0xf39   :  { %vm2389_vm14 = vmor %vm2387_vm13, %vm2388_vm10 }
 0xf3a   :  { %v2552_v63 = vmul.f32 %v3367_v12, %v2551_v49  ;;  %v2384_v10 = vsub.f32 1.0, %v2383_v33 }
 0xf3c   :  { %v3371_v16 = vpop.eup %3370  ;;  %v2553_v41 = vadd.f32 %v3367_v12, %v2552_v63  ;;  %v2385_v21 = vmul.f32 %v3369_v3, %v2384_v10  ;;  %v127_v10 = vld [vmem:[#allocation8 + $0x138] sm:$0xff] }
 0xf3d   :  { %v2447_v18 = vadd.f32 1.0, %v3371_v16  ;;  %2922 = vmatpush.msrb.mxu2 %v127_v10 }
 0xf3e   :  { %v2557_v22 = vsel %vm2556_vm11, %v3367_v12, %v2553_v41  ;;  %v2386_v35 = vadd.f32 %v3369_v3, %v2385_v21  ;;  %v125_v21 = vld [vmem:[#allocation8 + $0x128] sm:$0xff] }
 0xf3f   :  { %v2562_v43 = vsel %vm2559_vm12, %v2561_v9, %v2557_v22  ;;  %3372 = vrcp.f32 %v2447_v18  ;;  %v2459_v48 = vand.u32 2147483648, %v2447_v18  ;;  %v2457_v62 = vand.u32 2147483647, %v2447_v18  ;;  %2923 = vmatpush.msrb.mxu2 %v126_v4  ;;  %v124_v9 = vld [vmem:[#allocation8 + $0x120] sm:$0xff] }
 0xf40   :  { %v2640_v50 = vmul.f32 %v2638_v57, %v2562_v43  ;;  %v2390_v51 = vsel %vm2389_vm14, %v3369_v3, %v2386_v35  ;;  %vm2453_vm1 = vweird.f32 %v2447_v18  ;;  %v4479_v35 = vld [vmem:[#allocation2 + $0x2] sm:$0x3]  ;;  %v4486_v43 = vld [vmem:[#allocation2 + $0x6] sm:$0x3] }
 0xf41   :  { %v2395_v60 = vsel %vm2392_vm15, %v2394_v44, %v2390_v51  ;;  %v2460_v23 = vor.u32 1.1754944e-38, %v2459_v48  ;;  %vm2458_vm3 = vcmp.eq.f32.partialorder %v2457_v62, 8.507059e+37  ;;  %2924 = vmatpush.msrb.mxu2 %v125_v21 }
 0xf42   :  { %2642 = vrot.lane.b32.xlu0 %v2640_v50, %s3645_s2  ;;  %v2509_v13 = vmul.f32 %v2507_v11, %v2395_v60  ;;  %v4491_v50 = vld [vmem:[#allocation9 + $0x6] ss:$0 sm:$0xff] }
 0xf43   :  { %2925 = vmatpush.msrb.mxu2 %v124_v9 }
 0xf44   :  { %v2510_v55 = vadd.f32 %v2509_v13, %v2487_v46 }
 0xf45   :  { %v3373_v17 = vpop.eup %3372 }
 0xf46   :  { %v2449_v47 = vmul.f32 %v3373_v17, %v2447_v18  ;;  %vm2454_vm0 = vweird.f32 %v3373_v17  ;;  %3374 = vtanh.f32 %v2510_v55 }
 0xf47   :  { %vm2455_vm2 = vmor %vm2453_vm1, %vm2454_vm0 }
 0xf48   :  { %v2450_v39 = vsub.f32 1.0, %v2449_v47 }
 0xf4a   :  { %v2451_v20 = vmul.f32 %v3373_v17, %v2450_v39 }
 0xf4c   :  { %v2452_v53 = vadd.f32 %v3373_v17, %v2451_v20  ;;  %v3375_v7 = vpop.eup %3374  ;;  %v4502_v20 = vld [vmem:[#allocation9 + $0x7] ss:$0 sm:$0xff] }
 0xf4e   :  { %v2456_v25 = vsel %vm2455_vm2, %v3373_v17, %v2452_v53  ;;  %vm3089_vm2 = vcmask 517376  }
 0xf4f   :  { %v2461_v37 = vsel %vm2458_vm3, %v2460_v23, %v2456_v25 }
 0xf50   :  { %v2512_v31 = vsub.f32 1.0, %v2461_v37  ;;  %v2514_v45 = vmul.f32 %v2461_v37, %v4398_v19 }
 0xf52   :  { %v2513_v61 = vmul.f32 %v3375_v7, %v2512_v31 }
 0xf54   :  { %v4455_v30 = vadd.f32 %v2514_v45, %v2513_v61 }
 0xf56   :  { %2517 = vst.msk [vmem:[#allocation2 + $0xc] sm:$0x3] %vm548_vm6, %v4455_v30  ;;  %3202 = vmatmul.msk.f32.vlgmr.msra.gmra.mxu0 %vm234_vm9, %v4455_v30  ;;  %3205 = vmatmul.msk.f32.vlgmr.msra.gmra.mxu2 %vm234_vm9, %v4455_v30 }
 0xf5d   :  { %v4463_v15 = vld [vmem:[#allocation2 + $0xc] sm:$0x3] }
 0xf5e   :  { %2881 = vst [vmem:[#allocation1 + $0x22] ss:$4 sm:$0xff] %v4463_v15 }
 0xfaa   :  { %v2592_v40 = vpop.permute.xlu1 %2591 }
 0xfab   :  { %v2594_v2 = vadd.f32 %v2592_v40, %v4436_v38 }
 0xfad   :  { %v3200_v27 = vmul.f32 -1.442695, %v2594_v2 }
 0xfb4   :  { %v2643_v34 = vpop.permute.xlu0 %2642 }
 0xfb5   :  { %v2645_v5 = vadd.f32 %v2643_v34, %v4436_v38 }
 0xfb7   :  { %3376 = vtanh.f32 %v2645_v5 }
 0xfb8   :  { %3378 = vpow2.f32 %v3200_v27 }
 0xfbd   :  { %v3377_v19 = vpop.eup %3376 }
 0xfbe   :  { %2649 = vrot.lane.b32.xlu2 %v3377_v19, %s3646_s3  ;;  %v3379_v14 = vpop.eup %3378 }
 0xfbf   :  { %v2598_v28 = vadd.f32 1.0, %v3379_v14 }
 0xfc1   :  { %3380 = vrcp.f32 %v2598_v28  ;;  %v2610_v49 = vand.u32 2147483648, %v2598_v28  ;;  %vm2604_vm5 = vweird.f32 %v2598_v28  ;;  %v2608_v33 = vand.u32 2147483647, %v2598_v28 }
 0xfc3   :  { %v2611_v63 = vor.u32 1.1754944e-38, %v2610_v49  ;;  %vm2609_vm8 = vcmp.eq.f32.partialorder %v2608_v33, 8.507059e+37 }
 0xfc7   :  { %v3381_v59 = vpop.eup %3380 }
 0xfc8   :  { %v2600_v12 = vmul.f32 %v3381_v59, %v2598_v28  ;;  %vm2605_vm4 = vweird.f32 %v3381_v59 }
 0xfc9   :  { %vm2606_vm7 = vmor %vm2604_vm5, %vm2605_vm4 }
 0xfca   :  { %v2601_v36 = vsub.f32 1.0, %v2600_v12 }
 0xfcc   :  { %v2602_v3 = vmul.f32 %v3381_v59, %v2601_v36 }
 0xfce   :  { %v2603_v56 = vadd.f32 %v3381_v59, %v2602_v3 }
 0xfd0   :  { %v2607_v8 = vsel %vm2606_vm7, %v3381_v59, %v2603_v56 }
 0xfd1   :  { %v2612_v32 = vsel %vm2609_vm8, %v2611_v63, %v2607_v8 }
 0xfd2   :  { %v2647_v38 = vsub.f32 1.0, %v2612_v32  ;;  %v2653_v16 = vmul.f32 %v2612_v32, %v4413_v26  ;;  %v4477_v26 = vld [vmem:[#allocation2] sm:$0x3] }
 0xfd3   :  { %v2675_v40 = vpop.f32.mrf.mxu0 }
 0xfd9   :  { %v2742_v13 = vpop.f32.mrf.mxu2 }
0x1018   :  { %v2650_v54 = vpop.permute.xlu2 %2649 }
0x1019   :  { %v2652_v41 = vmul.f32 %v2650_v54, %v2647_v38 }
0x101b   :  { %v4470_v29 = vadd.f32 %v2653_v16, %v2652_v41 }
0x101d   :  { %2679 = vst [vmem:[#allocation1] ss:$4 sm:$0xff] %v4470_v29 }
0x1024   :  { %v2680_v57 = vld.sshfl [vmem:[#allocation1] sm:$0xff pattern:$0x73625140] }
0x1025   :  { %2681 = vrot.lane.b32.xlu0 %v2680_v57, %s3646_s3  ;;  %2745 = vst [vmem:[#allocation1] ss:$4 sm:$0xff] %v4470_v29 }
0x102c   :  { %v2746_v18 = vld.sshfl [vmem:[#allocation1] sm:$0xff pattern:$0x73625140] }
0x102d   :  { %2747 = vrot.lane.b32.xlu1 %v2746_v18, %s3646_s3  ;;  %2791 = vst [vmem:[#allocation1] ss:$4 sm:$0xff] %v4470_v29 }
0x1034   :  { %v2792_v22 = vld.sshfl [vmem:[#allocation1] sm:$0xff pattern:$0x73625140] }
0x1035   :  { %2793 = vrot.lane.b32.xlu2 %v2792_v22, %s3646_s3  ;;  %2869 = vst [vmem:[#allocation1] ss:$4 sm:$0xff] %v4477_v26 }
0x1036   :  { %2871 = vst [vmem:[#allocation1 + $0x1] ss:$4 sm:$0xff] %v4479_v35 }
0x1037   :  { %2873 = vst [vmem:[#allocation1 + $0x2] ss:$4 sm:$0xff] %v4483_v42 }
0x1038   :  { %2875 = vst [vmem:[#allocation1 + $0x3] ss:$4 sm:$0xff] %v4486_v43 }
0x103f   :  { %v2884_v44 = vld.sshfl [vmem:[#allocation1] sm:$0xff pattern:$0x73625140] }
0x1040   :  { %3210 = vmatmul.msk.f32.vlgmr.msrb.gmra.mxu2 %vm234_vm9, %v2884_v44  ;;  %2887 = vst [vmem:[#allocation1] ss:$4 sm:$0xff] %v4491_v50 }
0x1041   :  { %2889 = vst [vmem:[#allocation1 + $0x1] ss:$4 sm:$0xff] %v4491_v50 }
0x1042   :  { %2891 = vst [vmem:[#allocation1 + $0x2] ss:$4 sm:$0xff] %v4491_v50 }
0x1043   :  { %2893 = vst [vmem:[#allocation1 + $0x3] ss:$4 sm:$0xff] %v4491_v50 }
0x104a   :  { %v2902_v17 = vld.sshfl [vmem:[#allocation1] sm:$0xff pattern:$0x73625140] }
0x108f   :  { %v2794_v51 = vpop.permute.xlu2 %2793 }
0x1090   :  { %3208 = vmatmul.msk.f32.vlgmr.msrb.gmra.mxu0 %vm234_vm9, %v2794_v51 }
0x1097   :  { %v2682_v60 = vpop.permute.xlu0 %2681 }
0x1098   :  { %3203 = vmatmul.msk.f32.vlgmr.msrb.gmra.mxu1 %vm234_vm9, %v2682_v60 }
0x109f   :  { %v2748_v11 = vpop.permute.xlu1 %2747 }
0x10a0   :  { %3206 = vmatmul.msk.f32.vlgmr.msra.gmra.mxu3 %vm234_vm9, %v2748_v11  ;;  %3209 = vmatmul.msk.f32.vlgmr.msra.gmra.mxu1 %vm234_vm9, %v4455_v30 }
0x10c3   :  { %v2927_v46 = vpop.f32.mrf.mxu2 }
0x10c4   :  { %v2928_v47 = vadd.f32 %v2927_v46, %v2902_v17 }
0x10c6   :  { %v2935_v55 = vrot.slane %v2928_v47, 2  ;;  %v2936_v39 = vrot.slane %v2928_v47, 4  ;;  %3382 = vtanh.f32 %v2928_v47  ;;  %v2937_v48 = vrot.slane %v2928_v47, 6 }
0x10c8   :  { %3384 = vtanh.f32 %v2935_v55 }
0x10c9   :  { %3386 = vtanh.f32 %v2936_v39 }
0x10ca   :  { %3388 = vtanh.f32 %v2937_v48 }
0x10cc   :  { %v3383_v62 = vpop.eup %3382 }
0x10cd   :  { %v2956_v53 = vmul.f32 %v3383_v62, %v4502_v20 }
0x10ce   :  { %v3385_v23 = vpop.eup %3384 }
0x10cf   :  { %v3387_v25 = vpop.eup %3386  ;;  %v2964_v37 = vsel %vm548_vm6, %v2956_v53, 0.0  ;;  %v2957_v31 = vmul.f32 %v3385_v23, %v4502_v20 }
0x10d0   :  { %2965 = vadd.xlane.f32.xlu0 %v2964_v37  ;;  %v2958_v7 = vmul.f32 %v3387_v25, %v4502_v20  ;;  %v3389_v34 = vpop.eup %3388 }
0x10d1   :  { %v2967_v61 = vsel %vm548_vm6, %v2957_v31, 0.0  ;;  %v2959_v5 = vmul.f32 %v3389_v34, %v4502_v20 }
0x10d2   :  { %v2970_v45 = vsel %vm548_vm6, %v2958_v7, 0.0  ;;  %2968 = vadd.xlane.f32.xlu1 %v2967_v61 }
0x10d3   :  { %2971 = vadd.xlane.f32.xlu2 %v2970_v45  ;;  %v2973_v19 = vsel %vm548_vm6, %v2959_v5, 0.0 }
0x10db   :  { %2974 = vadd.xlane.f32.xlu2 %v2973_v19 }
0x110d   :  { %v2814_v57 = vpop.f32.mrf.mxu0 }
0x110e   :  { %v2815_v44 = vadd.f32 %v4451_v0, %v2814_v57 }
0x1115   :  { %v2702_v2 = vpop.f32.mrf.mxu1 }
0x1116   :  { %v2703_v27 = vadd.f32 %v2702_v2, %v2675_v40 }
0x1118   :  { %v2705_v14 = vadd.f32 %v4439_v6, %v2703_v27 }
0x111a   :  { %v3204_v28 = vmul.f32 -1.442695, %v2705_v14 }
0x111c   :  { %3390 = vpow2.f32 %v3204_v28 }
0x111d   :  { %v2834_v16 = vpop.f32.mrf.mxu1 }
0x111e   :  { %v2835_v9 = vadd.f32 %v4447_v52, %v2834_v16 }
0x1122   :  { %v3391_v59 = vpop.eup %3390 }
0x1123   :  { %v2709_v12 = vadd.f32 1.0, %v3391_v59  ;;  %v2768_v36 = vpop.f32.mrf.mxu3 }
0x1124   :  { %v2769_v3 = vadd.f32 %v2768_v36, %v2742_v13 }
0x1125   :  { %3392 = vrcp.f32 %v2709_v12  ;;  %v2721_v32 = vand.u32 2147483648, %v2709_v12  ;;  %v2719_v10 = vand.u32 2147483647, %v2709_v12  ;;  %vm2715_vm11 = vweird.f32 %v2709_v12 }
0x1126   :  { %v2771_v56 = vadd.f32 %v4442_v24, %v2769_v3 }
0x1127   :  { %v2722_v41 = vor.u32 1.1754944e-38, %v2721_v32  ;;  %vm2720_vm13 = vcmp.eq.f32.partialorder %v2719_v10, 8.507059e+37 }
0x1128   :  { %v3207_v49 = vmul.f32 -1.442695, %v2771_v56 }
0x112a   :  { %3394 = vpow2.f32 %v3207_v49 }
0x112b   :  { %v3393_v33 = vpop.eup %3392 }
0x112c   :  { %v2711_v8 = vmul.f32 %v3393_v33, %v2709_v12  ;;  %vm2716_vm10 = vweird.f32 %v3393_v33 }
0x112d   :  { %vm2717_vm12 = vmor %vm2715_vm11, %vm2716_vm10 }
0x112e   :  { %v2712_v63 = vsub.f32 1.0, %v2711_v8 }
0x1130   :  { %v3395_v38 = vpop.eup %3394  ;;  %v2713_v54 = vmul.f32 %v3393_v33, %v2712_v63 }
0x1131   :  { %v2775_v6 = vadd.f32 1.0, %v3395_v38 }
0x1132   :  { %v2714_v4 = vadd.f32 %v3393_v33, %v2713_v54 }
0x1133   :  { %3396 = vrcp.f32 %v2775_v6  ;;  %v2787_v13 = vand.u32 2147483648, %v2775_v6  ;;  %v2785_v46 = vand.u32 2147483647, %v2775_v6  ;;  %vm2781_vm15 = vweird.f32 %v2775_v6 }
0x1134   :  { %v2718_v21 = vsel %vm2717_vm12, %v3393_v33, %v2714_v4 }
0x1135   :  { %v2723_v24 = vsel %vm2720_vm13, %v2722_v41, %v2718_v21  ;;  %v2788_v55 = vor.u32 1.1754944e-38, %v2787_v13  ;;  %vm2786_vm1 = vcmp.eq.f32.partialorder %v2785_v46, 8.507059e+37 }
0x1136   :  { %v2837_v18 = vmul.f32 %v2835_v9, %v2723_v24 }
0x1138   :  { %v2838_v60 = vadd.f32 %v2837_v18, %v2815_v44 }
0x1139   :  { %v3397_v22 = vpop.eup %3396 }
0x113a   :  { %v2777_v51 = vmul.f32 %v3397_v22, %v2775_v6  ;;  %vm2782_vm14 = vweird.f32 %v3397_v22  ;;  %3398 = vtanh.f32 %v2838_v60 }
0x113b   :  { %vm2783_vm0 = vmor %vm2781_vm15, %vm2782_vm14 }
0x113c   :  { %v2778_v11 = vsub.f32 1.0, %v2777_v51 }
0x113e   :  { %v2779_v17 = vmul.f32 %v3397_v22, %v2778_v11 }
0x1140   :  { %v2780_v47 = vadd.f32 %v3397_v22, %v2779_v17  ;;  %v3399_v62 = vpop.eup %3398 }
0x1142   :  { %v2784_v39 = vsel %vm2783_vm0, %v3397_v22, %v2780_v47 }
0x1143   :  { %v2789_v52 = vsel %vm2786_vm1, %v2788_v55, %v2784_v39  ;;  %v2966_v49 = vpop.xlane.xlu0 %2965 }
0x1144   :  { %v2840_v48 = vsub.f32 1.0, %v2789_v52  ;;  %v2842_v0 = vmul.f32 %v2789_v52, %v4455_v30 }
0x1145   :  { %v2969_v33 = vpop.xlane.xlu1 %2968 }
0x1146   :  { %v2841_v53 = vmul.f32 %v3399_v62, %v2840_v48  ;;  %v2972_v56 = vpop.xlane.xlu2 %2971 }
0x1148   :  { %v2843_v23 = vadd.f32 %v2842_v0, %v2841_v53 }
0x114a   :  { %2845 = vst.msk [vmem:[#allocation2 + $0xe] sm:$0x3] %vm548_vm6, %v2843_v23 }
0x114e   :  { %v2975_v8 = vpop.xlane.xlu2 %2974 }
0x1151   :  { %v4518_v25 = vld [vmem:[#allocation2 + $0xe] sm:$0x3] }
0x1152   :  { %2883 = vst [vmem:[#allocation1 + $0x23] ss:$4 sm:$0xff] %v4518_v25 }
0x1159   :  { %v2885_v37 = vld.sshfl [vmem:[#allocation1 + $0x20] sm:$0xff pattern:$0x73625140] }
0x115a   :  { %2895 = vst [vmem:[#allocation1 + $0x20] ss:$4 sm:$0xff] %v4491_v50  ;;  %3211 = vmatmul.msk.f32.gmra.mxu2 %vm234_vm9, %v2885_v37  ;;  %vm2988_vm9 = vcmask 1041408  }
0x115b   :  { %2897 = vst [vmem:[#allocation1 + $0x21] ss:$4 sm:$0xff] %v4491_v50  ;;  %v2990_v10 = vsel %vm2988_vm9, %v2969_v33, -inf  ;;  %v2989_v41 = vsel %vm2988_vm9, %v2966_v49, -inf  ;;  %v2991_v21 = vsel %vm2988_vm9, %v2972_v56, -inf  ;;  %v2992_v24 = vsel %vm2988_vm9, %v2975_v8, -inf }
0x115c   :  { %2899 = vst [vmem:[#allocation1 + $0x22] ss:$4 sm:$0xff] %v4491_v50 }
0x115d   :  { %2901 = vst [vmem:[#allocation1 + $0x23] ss:$4 sm:$0xff] %v4491_v50 }
0x1164   :  { %v2903_v31 = vld.sshfl [vmem:[#allocation1 + $0x20] sm:$0xff pattern:$0x73625140] }
0x11dd   :  { %v2930_v30 = vpop.f32.mrf.mxu2 }
0x11de   :  { %v2931_v7 = vadd.f32 %v2930_v30, %v2903_v31 }
0x11e0   :  { %v2938_v61 = vrot.slane %v2931_v7, 2  ;;  %v2939_v45 = vrot.slane %v2931_v7, 4  ;;  %v2940_v34 = vrot.slane %v2931_v7, 6  ;;  %3400 = vtanh.f32 %v2931_v7 }
0x11e2   :  { %3402 = vtanh.f32 %v2938_v61 }
0x11e3   :  { %3404 = vtanh.f32 %v2939_v45 }
0x11e4   :  { %3406 = vtanh.f32 %v2940_v34 }
0x11e6   :  { %v3401_v5 = vpop.eup %3400 }
0x11e7   :  { %v2960_v19 = vmul.f32 %v3401_v5, %v4502_v20 }
0x11e8   :  { %v3403_v40 = vpop.eup %3402 }
0x11e9   :  { %v3405_v2 = vpop.eup %3404  ;;  %v2976_v27 = vsel %vm548_vm6, %v2960_v19, 0.0  ;;  %v2961_v14 = vmul.f32 %v3403_v40, %v4502_v20 }
0x11ea   :  { %v3407_v50 = vpop.eup %3406  ;;  %2977 = vadd.xlane.f32.xlu0 %v2976_v27  ;;  %v2962_v28 = vmul.f32 %v3405_v2, %v4502_v20 }
0x11eb   :  { %v2979_v59 = vsel %vm548_vm6, %v2961_v14, 0.0  ;;  %v2963_v36 = vmul.f32 %v3407_v50, %v4502_v20 }
0x11ec   :  { %v2982_v12 = vsel %vm548_vm6, %v2962_v28, 0.0  ;;  %2980 = vadd.xlane.f32.xlu1 %v2979_v59 }
0x11ed   :  { %2983 = vadd.xlane.f32.xlu2 %v2982_v12  ;;  %v2985_v3 = vsel %vm548_vm6, %v2963_v36, 0.0 }
0x11f2   :  { %2986 = vadd.xlane.f32.xlu0 %v2985_v3 }
0x1205   :  { %2847 = vrot.lane.b32.xlu1 %v2843_v23, %s3640_s27 }
0x125d   :  { %v2978_v63 = vpop.xlane.xlu0 %2977 }
0x125e   :  { %v2993_v6 = vsel %vm2988_vm9, %v2978_v63, -inf }
0x125f   :  { %v2981_v32 = vpop.xlane.xlu1 %2980  ;;  %v2994_v57 = vmax.f32 %v2989_v41, %v2993_v6 }
0x1260   :  { %v2984_v38 = vpop.xlane.xlu2 %2983  ;;  %v2995_v54 = vsel %vm2988_vm9, %v2981_v32, -inf }
0x1261   :  { %v2997_v20 = vsel %vm2988_vm9, %v2984_v38, -inf  ;;  %v2996_v4 = vmax.f32 %v2990_v10, %v2995_v54 }
0x1262   :  { %v2998_v18 = vmax.f32 %v2991_v21, %v2997_v20 }
0x1263   :  { %v3001_v44 = vmax.f32 %v2994_v57, %v2996_v4 }
0x1265   :  { %v2987_v16 = vpop.xlane.xlu0 %2986 }
0x1266   :  { %v2999_v9 = vsel %vm2988_vm9, %v2987_v16, -inf }
0x1267   :  { %v3000_v22 = vmax.f32 %v2992_v24, %v2999_v9 }
0x1269   :  { %v3002_v51 = vmax.f32 %v2998_v18, %v3000_v22 }
0x126b   :  { %v3003_v60 = vmax.f32 %v3001_v44, %v3002_v51 }
0x126d   :  { %v3004_v11 = vsub.f32 %v2966_v49, %v3003_v60  ;;  %v3005_v13 = vsub.f32 %v2969_v33, %v3003_v60  ;;  %v3006_v17 = vsub.f32 %v2972_v56, %v3003_v60  ;;  %v3007_v46 = vsub.f32 %v2975_v8, %v3003_v60 }
0x126e   :  { %v3008_v47 = vsub.f32 %v2978_v63, %v3003_v60  ;;  %v3009_v48 = vsub.f32 %v2981_v32, %v3003_v60  ;;  %v3010_v53 = vsub.f32 %v2984_v38, %v3003_v60  ;;  %v3011_v23 = vsub.f32 %v2987_v16, %v3003_v60 }
0x126f   :  { %v3012_v55 = vmul.f32 1.442695, %v3004_v11  ;;  %v3014_v39 = vmul.f32 1.442695, %v3005_v13  ;;  %v3016_v52 = vmul.f32 1.442695, %v3006_v17 }
0x1270   :  { %v3018_v62 = vmul.f32 1.442695, %v3007_v46  ;;  %v3020_v0 = vmul.f32 1.442695, %v3008_v47  ;;  %v3022_v37 = vmul.f32 1.442695, %v3009_v48 }
0x1271   :  { %3408 = vpow2.f32 %v3012_v55  ;;  %v3024_v31 = vmul.f32 1.442695, %v3010_v53  ;;  %v3026_v45 = vmul.f32 1.442695, %v3011_v23 }
0x1272   :  { %3410 = vpow2.f32 %v3014_v39 }
0x1273   :  { %3412 = vpow2.f32 %v3016_v52 }
0x1274   :  { %3414 = vpow2.f32 %v3018_v62 }
0x1275   :  { %3416 = vpow2.f32 %v3020_v0 }
0x1276   :  { %3418 = vpow2.f32 %v3022_v37 }
0x1277   :  { %v3409_v30 = vpop.eup %3408  ;;  %v2848_v7 = vpop.permute.xlu1 %2847  ;;  %3420 = vpow2.f32 %v3024_v31 }
0x1278   :  { %v3411_v61 = vpop.eup %3410  ;;  %v3028_v34 = vsel %vm2988_vm9, %v3409_v30, 0.0  ;;  %v2850_v5 = vadd.f32 %v2848_v7, %v4470_v29  ;;  %3422 = vpow2.f32 %v3026_v45 }
0x1279   :  { %v3413_v19 = vpop.eup %3412  ;;  %v3029_v40 = vsel %vm2988_vm9, %v3411_v61, 0.0 }
0x127a   :  { %v3415_v2 = vpop.eup %3414  ;;  %v3030_v27 = vadd.f32 %v3029_v40, %v3028_v34  ;;  %v2851_v14 = vmul.f32 0.5, %v2850_v5  ;;  %v3031_v50 = vsel %vm2988_vm9, %v3413_v19, 0.0 }
0x127b   :  { %v3417_v28 = vpop.eup %3416  ;;  %v3033_v12 = vsel %vm2988_vm9, %v3415_v2, 0.0 }
0x127c   :  { %v3032_v59 = vadd.f32 %v3031_v50, %v3030_v27  ;;  %3079 = vst [vmem:[#allocation1] ss:$4 sm:$0xff] %v2851_v14  ;;  %v3419_v36 = vpop.eup %3418  ;;  %v3035_v56 = vsel %vm2988_vm9, %v3417_v28, 0.0 }
0x127d   :  { %v3421_v29 = vpop.eup %3420  ;;  %v3037_v33 = vsel %vm2988_vm9, %v3419_v36, 0.0 }
0x127e   :  { %v3034_v3 = vadd.f32 %v3033_v12, %v3032_v59  ;;  %v3423_v8 = vpop.eup %3422  ;;  %v3039_v32 = vsel %vm2988_vm9, %v3421_v29, 0.0 }
0x127f   :  { %v3041_v10 = vsel %vm2988_vm9, %v3423_v8, 0.0 }
0x1280   :  { %v3036_v49 = vadd.f32 %v3035_v56, %v3034_v3 }
0x1282   :  { %v3038_v63 = vadd.f32 %v3037_v33, %v3036_v49 }
0x1283   :  { %v3080_v38 = vld.sshfl [vmem:[#allocation1] sm:$0xff pattern:$0x73625140] }
0x1284   :  { %v3040_v54 = vadd.f32 %v3039_v32, %v3038_v63  ;;  %3081 = vrot.lane.b32.xlu2 %v3080_v38, %s3646_s3 }
0x1286   :  { %v3042_v6 = vadd.f32 %v3041_v10, %v3040_v54 }
0x1288   :  { %3424 = vrcp.f32 %v3042_v6 }
0x128e   :  { %v3425_v20 = vpop.eup %3424 }
0x128f   :  { %v3044_v4 = vmul.f32 %v3425_v20, %v3042_v6 }
0x1291   :  { %v3045_v16 = vsub.f32 2.0, %v3044_v4 }
0x1293   :  { %v3046_v41 = vmul.f32 %v3425_v20, %v3045_v16 }
0x1295   :  { %v3047_v21 = vmul.f32 %v3409_v30, %v3046_v41  ;;  %v3048_v24 = vmul.f32 %v3411_v61, %v3046_v41  ;;  %v3049_v9 = vmul.f32 %v3413_v19, %v3046_v41  ;;  %v3050_v57 = vmul.f32 %v3415_v2, %v3046_v41 }
0x1296   :  { %v3051_v18 = vmul.f32 %v3417_v28, %v3046_v41  ;;  %v3052_v60 = vmul.f32 %v3419_v36, %v3046_v41  ;;  %v3053_v47 = vmul.f32 %v3421_v29, %v3046_v41  ;;  %v3054_v48 = vmul.f32 %v3423_v8, %v3046_v41 }
0x1297   :  { %v3055_v22 = vmul.f32 %v3047_v21, %v4477_v26  ;;  %v3056_v44 = vmul.f32 %v3048_v24, %v4479_v35  ;;  %v3057_v51 = vmul.f32 %v3049_v9, %v4483_v42  ;;  %v3058_v11 = vmul.f32 %v3050_v57, %v4486_v43 }
0x1298   :  { %v3059_v55 = vmul.f32 %v3051_v18, %v4335_v1  ;;  %v3060_v26 = vmul.f32 %v3052_v60, %v4406_v58  ;;  %v3061_v62 = vmul.f32 %v3053_v47, %v4463_v15  ;;  %v3062_v0 = vmul.f32 %v3054_v48, %v4518_v25 }
0x1299   :  { %v3063_v13 = vsel %vm548_vm6, %v3055_v22, 0.0  ;;  %v3064_v17 = vsel %vm548_vm6, %v3056_v44, 0.0  ;;  %v3066_v39 = vsel %vm548_vm6, %v3057_v51, 0.0  ;;  %v3068_v35 = vsel %vm548_vm6, %v3058_v11, 0.0 }
0x129a   :  { %v3065_v46 = vadd.f32 %v3064_v17, %v3063_v13  ;;  %v3070_v43 = vsel %vm548_vm6, %v3059_v55, 0.0  ;;  %v3072_v23 = vsel %vm548_vm6, %v3060_v26, 0.0  ;;  %v3074_v1 = vsel %vm548_vm6, %v3061_v62, 0.0 }
0x129b   :  { %v3076_v30 = vsel %vm548_vm6, %v3062_v0, 0.0 }
0x129c   :  { %v3067_v52 = vadd.f32 %v3066_v39, %v3065_v46 }
0x129e   :  { %v3069_v42 = vadd.f32 %v3068_v35, %v3067_v52 }
0x12a0   :  { %v3071_v53 = vadd.f32 %v3070_v43, %v3069_v42 }
0x12a2   :  { %v3073_v37 = vadd.f32 %v3072_v23, %v3071_v53 }
0x12a4   :  { %v3075_v31 = vadd.f32 %v3074_v1, %v3073_v37 }
0x12a6   :  { %v3077_v7 = vadd.f32 %v3076_v30, %v3075_v31 }
0x12a8   :  { %3086 = vrot.lane.b32.xlu0 %v3077_v7, %s3640_s27 }
0x12de   :  { %v3082_v58 = vpop.permute.xlu2 %3081 }
0x12df   :  { %3084 = vst.msk [vmem:[#allocation11] sm:$0x3] %vm548_vm6, %v3082_v58 }
0x131a   :  { %v3087_v15 = vpop.permute.xlu0 %3086 }
0x131b   :  { %3090 = vst.msk [vmem:[#allocation11] sm:$0x3] %vm3089_vm2, %v3087_v15 }
0x131c   :  { %3101 = dma.vmem_to_hbm [thread:$0]  %s3097_s12, 32, %s3099_s15, [#allocation5]  }
0x131d   :  { %3634 = dma.done.wait [#allocation5], 32  }
0x131e   :  { %3635 = vsyncadd [#allocation5], 4294967264 }
0x131f   :  { %3106 = vsyncpa [#allocation4], 1 }
0x1320   :  { %3107 = vsyncpa [#allocation7], 1 }
0x1321   :  { %3108 = vsyncpa [#allocation10], 1 }
0x1322   :  { %3109 = vsyncpa [#allocation5], 1 }

</bundles_post_ra>
